<compile_context>
chip_gen: v5e
topology: v5e:2x2
jax: 0.10.0
libtpu: 0.0.40
codegen_flags: <defaults>
</compile_context>

<pallas_src>
import jax
import jax.numpy as jnp
from jax import lax
from jax.experimental import pallas as pl
from jax.experimental.pallas import tpu as pltpu


_LPAD = 8   # left halo width: makes the scratch interior start sublane-aligned


# ----------------------------- Pallas kernel -----------------------------

def _residual_block_kernel(x_ref, w1_ref, w2_ref, s1_ref, b1_ref,
                           s2_ref, b2_ref, out_ref, xpad, mpad):
    """Fused conv3x3+BN+ReLU -> conv3x3+BN -> +residual -> ReLU (one image).

    x_ref  : (1, H, W, Cp)     channels padded to Cp (lane-dense), compute dtype
    w1_ref : (3, 3, Cp, Cp)    conv1 weights (ky, kx, cin, cout), compute dtype
    w2_ref : (3, 3, Cp, Cp)    conv2 weights
    s*_ref : (1, Cp)           folded BN scale (f32)
    b*_ref : (1, Cp)           folded BN bias incl. conv bias (f32)
    out_ref: (1, H, W, Cp)     f32
    xpad   : VMEM (H+2, L+W+1, Cp) scratch: zero halo + input interior
    mpad   : VMEM (H+2, L+W+1, Cp) scratch: zero halo + conv1 output interior
    """
    H, W, Cp = out_ref.shape[1], out_ref.shape[2], out_ref.shape[3]
    L = _LPAD

    # Zero ONLY the 1-px halo strips (rows 0 / H+1, cols L-1 / L+W); the
    # interiors are fully overwritten below.  Done every step so the kernel is
    # correct under megacore "parallel" sharding (no program_id==0 guard).
    def zero_halo(buf):
        WP = buf.shape[1]
        buf[0:1, :, :] = jnp.zeros((1, WP, Cp), buf.dtype)
        buf[H + 1:H + 2, :, :] = jnp.zeros((1, WP, Cp), buf.dtype)
        buf[:, L - 1:L, :] = jnp.zeros((H + 2, 1, Cp), buf.dtype)
        buf[:, L + W:L + W + 1, :] = jnp.zeros((H + 2, 1, Cp), buf.dtype)

    zero_halo(xpad)
    zero_halo(mpad)

    # Interior write starts at sublane-aligned column L -> unmasked stores.
    xpad[1:H + 1, L:L + W, :] = x_ref[0]

    def conv3x3(src, w_ref):
        # 9 accumulating K=Cp matmuls straight off the shifted slices
        # (no im2col concatenate temporaries).  f32 accumulation on the MXU.
        acc = jnp.zeros((H * W, Cp), jnp.float32)
        for dy in range(3):
            for dx in range(3):
                tap = src[dy:dy + H, L - 1 + dx:L - 1 + dx + W, :]
                acc += jnp.dot(tap.reshape(H * W, Cp), w_ref[dy, dx],
                               preferred_element_type=jnp.float32)
        return acc

    # conv1 + BN1 + ReLU  (result stays in VMEM; f32 epilogue on the VPU).
    y1 = jnp.maximum(conv3x3(xpad, w1_ref) * s1_ref[...] + b1_ref[...], 0.0)
    mpad[1:H + 1, L:L + W, :] = y1.reshape(H, W, Cp).astype(mpad.dtype)

    # conv2 + BN2 + identity residual (straight from the input block) + ReLU.
    y2 = conv3x3(mpad, w2_ref) * s2_ref[...] + b2_ref[...]
    y2 = y2 + x_ref[0].reshape(H * W, Cp).astype(jnp.float32)
    out_ref[0] = jnp.maximum(y2, 0.0).reshape(H, W, Cp).astype(out_ref.dtype)


# ------------------------------ host wrapper ------------------------------

def _round_up(x, m):
    return (x + m - 1) // m * m


def _fold_bn(conv_b, bn, cout, cp, eps=1e-5):
    """Fold conv bias + eval-mode BN into per-channel scale/bias, lane-padded."""
    scale = bn["gamma"] / jnp.sqrt(bn["var"] + eps)
    bias = (conv_b - bn["mean"]) * scale + bn["beta"]
    scale = jnp.pad(scale, (0, cp - cout))
    bias = jnp.pad(bias, (0, cp - cout))
    return scale[None, :].astype(jnp.float32), bias[None, :].astype(jnp.float32)


def _prep_conv_w(w_oihw, cp, compute_dtype):
    """OIHW -> (3, 3, Cp, Cp) = (ky, kx, cin_pad, cout_pad)."""
    cout, cin = w_oihw.shape[0], w_oihw.shape[1]
    w = jnp.transpose(w_oihw, (2, 3, 1, 0))              # HWIO: (3, 3, cin, cout)
    w = jnp.pad(w, ((0, 0), (0, 0), (0, cp - cin), (0, cp - cout)))
    return w.astype(compute_dtype)


def _vmem_limit_bytes(H, W, WP, Cp, compute_dtype):
    """Size the VMEM limit from the actual working set instead of a constant."""
    cb = jnp.dtype(compute_dtype).itemsize
    x_blk = H * W * Cp * cb * 2           # double-buffered input block
    out_blk = H * W * Cp * 4 * 2          # double-buffered f32 output block
    weights = 2 * 9 * Cp * Cp * cb * 2    # w1, w2 (grid-invariant, 2-buffered alloc)
    vecs = 4 * Cp * 4 * 2
    scratch = 2 * (H + 2) * WP * Cp * cb  # xpad, mpad
    temps = 6 * H * W * Cp * 4            # acc / y1 / y2 / relayout temporaries
    need = x_blk + out_blk + weights + vecs + scratch + temps
    return int(min(max(int(need * 1.5), 32 * 1024 * 1024), 96 * 1024 * 1024))


def residual_block_forward(x_nchw, params, compute_dtype=jnp.bfloat16):
    """Pallas forward. x_nchw: (N, C, H, W) -> (N, C, H, W) in f32."""
    N, Cin, H, W = x_nchw.shape
    Cout = params["w1"].shape[0]
    assert Cin == Cout, "identity residual requires in_channels == out_channels"
    Cp = _round_up(max(Cin, Cout), 128)      # lane-dense channels
    WP = _LPAD + W + 1                       # aligned interior + 1-px right halo

    # TODO(synk): in an end-to-end ResNet, keep activations resident in this
    #             NHWC / channel-padded layout across blocks instead of
    #             transposing + padding per call (wrapper ops cost HBM BW).
    x = jnp.transpose(x_nchw, (0, 2, 3, 1))                       # NHWC
    x = jnp.pad(x, ((0, 0), (0, 0), (0, 0), (0, Cp - Cin))).astype(compute_dtype)

    w1 = _prep_conv_w(params["w1"], Cp, compute_dtype)
    w2 = _prep_conv_w(params["w2"], Cp, compute_dtype)
    s1, b1 = _fold_bn(params["b1"], params["bn1"], Cout, Cp)
    s2, b2 = _fold_bn(params["b2"], params["bn2"], Cout, Cp)

    out = pl.pallas_call(
        _residual_block_kernel,
        out_shape=jax.ShapeDtypeStruct((N, H, W, Cp), jnp.float32),
        grid=(N,),
        in_specs=[
            pl.BlockSpec((1, H, W, Cp), lambda n: (n, 0, 0, 0)),
            pl.BlockSpec((3, 3, Cp, Cp), lambda n: (0, 0, 0, 0)),
            pl.BlockSpec((3, 3, Cp, Cp), lambda n: (0, 0, 0, 0)),
            pl.BlockSpec((1, Cp), lambda n: (0, 0)),
            pl.BlockSpec((1, Cp), lambda n: (0, 0)),
            pl.BlockSpec((1, Cp), lambda n: (0, 0)),
            pl.BlockSpec((1, Cp), lambda n: (0, 0)),
        ],
        out_specs=pl.BlockSpec((1, H, W, Cp), lambda n: (n, 0, 0, 0)),
        scratch_shapes=[pltpu.VMEM((H + 2, WP, Cp), compute_dtype),
                        pltpu.VMEM((H + 2, WP, Cp), compute_dtype)],
        compiler_params=pltpu.CompilerParams(
            dimension_semantics=("parallel",),
            vmem_limit_bytes=_vmem_limit_bytes(H, W, WP, Cp, compute_dtype)),
        # TODO(synk): for large feature maps tile the grid over H row-bands
        #             (1-row halo) and block several images per step when H*W
        #             is small; on v7x (64 MiB VMEM) at Cp>=256 single-buffer
        #             w1/w2 (pl.Buffered(1) or one-shot copy to scratch).
    )(x, w1, w2, s1, b1, s2, b2)

    out = out[..., :Cout]                                 # drop padded lanes
    return jnp.transpose(out, (0, 3, 1, 2))               # back to NCHW


# ------------------------------ parameters ------------------------------

def init_residual_block_params(key, in_channels, out_channels):
    """Deterministic parameters matching the module's __init__ shapes."""
    k1, k2, k3, k4 = jax.random.split(key, 4)

    def conv_init(kw, kb, cin, cout):
        fan_in = cin * 3 * 3
        bound = 1.0 / jnp.sqrt(jnp.float32(fan_in))
        w = jax.random.uniform(kw, (cout, cin, 3, 3), jnp.float32, -bound, bound)
        b = jax.random.uniform(kb, (cout,), jnp.float32, -bound, bound)
        return w, b

    w1, b1 = conv_init(k1, k2, in_channels, out_channels)
    w2, b2 = conv_init(k3, k4, out_channels, out_channels)

    def bn_defaults(c):
        return dict(gamma=jnp.ones((c,), jnp.float32),
                    beta=jnp.zeros((c,), jnp.float32),
                    mean=jnp.zeros((c,), jnp.float32),
                    var=jnp.ones((c,), jnp.float32))

    return dict(w1=w1, b1=b1, bn1=bn_defaults(out_channels),
                w2=w2, b2=b2, bn2=bn_defaults(out_channels))


# ------------------------------ pure-JAX ref ------------------------------

def _ref_forward(x_nchw, params, eps=1e-5):
    x = jnp.transpose(x_nchw, (0, 2, 3, 1)).astype(jnp.float32)

    def conv(x, w_oihw, b):
        w = jnp.transpose(w_oihw, (2, 3, 1, 0))                   # HWIO
        y = lax.conv_general_dilated(
            x, w, (1, 1), 'SAME',
            dimension_numbers=('NHWC', 'HWIO', 'NHWC'))
        return y + b

    def bn(y, p):
        return (y - p["mean"]) * p["gamma"] / jnp.sqrt(p["var"] + eps) + p["beta"]

    out = jax.nn.relu(bn(conv(x, params["w1"], params["b1"]), params["bn1"]))
    out = bn(conv(out, params["w2"], params["b2"]), params["bn2"])
    out = jax.nn.relu(out + x)
    return jnp.transpose(out, (0, 3, 1, 2))


# ----------------------------------- main -----------------------------------

if __name__ == "__main__":
    key = jax.random.PRNGKey(0)
    kx, kp = jax.random.split(key)

    in_channels = out_channels = 8
    N, H, W = 2, 16, 16
    x = jax.random.normal(kx, (N, in_channels, H, W), jnp.float32)   # NCHW

    params = init_residual_block_params(kp, in_channels, out_channels)
    ref = _ref_forward(x, params)

    # Exact path: f32 MXU feed, tight tolerance vs the pure-JAX reference.
    out_f32 = jax.block_until_ready(
        residual_block_forward(x, params, compute_dtype=jnp.float32))
    assert out_f32.shape == (N, out_channels, H, W)
    assert jnp.allclose(out_f32, ref, atol=2e-3, rtol=2e-3), "f32 mismatch vs ref"

    # Default (perf) path: bf16 MXU feed, f32 accumulation + epilogue.
    out_bf16 = jax.block_until_ready(residual_block_forward(x, params))
    assert out_bf16.shape == (N, out_channels, H, W)
    assert jnp.allclose(out_bf16, ref, atol=1e-1, rtol=1e-1), "bf16 mismatch vs ref"

    print("KERNEL_OK")
</pallas_src>

<mosaic_0001>
module attributes {stable_mosaic.version = 11 : i64} {
  func.func @_residual_block_kernel(%arg0: i32, %arg1: memref<1x16x16x128xf32, #tpu.memory_space<vmem>>, %arg2: memref<3x3x128x128xf32, #tpu.memory_space<vmem>>, %arg3: memref<3x3x128x128xf32, #tpu.memory_space<vmem>>, %arg4: memref<1x128xf32, #tpu.memory_space<vmem>>, %arg5: memref<1x128xf32, #tpu.memory_space<vmem>>, %arg6: memref<1x128xf32, #tpu.memory_space<vmem>>, %arg7: memref<1x128xf32, #tpu.memory_space<vmem>>, %arg8: memref<1x16x16x128xf32, #tpu.memory_space<vmem>>, %arg9: memref<18x25x128xf32, #tpu.memory_space<vmem>>, %arg10: memref<18x25x128xf32, #tpu.memory_space<vmem>>) attributes {dimension_semantics = [#tpu.dimension_semantics<parallel>], iteration_bounds = array<i64: 2>, scalar_prefetch = 0 : i64, scratch_operands = 2 : i64, tpu.core_type = #tpu.core_type<tc>, window_params = [{transform_indices = @transform_0, window_bounds = array<i64: 1, 16, 16, 128>}, {pipeline_mode = #tpu.pipeline_mode<synchronous>, transform_indices = @transform_1, window_bounds = array<i64: 3, 3, 128, 128>}, {pipeline_mode = #tpu.pipeline_mode<synchronous>, transform_indices = @transform_2, window_bounds = array<i64: 3, 3, 128, 128>}, {pipeline_mode = #tpu.pipeline_mode<synchronous>, transform_indices = @transform_3, window_bounds = array<i64: 1, 128>}, {pipeline_mode = #tpu.pipeline_mode<synchronous>, transform_indices = @transform_4, window_bounds = array<i64: 1, 128>}, {pipeline_mode = #tpu.pipeline_mode<synchronous>, transform_indices = @transform_5, window_bounds = array<i64: 1, 128>}, {pipeline_mode = #tpu.pipeline_mode<synchronous>, transform_indices = @transform_6, window_bounds = array<i64: 1, 128>}, {transform_indices = @transform_7, window_bounds = array<i64: 1, 16, 16, 128>}]} {
    %cst = arith.constant 0.000000e+00 : f32
    %0 = vector.broadcast %cst : f32 to vector<1x25x128xf32>
    %c0 = arith.constant 0 : index
    %c0_0 = arith.constant 0 : index
    %c0_1 = arith.constant 0 : index
    %1 = vector.load %arg9[%c0, %c0_0, %c0_1] : memref<18x25x128xf32, #tpu.memory_space<vmem>>, vector<1x25x128xf32>
    tpu.vector_store %arg9[%c0, %c0_0, %c0_1], %0 {strides = array<i32>} : memref<18x25x128xf32, #tpu.memory_space<vmem>>, vector<1x25x128xf32>,
    %cst_2 = arith.constant 0.000000e+00 : f32
    %2 = vector.broadcast %cst_2 : f32 to vector<1x25x128xf32>
    %c17 = arith.constant 17 : index
    %c0_3 = arith.constant 0 : index
    %c0_4 = arith.constant 0 : index
    %3 = vector.load %arg9[%c17, %c0_3, %c0_4] : memref<18x25x128xf32, #tpu.memory_space<vmem>>, vector<1x25x128xf32>
    tpu.vector_store %arg9[%c17, %c0_3, %c0_4], %2 {strides = array<i32>} : memref<18x25x128xf32, #tpu.memory_space<vmem>>, vector<1x25x128xf32>,
    %cst_5 = arith.constant 0.000000e+00 : f32
    %4 = vector.broadcast %cst_5 : f32 to vector<18x1x128xf32>
    %c0_6 = arith.constant 0 : index
    %c7 = arith.constant 7 : index
    %c0_7 = arith.constant 0 : index
    %5 = vector.load %arg9[%c0_6, %c7, %c0_7] : memref<18x25x128xf32, #tpu.memory_space<vmem>>, vector<18x1x128xf32>
    tpu.vector_store %arg9[%c0_6, %c7, %c0_7], %4 {strides = array<i32>} : memref<18x25x128xf32, #tpu.memory_space<vmem>>, vector<18x1x128xf32>,
    %cst_8 = arith.constant 0.000000e+00 : f32
    %6 = vector.broadcast %cst_8 : f32 to vector<18x1x128xf32>
    %c0_9 = arith.constant 0 : index
    %c24 = arith.constant 24 : index
    %c0_10 = arith.constant 0 : index
    %7 = vector.load %arg9[%c0_9, %c24, %c0_10] : memref<18x25x128xf32, #tpu.memory_space<vmem>>, vector<18x1x128xf32>
    tpu.vector_store %arg9[%c0_9, %c24, %c0_10], %6 {strides = array<i32>} : memref<18x25x128xf32, #tpu.memory_space<vmem>>, vector<18x1x128xf32>,
    %cst_11 = arith.constant 0.000000e+00 : f32
    %8 = vector.broadcast %cst_11 : f32 to vector<1x25x128xf32>
    %c0_12 = arith.constant 0 : index
    %c0_13 = arith.constant 0 : index
    %c0_14 = arith.constant 0 : index
    %9 = vector.load %arg10[%c0_12, %c0_13, %c0_14] : memref<18x25x128xf32, #tpu.memory_space<vmem>>, vector<1x25x128xf32>
    tpu.vector_store %arg10[%c0_12, %c0_13, %c0_14], %8 {strides = array<i32>} : memref<18x25x128xf32, #tpu.memory_space<vmem>>, vector<1x25x128xf32>,
    %cst_15 = arith.constant 0.000000e+00 : f32
    %10 = vector.broadcast %cst_15 : f32 to vector<1x25x128xf32>
    %c17_16 = arith.constant 17 : index
    %c0_17 = arith.constant 0 : index
    %c0_18 = arith.constant 0 : index
    %11 = vector.load %arg10[%c17_16, %c0_17, %c0_18] : memref<18x25x128xf32, #tpu.memory_space<vmem>>, vector<1x25x128xf32>
    tpu.vector_store %arg10[%c17_16, %c0_17, %c0_18], %10 {strides = array<i32>} : memref<18x25x128xf32, #tpu.memory_space<vmem>>, vector<1x25x128xf32>,
    %cst_19 = arith.constant 0.000000e+00 : f32
    %12 = vector.broadcast %cst_19 : f32 to vector<18x1x128xf32>
    %c0_20 = arith.constant 0 : index
    %c7_21 = arith.constant 7 : index
    %c0_22 = arith.constant 0 : index
    %13 = vector.load %arg10[%c0_20, %c7_21, %c0_22] : memref<18x25x128xf32, #tpu.memory_space<vmem>>, vector<18x1x128xf32>
    tpu.vector_store %arg10[%c0_20, %c7_21, %c0_22], %12 {strides = array<i32>} : memref<18x25x128xf32, #tpu.memory_space<vmem>>, vector<18x1x128xf32>,
    %cst_23 = arith.constant 0.000000e+00 : f32
    %14 = vector.broadcast %cst_23 : f32 to vector<18x1x128xf32>
    %c0_24 = arith.constant 0 : index
    %c24_25 = arith.constant 24 : index
    %c0_26 = arith.constant 0 : index
    %15 = vector.load %arg10[%c0_24, %c24_25, %c0_26] : memref<18x25x128xf32, #tpu.memory_space<vmem>>, vector<18x1x128xf32>
    tpu.vector_store %arg10[%c0_24, %c24_25, %c0_26], %14 {strides = array<i32>} : memref<18x25x128xf32, #tpu.memory_space<vmem>>, vector<18x1x128xf32>,
    %c0_27 = arith.constant 0 : index
    %c0_28 = arith.constant 0 : index
    %c0_29 = arith.constant 0 : index
    %c0_30 = arith.constant 0 : index
    %16 = vector.load %arg1[%c0_27, %c0_28, %c0_29, %c0_30] : memref<1x16x16x128xf32, #tpu.memory_space<vmem>>, vector<1x16x16x128xf32>
    %17 = vector.shape_cast %16 : vector<1x16x16x128xf32> to vector<16x16x128xf32>
    %c1 = arith.constant 1 : index
    %c8 = arith.constant 8 : index
    %c0_31 = arith.constant 0 : index
    %18 = vector.load %arg9[%c1, %c8, %c0_31] : memref<18x25x128xf32, #tpu.memory_space<vmem>>, vector<16x16x128xf32>
    tpu.vector_store %arg9[%c1, %c8, %c0_31], %17 {strides = array<i32>} : memref<18x25x128xf32, #tpu.memory_space<vmem>>, vector<16x16x128xf32>,
    %cst_32 = arith.constant 0.000000e+00 : f32
    %19 = vector.broadcast %cst_32 : f32 to vector<256x128xf32>
    %c0_33 = arith.constant 0 : index
    %c7_34 = arith.constant 7 : index
    %c0_35 = arith.constant 0 : index
    %20 = vector.load %arg9[%c0_33, %c7_34, %c0_35] : memref<18x25x128xf32, #tpu.memory_space<vmem>>, vector<16x16x128xf32>
    %21 = vector.shape_cast %20 : vector<16x16x128xf32> to vector<256x128xf32>
    %c0_36 = arith.constant 0 : index
    %c0_37 = arith.constant 0 : index
    %c0_38 = arith.constant 0 : index
    %c0_39 = arith.constant 0 : index
    %22 = vector.load %arg2[%c0_36, %c0_37, %c0_38, %c0_39] : memref<3x3x128x128xf32, #tpu.memory_space<vmem>>, vector<1x1x128x128xf32>
    %23 = vector.shape_cast %22 : vector<1x1x128x128xf32> to vector<128x128xf32>
    %cst_40 = arith.constant dense<0.000000e+00> : vector<256x128xf32>
    %24 = tpu.matmul %21, %23, %cst_40 {dimension_numbers = #tpu.dot_dimension_numbers<[1], [0], [0], [1], [0, 0, 1, 1], [], []>} : vector<256x128xf32>, vector<128x128xf32>, vector<256x128xf32> -> vector<256x128xf32>
    %25 = arith.addf %19, %24 : vector<256x128xf32>
    %c0_41 = arith.constant 0 : index
    %c8_42 = arith.constant 8 : index
    %c0_43 = arith.constant 0 : index
    %26 = vector.load %arg9[%c0_41, %c8_42, %c0_43] : memref<18x25x128xf32, #tpu.memory_space<vmem>>, vector<16x16x128xf32>
    %27 = vector.shape_cast %26 : vector<16x16x128xf32> to vector<256x128xf32>
    %c0_44 = arith.constant 0 : index
    %c1_45 = arith.constant 1 : index
    %c0_46 = arith.constant 0 : index
    %c0_47 = arith.constant 0 : index
    %28 = vector.load %arg2[%c0_44, %c1_45, %c0_46, %c0_47] : memref<3x3x128x128xf32, #tpu.memory_space<vmem>>, vector<1x1x128x128xf32>
    %29 = vector.shape_cast %28 : vector<1x1x128x128xf32> to vector<128x128xf32>
    %cst_48 = arith.constant dense<0.000000e+00> : vector<256x128xf32>
    %30 = tpu.matmul %27, %29, %cst_48 {dimension_numbers = #tpu.dot_dimension_numbers<[1], [0], [0], [1], [0, 0, 1, 1], [], []>} : vector<256x128xf32>, vector<128x128xf32>, vector<256x128xf32> -> vector<256x128xf32>
    %31 = arith.addf %25, %30 : vector<256x128xf32>
    %c0_49 = arith.constant 0 : index
    %c9 = arith.constant 9 : index
    %c0_50 = arith.constant 0 : index
    %32 = vector.load %arg9[%c0_49, %c9, %c0_50] : memref<18x25x128xf32, #tpu.memory_space<vmem>>, vector<16x16x128xf32>
    %33 = vector.shape_cast %32 : vector<16x16x128xf32> to vector<256x128xf32>
    %c0_51 = arith.constant 0 : index
    %c2 = arith.constant 2 : index
    %c0_52 = arith.constant 0 : index
    %c0_53 = arith.constant 0 : index
    %34 = vector.load %arg2[%c0_51, %c2, %c0_52, %c0_53] : memref<3x3x128x128xf32, #tpu.memory_space<vmem>>, vector<1x1x128x128xf32>
    %35 = vector.shape_cast %34 : vector<1x1x128x128xf32> to vector<128x128xf32>
    %cst_54 = arith.constant dense<0.000000e+00> : vector<256x128xf32>
    %36 = tpu.matmul %33, %35, %cst_54 {dimension_numbers = #tpu.dot_dimension_numbers<[1], [0], [0], [1], [0, 0, 1, 1], [], []>} : vector<256x128xf32>, vector<128x128xf32>, vector<256x128xf32> -> vector<256x128xf32>
    %37 = arith.addf %31, %36 : vector<256x128xf32>
    %c1_55 = arith.constant 1 : index
    %c7_56 = arith.constant 7 : index
    %c0_57 = arith.constant 0 : index
    %38 = vector.load %arg9[%c1_55, %c7_56, %c0_57] : memref<18x25x128xf32, #tpu.memory_space<vmem>>, vector<16x16x128xf32>
    %39 = vector.shape_cast %38 : vector<16x16x128xf32> to vector<256x128xf32>
    %c1_58 = arith.constant 1 : index
    %c0_59 = arith.constant 0 : index
    %c0_60 = arith.constant 0 : index
    %c0_61 = arith.constant 0 : index
    %40 = vector.load %arg2[%c1_58, %c0_59, %c0_60, %c0_61] : memref<3x3x128x128xf32, #tpu.memory_space<vmem>>, vector<1x1x128x128xf32>
    %41 = vector.shape_cast %40 : vector<1x1x128x128xf32> to vector<128x128xf32>
    %cst_62 = arith.constant dense<0.000000e+00> : vector<256x128xf32>
    %42 = tpu.matmul %39, %41, %cst_62 {dimension_numbers = #tpu.dot_dimension_numbers<[1], [0], [0], [1], [0, 0, 1, 1], [], []>} : vector<256x128xf32>, vector<128x128xf32>, vector<256x128xf32> -> vector<256x128xf32>
    %43 = arith.addf %37, %42 : vector<256x128xf32>
    %c1_63 = arith.constant 1 : index
    %c8_64 = arith.constant 8 : index
    %c0_65 = arith.constant 0 : index
    %44 = vector.load %arg9[%c1_63, %c8_64, %c0_65] : memref<18x25x128xf32, #tpu.memory_space<vmem>>, vector<16x16x128xf32>
    %45 = vector.shape_cast %44 : vector<16x16x128xf32> to vector<256x128xf32>
    %c1_66 = arith.constant 1 : index
    %c1_67 = arith.constant 1 : index
    %c0_68 = arith.constant 0 : index
    %c0_69 = arith.constant 0 : index
    %46 = vector.load %arg2[%c1_66, %c1_67, %c0_68, %c0_69] : memref<3x3x128x128xf32, #tpu.memory_space<vmem>>, vector<1x1x128x128xf32>
    %47 = vector.shape_cast %46 : vector<1x1x128x128xf32> to vector<128x128xf32>
    %cst_70 = arith.constant dense<0.000000e+00> : vector<256x128xf32>
    %48 = tpu.matmul %45, %47, %cst_70 {dimension_numbers = #tpu.dot_dimension_numbers<[1], [0], [0], [1], [0, 0, 1, 1], [], []>} : vector<256x128xf32>, vector<128x128xf32>, vector<256x128xf32> -> vector<256x128xf32>
    %49 = arith.addf %43, %48 : vector<256x128xf32>
    %c1_71 = arith.constant 1 : index
    %c9_72 = arith.constant 9 : index
    %c0_73 = arith.constant 0 : index
    %50 = vector.load %arg9[%c1_71, %c9_72, %c0_73] : memref<18x25x128xf32, #tpu.memory_space<vmem>>, vector<16x16x128xf32>
    %51 = vector.shape_cast %50 : vector<16x16x128xf32> to vector<256x128xf32>
    %c1_74 = arith.constant 1 : index
    %c2_75 = arith.constant 2 : index
    %c0_76 = arith.constant 0 : index
    %c0_77 = arith.constant 0 : index
    %52 = vector.load %arg2[%c1_74, %c2_75, %c0_76, %c0_77] : memref<3x3x128x128xf32, #tpu.memory_space<vmem>>, vector<1x1x128x128xf32>
    %53 = vector.shape_cast %52 : vector<1x1x128x128xf32> to vector<128x128xf32>
    %cst_78 = arith.constant dense<0.000000e+00> : vector<256x128xf32>
    %54 = tpu.matmul %51, %53, %cst_78 {dimension_numbers = #tpu.dot_dimension_numbers<[1], [0], [0], [1], [0, 0, 1, 1], [], []>} : vector<256x128xf32>, vector<128x128xf32>, vector<256x128xf32> -> vector<256x128xf32>
    %55 = arith.addf %49, %54 : vector<256x128xf32>
    %c2_79 = arith.constant 2 : index
    %c7_80 = arith.constant 7 : index
    %c0_81 = arith.constant 0 : index
    %56 = vector.load %arg9[%c2_79, %c7_80, %c0_81] : memref<18x25x128xf32, #tpu.memory_space<vmem>>, vector<16x16x128xf32>
    %57 = vector.shape_cast %56 : vector<16x16x128xf32> to vector<256x128xf32>
    %c2_82 = arith.constant 2 : index
    %c0_83 = arith.constant 0 : index
    %c0_84 = arith.constant 0 : index
    %c0_85 = arith.constant 0 : index
    %58 = vector.load %arg2[%c2_82, %c0_83, %c0_84, %c0_85] : memref<3x3x128x128xf32, #tpu.memory_space<vmem>>, vector<1x1x128x128xf32>
    %59 = vector.shape_cast %58 : vector<1x1x128x128xf32> to vector<128x128xf32>
    %cst_86 = arith.constant dense<0.000000e+00> : vector<256x128xf32>
    %60 = tpu.matmul %57, %59, %cst_86 {dimension_numbers = #tpu.dot_dimension_numbers<[1], [0], [0], [1], [0, 0, 1, 1], [], []>} : vector<256x128xf32>, vector<128x128xf32>, vector<256x128xf32> -> vector<256x128xf32>
    %61 = arith.addf %55, %60 : vector<256x128xf32>
    %c2_87 = arith.constant 2 : index
    %c8_88 = arith.constant 8 : index
    %c0_89 = arith.constant 0 : index
    %62 = vector.load %arg9[%c2_87, %c8_88, %c0_89] : memref<18x25x128xf32, #tpu.memory_space<vmem>>, vector<16x16x128xf32>
    %63 = vector.shape_cast %62 : vector<16x16x128xf32> to vector<256x128xf32>
    %c2_90 = arith.constant 2 : index
    %c1_91 = arith.constant 1 : index
    %c0_92 = arith.constant 0 : index
    %c0_93 = arith.constant 0 : index
    %64 = vector.load %arg2[%c2_90, %c1_91, %c0_92, %c0_93] : memref<3x3x128x128xf32, #tpu.memory_space<vmem>>, vector<1x1x128x128xf32>
    %65 = vector.shape_cast %64 : vector<1x1x128x128xf32> to vector<128x128xf32>
    %cst_94 = arith.constant dense<0.000000e+00> : vector<256x128xf32>
    %66 = tpu.matmul %63, %65, %cst_94 {dimension_numbers = #tpu.dot_dimension_numbers<[1], [0], [0], [1], [0, 0, 1, 1], [], []>} : vector<256x128xf32>, vector<128x128xf32>, vector<256x128xf32> -> vector<256x128xf32>
    %67 = arith.addf %61, %66 : vector<256x128xf32>
    %c2_95 = arith.constant 2 : index
    %c9_96 = arith.constant 9 : index
    %c0_97 = arith.constant 0 : index
    %68 = vector.load %arg9[%c2_95, %c9_96, %c0_97] : memref<18x25x128xf32, #tpu.memory_space<vmem>>, vector<16x16x128xf32>
    %69 = vector.shape_cast %68 : vector<16x16x128xf32> to vector<256x128xf32>
    %c2_98 = arith.constant 2 : index
    %c2_99 = arith.constant 2 : index
    %c0_100 = arith.constant 0 : index
    %c0_101 = arith.constant 0 : index
    %70 = vector.load %arg2[%c2_98, %c2_99, %c0_100, %c0_101] : memref<3x3x128x128xf32, #tpu.memory_space<vmem>>, vector<1x1x128x128xf32>
    %71 = vector.shape_cast %70 : vector<1x1x128x128xf32> to vector<128x128xf32>
    %cst_102 = arith.constant dense<0.000000e+00> : vector<256x128xf32>
    %72 = tpu.matmul %69, %71, %cst_102 {dimension_numbers = #tpu.dot_dimension_numbers<[1], [0], [0], [1], [0, 0, 1, 1], [], []>} : vector<256x128xf32>, vector<128x128xf32>, vector<256x128xf32> -> vector<256x128xf32>
    %73 = arith.addf %67, %72 : vector<256x128xf32>
    %c0_103 = arith.constant 0 : index
    %c0_104 = arith.constant 0 : index
    %74 = vector.load %arg4[%c0_103, %c0_104] : memref<1x128xf32, #tpu.memory_space<vmem>>, vector<1x128xf32>
    %75 = vector.broadcast %74 : vector<1x128xf32> to vector<256x128xf32>
    %76 = arith.mulf %73, %75 : vector<256x128xf32>
    %c0_105 = arith.constant 0 : index
    %c0_106 = arith.constant 0 : index
    %77 = vector.load %arg5[%c0_105, %c0_106] : memref<1x128xf32, #tpu.memory_space<vmem>>, vector<1x128xf32>
    %78 = vector.broadcast %77 : vector<1x128xf32> to vector<256x128xf32>
    %79 = arith.addf %76, %78 : vector<256x128xf32>
    %cst_107 = arith.constant 0.000000e+00 : f32
    %80 = vector.broadcast %cst_107 : f32 to vector<256x128xf32>
    %81 = arith.maximumf %79, %80 : vector<256x128xf32>
    %82 = vector.shape_cast %81 : vector<256x128xf32> to vector<16x16x128xf32>
    %c1_108 = arith.constant 1 : index
    %c8_109 = arith.constant 8 : index
    %c0_110 = arith.constant 0 : index
    %83 = vector.load %arg10[%c1_108, %c8_109, %c0_110] : memref<18x25x128xf32, #tpu.memory_space<vmem>>, vector<16x16x128xf32>
    tpu.vector_store %arg10[%c1_108, %c8_109, %c0_110], %82 {strides = array<i32>} : memref<18x25x128xf32, #tpu.memory_space<vmem>>, vector<16x16x128xf32>,
    %cst_111 = arith.constant 0.000000e+00 : f32
    %84 = vector.broadcast %cst_111 : f32 to vector<256x128xf32>
    %c0_112 = arith.constant 0 : index
    %c7_113 = arith.constant 7 : index
    %c0_114 = arith.constant 0 : index
    %85 = vector.load %arg10[%c0_112, %c7_113, %c0_114] : memref<18x25x128xf32, #tpu.memory_space<vmem>>, vector<16x16x128xf32>
    %86 = vector.shape_cast %85 : vector<16x16x128xf32> to vector<256x128xf32>
    %c0_115 = arith.constant 0 : index
    %c0_116 = arith.constant 0 : index
    %c0_117 = arith.constant 0 : index
    %c0_118 = arith.constant 0 : index
    %87 = vector.load %arg3[%c0_115, %c0_116, %c0_117, %c0_118] : memref<3x3x128x128xf32, #tpu.memory_space<vmem>>, vector<1x1x128x128xf32>
    %88 = vector.shape_cast %87 : vector<1x1x128x128xf32> to vector<128x128xf32>
    %cst_119 = arith.constant dense<0.000000e+00> : vector<256x128xf32>
    %89 = tpu.matmul %86, %88, %cst_119 {dimension_numbers = #tpu.dot_dimension_numbers<[1], [0], [0], [1], [0, 0, 1, 1], [], []>} : vector<256x128xf32>, vector<128x128xf32>, vector<256x128xf32> -> vector<256x128xf32>
    %90 = arith.addf %84, %89 : vector<256x128xf32>
    %c0_120 = arith.constant 0 : index
    %c8_121 = arith.constant 8 : index
    %c0_122 = arith.constant 0 : index
    %91 = vector.load %arg10[%c0_120, %c8_121, %c0_122] : memref<18x25x128xf32, #tpu.memory_space<vmem>>, vector<16x16x128xf32>
    %92 = vector.shape_cast %91 : vector<16x16x128xf32> to vector<256x128xf32>
    %c0_123 = arith.constant 0 : index
    %c1_124 = arith.constant 1 : index
    %c0_125 = arith.constant 0 : index
    %c0_126 = arith.constant 0 : index
    %93 = vector.load %arg3[%c0_123, %c1_124, %c0_125, %c0_126] : memref<3x3x128x128xf32, #tpu.memory_space<vmem>>, vector<1x1x128x128xf32>
    %94 = vector.shape_cast %93 : vector<1x1x128x128xf32> to vector<128x128xf32>
    %cst_127 = arith.constant dense<0.000000e+00> : vector<256x128xf32>
    %95 = tpu.matmul %92, %94, %cst_127 {dimension_numbers = #tpu.dot_dimension_numbers<[1], [0], [0], [1], [0, 0, 1, 1], [], []>} : vector<256x128xf32>, vector<128x128xf32>, vector<256x128xf32> -> vector<256x128xf32>
    %96 = arith.addf %90, %95 : vector<256x128xf32>
    %c0_128 = arith.constant 0 : index
    %c9_129 = arith.constant 9 : index
    %c0_130 = arith.constant 0 : index
    %97 = vector.load %arg10[%c0_128, %c9_129, %c0_130] : memref<18x25x128xf32, #tpu.memory_space<vmem>>, vector<16x16x128xf32>
    %98 = vector.shape_cast %97 : vector<16x16x128xf32> to vector<256x128xf32>
    %c0_131 = arith.constant 0 : index
    %c2_132 = arith.constant 2 : index
    %c0_133 = arith.constant 0 : index
    %c0_134 = arith.constant 0 : index
    %99 = vector.load %arg3[%c0_131, %c2_132, %c0_133, %c0_134] : memref<3x3x128x128xf32, #tpu.memory_space<vmem>>, vector<1x1x128x128xf32>
    %100 = vector.shape_cast %99 : vector<1x1x128x128xf32> to vector<128x128xf32>
    %cst_135 = arith.constant dense<0.000000e+00> : vector<256x128xf32>
    %101 = tpu.matmul %98, %100, %cst_135 {dimension_numbers = #tpu.dot_dimension_numbers<[1], [0], [0], [1], [0, 0, 1, 1], [], []>} : vector<256x128xf32>, vector<128x128xf32>, vector<256x128xf32> -> vector<256x128xf32>
    %102 = arith.addf %96, %101 : vector<256x128xf32>
    %c1_136 = arith.constant 1 : index
    %c7_137 = arith.constant 7 : index
    %c0_138 = arith.constant 0 : index
    %103 = vector.load %arg10[%c1_136, %c7_137, %c0_138] : memref<18x25x128xf32, #tpu.memory_space<vmem>>, vector<16x16x128xf32>
    %104 = vector.shape_cast %103 : vector<16x16x128xf32> to vector<256x128xf32>
    %c1_139 = arith.constant 1 : index
    %c0_140 = arith.constant 0 : index
    %c0_141 = arith.constant 0 : index
    %c0_142 = arith.constant 0 : index
    %105 = vector.load %arg3[%c1_139, %c0_140, %c0_141, %c0_142] : memref<3x3x128x128xf32, #tpu.memory_space<vmem>>, vector<1x1x128x128xf32>
    %106 = vector.shape_cast %105 : vector<1x1x128x128xf32> to vector<128x128xf32>
    %cst_143 = arith.constant dense<0.000000e+00> : vector<256x128xf32>
    %107 = tpu.matmul %104, %106, %cst_143 {dimension_numbers = #tpu.dot_dimension_numbers<[1], [0], [0], [1], [0, 0, 1, 1], [], []>} : vector<256x128xf32>, vector<128x128xf32>, vector<256x128xf32> -> vector<256x128xf32>
    %108 = arith.addf %102, %107 : vector<256x128xf32>
    %c1_144 = arith.constant 1 : index
    %c8_145 = arith.constant 8 : index
    %c0_146 = arith.constant 0 : index
    %109 = vector.load %arg10[%c1_144, %c8_145, %c0_146] : memref<18x25x128xf32, #tpu.memory_space<vmem>>, vector<16x16x128xf32>
    %110 = vector.shape_cast %109 : vector<16x16x128xf32> to vector<256x128xf32>
    %c1_147 = arith.constant 1 : index
    %c1_148 = arith.constant 1 : index
    %c0_149 = arith.constant 0 : index
    %c0_150 = arith.constant 0 : index
    %111 = vector.load %arg3[%c1_147, %c1_148, %c0_149, %c0_150] : memref<3x3x128x128xf32, #tpu.memory_space<vmem>>, vector<1x1x128x128xf32>
    %112 = vector.shape_cast %111 : vector<1x1x128x128xf32> to vector<128x128xf32>
    %cst_151 = arith.constant dense<0.000000e+00> : vector<256x128xf32>
    %113 = tpu.matmul %110, %112, %cst_151 {dimension_numbers = #tpu.dot_dimension_numbers<[1], [0], [0], [1], [0, 0, 1, 1], [], []>} : vector<256x128xf32>, vector<128x128xf32>, vector<256x128xf32> -> vector<256x128xf32>
    %114 = arith.addf %108, %113 : vector<256x128xf32>
    %c1_152 = arith.constant 1 : index
    %c9_153 = arith.constant 9 : index
    %c0_154 = arith.constant 0 : index
    %115 = vector.load %arg10[%c1_152, %c9_153, %c0_154] : memref<18x25x128xf32, #tpu.memory_space<vmem>>, vector<16x16x128xf32>
    %116 = vector.shape_cast %115 : vector<16x16x128xf32> to vector<256x128xf32>
    %c1_155 = arith.constant 1 : index
    %c2_156 = arith.constant 2 : index
    %c0_157 = arith.constant 0 : index
    %c0_158 = arith.constant 0 : index
    %117 = vector.load %arg3[%c1_155, %c2_156, %c0_157, %c0_158] : memref<3x3x128x128xf32, #tpu.memory_space<vmem>>, vector<1x1x128x128xf32>
    %118 = vector.shape_cast %117 : vector<1x1x128x128xf32> to vector<128x128xf32>
    %cst_159 = arith.constant dense<0.000000e+00> : vector<256x128xf32>
    %119 = tpu.matmul %116, %118, %cst_159 {dimension_numbers = #tpu.dot_dimension_numbers<[1], [0], [0], [1], [0, 0, 1, 1], [], []>} : vector<256x128xf32>, vector<128x128xf32>, vector<256x128xf32> -> vector<256x128xf32>
    %120 = arith.addf %114, %119 : vector<256x128xf32>
    %c2_160 = arith.constant 2 : index
    %c7_161 = arith.constant 7 : index
    %c0_162 = arith.constant 0 : index
    %121 = vector.load %arg10[%c2_160, %c7_161, %c0_162] : memref<18x25x128xf32, #tpu.memory_space<vmem>>, vector<16x16x128xf32>
    %122 = vector.shape_cast %121 : vector<16x16x128xf32> to vector<256x128xf32>
    %c2_163 = arith.constant 2 : index
    %c0_164 = arith.constant 0 : index
    %c0_165 = arith.constant 0 : index
    %c0_166 = arith.constant 0 : index
    %123 = vector.load %arg3[%c2_163, %c0_164, %c0_165, %c0_166] : memref<3x3x128x128xf32, #tpu.memory_space<vmem>>, vector<1x1x128x128xf32>
    %124 = vector.shape_cast %123 : vector<1x1x128x128xf32> to vector<128x128xf32>
    %cst_167 = arith.constant dense<0.000000e+00> : vector<256x128xf32>
    %125 = tpu.matmul %122, %124, %cst_167 {dimension_numbers = #tpu.dot_dimension_numbers<[1], [0], [0], [1], [0, 0, 1, 1], [], []>} : vector<256x128xf32>, vector<128x128xf32>, vector<256x128xf32> -> vector<256x128xf32>
    %126 = arith.addf %120, %125 : vector<256x128xf32>
    %c2_168 = arith.constant 2 : index
    %c8_169 = arith.constant 8 : index
    %c0_170 = arith.constant 0 : index
    %127 = vector.load %arg10[%c2_168, %c8_169, %c0_170] : memref<18x25x128xf32, #tpu.memory_space<vmem>>, vector<16x16x128xf32>
    %128 = vector.shape_cast %127 : vector<16x16x128xf32> to vector<256x128xf32>
    %c2_171 = arith.constant 2 : index
    %c1_172 = arith.constant 1 : index
    %c0_173 = arith.constant 0 : index
    %c0_174 = arith.constant 0 : index
    %129 = vector.load %arg3[%c2_171, %c1_172, %c0_173, %c0_174] : memref<3x3x128x128xf32, #tpu.memory_space<vmem>>, vector<1x1x128x128xf32>
    %130 = vector.shape_cast %129 : vector<1x1x128x128xf32> to vector<128x128xf32>
    %cst_175 = arith.constant dense<0.000000e+00> : vector<256x128xf32>
    %131 = tpu.matmul %128, %130, %cst_175 {dimension_numbers = #tpu.dot_dimension_numbers<[1], [0], [0], [1], [0, 0, 1, 1], [], []>} : vector<256x128xf32>, vector<128x128xf32>, vector<256x128xf32> -> vector<256x128xf32>
    %132 = arith.addf %126, %131 : vector<256x128xf32>
    %c2_176 = arith.constant 2 : index
    %c9_177 = arith.constant 9 : index
    %c0_178 = arith.constant 0 : index
    %133 = vector.load %arg10[%c2_176, %c9_177, %c0_178] : memref<18x25x128xf32, #tpu.memory_space<vmem>>, vector<16x16x128xf32>
    %134 = vector.shape_cast %133 : vector<16x16x128xf32> to vector<256x128xf32>
    %c2_179 = arith.constant 2 : index
    %c2_180 = arith.constant 2 : index
    %c0_181 = arith.constant 0 : index
    %c0_182 = arith.constant 0 : index
    %135 = vector.load %arg3[%c2_179, %c2_180, %c0_181, %c0_182] : memref<3x3x128x128xf32, #tpu.memory_space<vmem>>, vector<1x1x128x128xf32>
    %136 = vector.shape_cast %135 : vector<1x1x128x128xf32> to vector<128x128xf32>
    %cst_183 = arith.constant dense<0.000000e+00> : vector<256x128xf32>
    %137 = tpu.matmul %134, %136, %cst_183 {dimension_numbers = #tpu.dot_dimension_numbers<[1], [0], [0], [1], [0, 0, 1, 1], [], []>} : vector<256x128xf32>, vector<128x128xf32>, vector<256x128xf32> -> vector<256x128xf32>
    %138 = arith.addf %132, %137 : vector<256x128xf32>
    %c0_184 = arith.constant 0 : index
    %c0_185 = arith.constant 0 : index
    %139 = vector.load %arg6[%c0_184, %c0_185] : memref<1x128xf32, #tpu.memory_space<vmem>>, vector<1x128xf32>
    %140 = vector.broadcast %139 : vector<1x128xf32> to vector<256x128xf32>
    %141 = arith.mulf %138, %140 : vector<256x128xf32>
    %c0_186 = arith.constant 0 : index
    %c0_187 = arith.constant 0 : index
    %142 = vector.load %arg7[%c0_186, %c0_187] : memref<1x128xf32, #tpu.memory_space<vmem>>, vector<1x128xf32>
    %143 = vector.broadcast %142 : vector<1x128xf32> to vector<256x128xf32>
    %144 = arith.addf %141, %143 : vector<256x128xf32>
    %c0_188 = arith.constant 0 : index
    %c0_189 = arith.constant 0 : index
    %c0_190 = arith.constant 0 : index
    %c0_191 = arith.constant 0 : index
    %145 = vector.load %arg1[%c0_188, %c0_189, %c0_190, %c0_191] : memref<1x16x16x128xf32, #tpu.memory_space<vmem>>, vector<1x16x16x128xf32>
    %146 = vector.shape_cast %145 : vector<1x16x16x128xf32> to vector<16x16x128xf32>
    %147 = vector.shape_cast %146 : vector<16x16x128xf32> to vector<256x128xf32>
    %148 = arith.addf %144, %147 : vector<256x128xf32>
    %cst_192 = arith.constant 0.000000e+00 : f32
    %149 = vector.broadcast %cst_192 : f32 to vector<256x128xf32>
    %150 = arith.maximumf %148, %149 : vector<256x128xf32>
    %151 = vector.shape_cast %150 : vector<256x128xf32> to vector<16x16x128xf32>
    %c0_193 = arith.constant 0 : index
    %c0_194 = arith.constant 0 : index
    %c0_195 = arith.constant 0 : index
    %c0_196 = arith.constant 0 : index
    %152 = vector.load %arg8[%c0_193, %c0_194, %c0_195, %c0_196] : memref<1x16x16x128xf32, #tpu.memory_space<vmem>>, vector<1x16x16x128xf32>
    %153 = vector.shape_cast %152 : vector<1x16x16x128xf32> to vector<16x16x128xf32>
    %154 = vector.shape_cast %151 : vector<16x16x128xf32> to vector<1x16x16x128xf32>
    tpu.vector_store %arg8[%c0_193, %c0_194, %c0_195, %c0_196], %154 {strides = array<i32>} : memref<1x16x16x128xf32, #tpu.memory_space<vmem>>, vector<1x16x16x128xf32>,
    return
  }
  func.func @transform_0(%arg0: i32) -> (i32, i32, i32, i32) {
    %c0_i32 = arith.constant 0 : i32
    %c0_i32_0 = arith.constant 0 : i32
    %c0_i32_1 = arith.constant 0 : i32
    %c0_i32_2 = arith.constant 0 : i32
    return %arg0, %c0_i32, %c0_i32_0, %c0_i32_1 : i32, i32, i32, i32
  }
  func.func @transform_1(%arg0: i32) -> (i32, i32, i32, i32) {
    %c0_i32 = arith.constant 0 : i32
    %c0_i32_0 = arith.constant 0 : i32
    %c0_i32_1 = arith.constant 0 : i32
    %c0_i32_2 = arith.constant 0 : i32
    %c0_i32_3 = arith.constant 0 : i32
    return %c0_i32, %c0_i32_0, %c0_i32_1, %c0_i32_2 : i32, i32, i32, i32
  }
  func.func @transform_2(%arg0: i32) -> (i32, i32, i32, i32) {
    %c0_i32 = arith.constant 0 : i32
    %c0_i32_0 = arith.constant 0 : i32
    %c0_i32_1 = arith.constant 0 : i32
    %c0_i32_2 = arith.constant 0 : i32
    %c0_i32_3 = arith.constant 0 : i32
    return %c0_i32, %c0_i32_0, %c0_i32_1, %c0_i32_2 : i32, i32, i32, i32
  }
  func.func @transform_3(%arg0: i32) -> (i32, i32) {
    %c0_i32 = arith.constant 0 : i32
    %c0_i32_0 = arith.constant 0 : i32
    %c0_i32_1 = arith.constant 0 : i32
    return %c0_i32, %c0_i32_0 : i32, i32
  }
  func.func @transform_4(%arg0: i32) -> (i32, i32) {
    %c0_i32 = arith.constant 0 : i32
    %c0_i32_0 = arith.constant 0 : i32
    %c0_i32_1 = arith.constant 0 : i32
    return %c0_i32, %c0_i32_0 : i32, i32
  }
  func.func @transform_5(%arg0: i32) -> (i32, i32) {
    %c0_i32 = arith.constant 0 : i32
    %c0_i32_0 = arith.constant 0 : i32
    %c0_i32_1 = arith.constant 0 : i32
    return %c0_i32, %c0_i32_0 : i32, i32
  }
  func.func @transform_6(%arg0: i32) -> (i32, i32) {
    %c0_i32 = arith.constant 0 : i32
    %c0_i32_0 = arith.constant 0 : i32
    %c0_i32_1 = arith.constant 0 : i32
    return %c0_i32, %c0_i32_0 : i32, i32
  }
  func.func @transform_7(%arg0: i32) -> (i32, i32, i32, i32) {
    %c0_i32 = arith.constant 0 : i32
    %c0_i32_0 = arith.constant 0 : i32
    %c0_i32_1 = arith.constant 0 : i32
    %c0_i32_2 = arith.constant 0 : i32
    return %arg0, %c0_i32, %c0_i32_0, %c0_i32_1 : i32, i32, i32, i32
  }
}

</mosaic_0001>

<bundles_post_ra>
// kernel: tpu_custom_call.1
= control target key start
LH: loop header
LB: loop body
LE: loop exit
PB: predicated region body
PF: predicated region fallthrough
CT: control target
= control target key end

     0   :  { %s6722_s0 = inlined_call_operand.hbm [shape: f32[2,16,16,128], index: 0, kind: input, shape index: {}]   ;;  %s6723_s1 = inlined_call_operand.hbm [shape: f32[3,3,128,128], index: 1, kind: input, shape index: {}]   ;;  %s6724_s2 = inlined_call_operand.hbm [shape: f32[3,3,128,128], index: 2, kind: input, shape index: {}]   ;;  %s6725_s3 = inlined_call_operand.vmem [shape: f32[1,128], index: 3, kind: input, shape index: {}]   ;;  %s6726_s4 = inlined_call_operand.vmem [shape: f32[1,128], index: 4, kind: input, shape index: {}]   ;;  %s6727_s5 = inlined_call_operand.vmem [shape: f32[1,128], index: 5, kind: input, shape index: {}]   ;;  %s6728_s6 = inlined_call_operand.vmem [shape: f32[1,128], index: 6, kind: input, shape index: {}]   ;;  %s6729_s7 = inlined_call_operand.hbm [shape: f32[2,16,16,128], index: 7, kind: output, shape index: {}]  }
   0x1   :  { %6734 = sst [smem:[#allocation39_spill]] %s6723_s1 }
   0x2   :  { %12 = vsyncpa [#allocation5], 0 }
   0x3   :  { %14 = vsyncpa [#allocation5 + $0x1], 0 }
   0x4   :  { %15 = vsyncpa [#allocation8], 0 }
   0x5   :  { %16 = vsyncpa [#allocation6], 0 }
   0x6   :  { %18 = vsyncpa [#allocation6 + $0x1], 0  ;;  %s4637_s24 = smov 0   ;;  %s4639_s25 = smov 0  }
   0x7   :  { %s4641_s26 = smov 0   ;;  %s4643_s27 = smov 0  }
   0x8 LB: > { %s4658_s28 = sadd.s32 4294967295, %s4588_s27   ;;  %s4296_s29 = sadd.s32 4294967294, %s4588_s27   ;;  %s4588_s27 = sphi %s4643_s27, %s6821_s27   ;;  %s4584_s26 = sphi %s4641_s26, %s6820_s26   ;;  %s4580_s25 = sphi %s4639_s25, %s6819_s25   ;;  %s4576_s24 = sphi %s4637_s24, %s6818_s24  }
   0x9   : > { %p44_p0 = scmp.ne.s32.totalorder %s4580_s25, %s4576_s24  ;;  %p45_p1 = scmp.eq.s32.totalorder %s4658_s28, 0 }
   0xa   : > { %p194_p2 = scmp.eq.s32.totalorder %s4658_s28, 1  ;;  %p200_p3 = scmp.eq.s32.totalorder %s4296_s29, 1 }
   0xb   : > { %p4667_p4 = por %p45_p1, %p44_p0  ;;  %p4297_p5 = scmp.ge.s32.totalorder %s4588_s27, 1 }
   0xc   : > { %p4672_p6 = por %p200_p3, %p44_p0  ;;  %p207_p7 = scmp.lt.s32.totalorder %s4588_s27, 3 }
   0xd   : > { %s6737_s1 = sld [smem:[#allocation39_spill]]  ;;  %s4590_s13 = smov [#allocation7]  }
   0xe   : > { %p4680_p8 = pnand %p4297_p5, %p207_p7  ;;  %s220_s14 = sshll.u32 %s4590_s13, 4  ;;  %s221_s14 = int_to_ptr.vmem [resolvable:$true] %s220_s14 }
   0xf   : > { %s232_s17 = sshll.u32 %s6724_s2, 4  ;;  %s6730_s18 = smov 128   ;;  %s233_s17 = int_to_ptr.hbm [resolvable:$true] %s232_s17 }
  0x10   : > { %p4360_p9 = pneg %p4680_p8  ;;  %s6731_s19 = smov 8  }
  0x11   : > { %s4593_s20 = smov [#allocation9]   ;;  %s4699_s22 = sadd.s32 1, %s4588_s27  }
  0x12   : > { %p4361_p10 = pnand %p4360_p9, %p45_p1  ;;  %s234_s21 = sshll.u32 %s4593_s20, 4  ;;  %s235_s21 = int_to_ptr.vmem [resolvable:$true] %s234_s21 }
  0x13   : > { %s218_s11 = sshll.u32 %s6737_s1, 4  ;;  %s31_s23 = sadd.s32 1, %s4584_s26  ;;  %s219_s11 = int_to_ptr.hbm [resolvable:$true] %s218_s11 }
  0x14   : > { %4363 = dma.hbm_to_vmem [thread:$0]  (!%p4361_p10), %s219_s11, 18432, %s221_s14, [#allocation8], %s6730_s18, %s6730_s18, %s6731_s19  }
  0x15   : > { %4366 = dma.hbm_to_vmem [thread:$0]  (!%p4361_p10), %s233_s17, 18432, %s235_s21, [#allocation8], %s6730_s18, %s6730_s18, %s6731_s19  }
  0x16   : > { %s28_s29 = ssub.s32 %s4588_s27, %s4699_s22  ;;  %p38_p12 = scmp.ne.s32.totalorder %s4584_s26, %s4580_s25 }
  0x17   : > { %p29_p13 = scmp.eq.s32.totalorder %s28_s29, 0  ;;  %p39_p0 = scmp.eq.s32.totalorder %s4588_s27, 0 }
  0x18   : > { %p4709_p3 = por %p194_p2, %p38_p12  ;;  %p4377_p5 = scmp.lt.s32.totalorder %s4588_s27, 2 }
  0x19   : > { %s4715_s10 = scalar_select %p29_p13, %s4584_s26, %s31_s23  }
  0x1a   : > { %p40_p7 = por %p39_p0, %p38_p12  ;;  %s260_s11 = sand.u32 1, %s4584_s26  }
  0x1b   : > { %s4301_s13 = sshll.u32 %s260_s11, 8  ;;  %s4314_s14 = sshll.u32 %s4588_s27, 8 }
  0x1c   : > { %s269_s17 = scalar_lea.hbm %s6722_s0, %s4314_s14  ;;  %s264_s20 = scalar_lea.vmem [#allocation4], %s4301_s13 }
  0x1d   : > { %s272_s21 = sshll.u32 %s264_s20, 4  ;;  %s270_s29 = sshll.u32 %s269_s17, 4  ;;  %s273_s21 = int_to_ptr.vmem [resolvable:$true] %s272_s21  ;;  %s271_s29 = int_to_ptr.hbm [resolvable:$true] %s270_s29 }
  0x1e   : > { %p4722_p2 = pnand %p4377_p5, %p40_p7  ;;  %s261_s23 = scalar_lea.sflag [#allocation5], %s260_s11 }
  0x1f   : > { %s4488_s19 = sshra.s32 %s271_s29, 4  ;;  %s4495_s15 = scalar_lea.hbm %s6722_s0, 512  ;;  %s4489_s19 = int_to_ptr.hbm [resolvable:$true] %s4488_s19 }
  0x20   : > { %s4490_s1 = scalar_lea.hbm %s4489_s19, 256  ;;  %p4492_p10 = pneg %p4722_p2 }
  0x21   : > { %p4491_p9 = scmp.ne.s32.totalorder %s4489_s19, %s4490_s1  ;;  %p4496_p0 = scmp.lt.s32.totalorder %s4489_s19, %s6722_s0 }
  0x22   : > { %p4497_p5 = scmp.lt.s32.totalorder %s4495_s15, %s4490_s1 }
  0x23   : > { %p4493_p12 = pnand %p4492_p10, %p4491_p9 }
  0x24   : > { %p4498_p7 = por %p4497_p5, %p4496_p0 }
  0x25   : > { %p4494_p13 = pneg %p4493_p12 }
  0x27   : > { %p4499_p11 = pnand %p4498_p7, %p4494_p13 }
  0x29   : > { %4502 = shalt.err (!%p4499_p11)
}
  0x2a   : > { %s6741_s11 = smov 8   ;;  %s6742_s20 = smov 128  }
  0x2b   : > { %4370 = dma.hbm_to_vmem [thread:$0]  (!%p4722_p2), %s271_s29, 4096, %s273_s21, %s261_s23, %s6742_s20, %s6742_s20, %s6741_s11  }
  0x2c   : > { %284 = sbr.rel (%p4680_p8) target bundleno = 1555 (0x613), region = 48 }
  0x31   : > { %s4742_s14 = sand.u32 1, %s4580_s25  }
  0x32   : > { %s4305_s1 = sshll.u32 %s4742_s14, 8  ;;  %s287_s19 = scalar_lea.sflag [#allocation5], %s4742_s14 }
  0x33   : > { %s4748_s13 = scalar_lea.vmem [#allocation4], %s4305_s1 }
  0x34   : > { %4563 = dma.done.wait (%p4667_p4), %s287_s19, 4096  }
  0x35   : > { %4565 = vsyncadd (%p4667_p4), %s287_s19, 4294963200 }
  0x36   : > { %4567 = dma.done.wait (%p45_p1), [#allocation8], 36864  }
  0x37   : > { %4569 = vsyncadd (%p45_p1), [#allocation8], 4294930432  ;;  %v4594_v0 = vmov 0.0   ;;  %v583_v1 = vld [vmem:[#allocation7 + $0xf8] sm:$0xff]  ;;  %v582_v3 = vld [vmem:[#allocation7 + $0xf0] sm:$0xff]  ;;  %s6418_s30 = scalar_lea.vmem [#allocation10], %s4305_s1 }
  0x38   : > { %333 = vst [vmem:[#allocation2 + $0x8] sm:$0xff] %v4594_v0  ;;  %v534_v2 = vld [vmem:[#allocation7 + $0x78] sm:$0xff]  ;;  %584 = vmatpush.msra.mxu0 %v583_v1  ;;  %4316 = vmatpush.msra.mxu2 %v583_v1  ;;  %v533_v4 = vld [vmem:[#allocation7 + $0x70] sm:$0xff]  ;;  %v581_v5 = vld [vmem:[#allocation7 + $0xe8] sm:$0xff]  ;;  %s4315_s1 = sshll.u32 %s4658_s28, 8  ;;  %s4201_s29 = sshll.u32 %s6418_s30, 4  ;;  %s4202_s29 = int_to_ptr.vmem [resolvable:$true] %s4201_s29 }
  0x39   : > { %332 = vst [vmem:[#allocation2] sm:$0xff] %v4594_v0  ;;  %4332 = vmatpush.msra.mxu3 %v534_v2  ;;  %697 = vmatpush.msra.mxu1 %v534_v2  ;;  %v532_v6 = vld [vmem:[#allocation7 + $0x68] sm:$0xff]  ;;  %v580_v7 = vld [vmem:[#allocation7 + $0xe0] sm:$0xff]  ;;  %v579_v9 = vld [vmem:[#allocation7 + $0xd8] sm:$0xff]  ;;  %s4200_s21 = scalar_lea.hbm %s6729_s7, %s4315_s1  ;;  %s4189_s28 = scalar_lea.sflag [#allocation6], %s4742_s14 }
  0x3a   : > { %334 = vst [vmem:[#allocation2 + $0x10] sm:$0xff] %v4594_v0  ;;  %585 = vmatpush.msra.mxu0 %v582_v3  ;;  %4317 = vmatpush.msra.mxu2 %v582_v3  ;;  %v531_v8 = vld [vmem:[#allocation7 + $0x60] sm:$0xff]  ;;  %v530_v10 = vld [vmem:[#allocation7 + $0x58] sm:$0xff]  ;;  %v578_v11 = vld [vmem:[#allocation7 + $0xd0] sm:$0xff]  ;;  %s4203_s23 = sshll.u32 %s4200_s21, 4  ;;  %s4204_s23 = int_to_ptr.hbm [resolvable:$true] %s4203_s23 }
  0x3b   : > { %335 = vst [vmem:[#allocation2 + $0x18] sm:$0x1] %v4594_v0  ;;  %4333 = vmatpush.msra.mxu3 %v533_v4  ;;  %698 = vmatpush.msra.mxu1 %v533_v4  ;;  %v529_v12 = vld [vmem:[#allocation7 + $0x50] sm:$0xff]  ;;  %v577_v13 = vld [vmem:[#allocation7 + $0xc8] sm:$0xff]  ;;  %v576_v15 = vld [vmem:[#allocation7 + $0xc0] sm:$0xff]  ;;  %s4532_s15 = sshra.s32 %s4204_s23, 4  ;;  %s4533_s15 = int_to_ptr.hbm [resolvable:$true] %s4532_s15 }
  0x3c   : > { %337 = vst [vmem:[#allocation2 + $0x220] sm:$0xff] %v4594_v0  ;;  %586 = vmatpush.msra.mxu0 %v581_v5  ;;  %4318 = vmatpush.msra.mxu2 %v581_v5  ;;  %v528_v14 = vld [vmem:[#allocation7 + $0x48] sm:$0xff]  ;;  %v527_v16 = vld [vmem:[#allocation7 + $0x40] sm:$0xff]  ;;  %v575_v17 = vld [vmem:[#allocation7 + $0xb8] sm:$0xff]  ;;  %s4534_s16 = scalar_lea.hbm %s4533_s15, 256  ;;  %p4539_p11 = scmp.lt.s32.totalorder %s4533_s15, %s6729_s7 }
  0x3d   : > { %338 = vst [vmem:[#allocation2 + $0x228] sm:$0xff] %v4594_v0  ;;  %4334 = vmatpush.msra.mxu3 %v532_v6  ;;  %699 = vmatpush.msra.mxu1 %v532_v6  ;;  %v526_v18 = vld [vmem:[#allocation7 + $0x38] sm:$0xff]  ;;  %v574_v19 = vld [vmem:[#allocation7 + $0xb0] sm:$0xff]  ;;  %v573_v21 = vld [vmem:[#allocation7 + $0xa8] sm:$0xff]  ;;  %p4535_p1 = scmp.ne.s32.totalorder %s4533_s15, %s4534_s16 }
  0x3e   : > { %339 = vst [vmem:[#allocation2 + $0x230] sm:$0xff] %v4594_v0  ;;  %587 = vmatpush.msra.mxu0 %v580_v7  ;;  %4319 = vmatpush.msra.mxu2 %v580_v7  ;;  %v525_v20 = vld [vmem:[#allocation7 + $0x30] sm:$0xff]  ;;  %v524_v22 = vld [vmem:[#allocation7 + $0x28] sm:$0xff]  ;;  %v572_v23 = vld [vmem:[#allocation7 + $0xa0] sm:$0xff] }
  0x3f   : > { %340 = vst [vmem:[#allocation2 + $0x238] sm:$0x1] %v4594_v0  ;;  %4335 = vmatpush.msra.mxu3 %v531_v8  ;;  %700 = vmatpush.msra.mxu1 %v531_v8  ;;  %v523_v24 = vld [vmem:[#allocation7 + $0x20] sm:$0xff]  ;;  %v571_v25 = vld [vmem:[#allocation7 + $0x98] sm:$0xff]  ;;  %v570_v27 = vld [vmem:[#allocation7 + $0x90] sm:$0xff]  ;;  %p4536_p4 = pnand %p4535_p1, %p4709_p3 }
  0x40   : > { %342 = vst [vmem:[#allocation2 + $0x27] sm:$0x1] %v4594_v0  ;;  %588 = vmatpush.msra.mxu0 %v579_v9  ;;  %4320 = vmatpush.msra.mxu2 %v579_v9  ;;  %v522_v26 = vld [vmem:[#allocation7 + $0x18] sm:$0xff]  ;;  %v521_v28 = vld [vmem:[#allocation7 + $0x10] sm:$0xff]  ;;  %v569_v29 = vld [vmem:[#allocation7 + $0x88] sm:$0xff] }
  0x41   : > { %343 = vst [vmem:[#allocation2 + $0x47] sm:$0x1] %v4594_v0  ;;  %4336 = vmatpush.msra.mxu3 %v530_v10  ;;  %701 = vmatpush.msra.mxu1 %v530_v10  ;;  %v520_v30 = vld [vmem:[#allocation7 + $0x8] sm:$0xff]  ;;  %v568_v31 = vld [vmem:[#allocation7 + $0x80] sm:$0xff]  ;;  %v4799_v33 = vld [vmem:[%s4748_s13 + $0x70] sm:$0xff]  ;;  %p4537_p8 = pneg %p4536_p4 }
  0x42   : > { %344 = vst [vmem:[#allocation2 + $0x67] sm:$0x1] %v4594_v0  ;;  %589 = vmatpush.msra.mxu0 %v578_v11  ;;  %4321 = vmatpush.msra.mxu2 %v578_v11  ;;  %v519_v32 = vld [vmem:[#allocation7] sm:$0xff]  ;;  %v4821_v34 = vld [vmem:[%s4748_s13 + $0x78] sm:$0xff]  ;;  %v857_v38 = vld [vmem:[#allocation7 + $0x170] sm:$0xff] }
  0x43   : > { %345 = vst [vmem:[#allocation2 + $0x87] sm:$0x1] %v4594_v0  ;;  %4337 = vmatpush.msra.mxu3 %v529_v12  ;;  %702 = vmatpush.msra.mxu1 %v529_v12  ;;  %v858_v35 = vld [vmem:[#allocation7 + $0x178] sm:$0xff]  ;;  %v4834_v37 = vld [vmem:[%s4748_s13 + $0x80] sm:$0xff]  ;;  %v1051_v39 = vld [vmem:[#allocation7 + $0x1f0] sm:$0xff] }
  0x44   : > { %346 = vst [vmem:[#allocation2 + $0xa7] sm:$0x1] %v4594_v0  ;;  %590 = vmatpush.msra.mxu0 %v577_v13  ;;  %4322 = vmatpush.msra.mxu2 %v577_v13  ;;  %v1052_v36 = vld [vmem:[#allocation7 + $0x1f8] sm:$0xff]  ;;  %v4840_v41 = vld [vmem:[%s4748_s13] sm:$0xff]  ;;  %v439_v42 = vld [vmem:[%s4748_s13 + $0x88] sm:$0xff] }
  0x45   : > { %347 = vst [vmem:[#allocation2 + $0xc7] sm:$0x1] %v4594_v0  ;;  %4338 = vmatpush.msra.mxu3 %v528_v14  ;;  %703 = vmatpush.msra.mxu1 %v528_v14  ;;  %v1246_v40 = vld [vmem:[#allocation7 + $0x278] sm:$0xff]  ;;  %v856_v43 = vld [vmem:[#allocation7 + $0x168] sm:$0xff]  ;;  %v1245_v45 = vld [vmem:[#allocation7 + $0x270] sm:$0xff] }
  0x46   : > { %348 = vst [vmem:[#allocation2 + $0xe7] sm:$0x1] %v4594_v0  ;;  %591 = vmatpush.msra.mxu0 %v576_v15  ;;  %4323 = vmatpush.msra.mxu2 %v576_v15  ;;  %v1050_v44 = vld [vmem:[#allocation7 + $0x1e8] sm:$0xff]  ;;  %v440_v47 = vld [vmem:[%s4748_s13 + $0x90] sm:$0xff]  ;;  %v855_v48 = vld [vmem:[#allocation7 + $0x160] sm:$0xff] }
  0x47   : > { %349 = vst [vmem:[#allocation2 + $0x107] sm:$0x1] %v4594_v0  ;;  %4339 = vmatpush.msra.mxu3 %v527_v16  ;;  %704 = vmatpush.msra.mxu1 %v527_v16  ;;  %v4853_v46 = vld [vmem:[%s4748_s13 + $0x8] sm:$0xff]  ;;  %v1049_v49 = vld [vmem:[#allocation7 + $0x1e0] sm:$0xff]  ;;  %v4866_v51 = vld [vmem:[%s4748_s13 + $0x10] sm:$0xff] }
  0x48   : > { %350 = vst [vmem:[#allocation2 + $0x127] sm:$0x1] %v4594_v0  ;;  %592 = vmatpush.msra.mxu0 %v575_v17  ;;  %4324 = vmatpush.msra.mxu2 %v575_v17  ;;  %v1244_v50 = vld [vmem:[#allocation7 + $0x268] sm:$0xff]  ;;  %v441_v54 = vld [vmem:[%s4748_s13 + $0x98] sm:$0xff]  ;;  %v1243_v57 = vld [vmem:[#allocation7 + $0x260] sm:$0xff] }
  0x49   : > { %351 = vst [vmem:[#allocation2 + $0x147] sm:$0x1] %v4594_v0  ;;  %4340 = vmatpush.msra.mxu3 %v526_v18  ;;  %705 = vmatpush.msra.mxu1 %v526_v18  ;;  %v854_v55 = vld [vmem:[#allocation7 + $0x158] sm:$0xff]  ;;  %v488_v59 = vld [vmem:[#allocation2 + $0xf] sm:$0xff]  ;;  %v442_v61 = vld [vmem:[%s4748_s13 + $0xa0] sm:$0xff] }
  0x4a   : > { %352 = vst [vmem:[#allocation2 + $0x167] sm:$0x1] %v4594_v0  ;;  %593 = vmatpush.msra.mxu0 %v574_v19  ;;  %4325 = vmatpush.msra.mxu2 %v574_v19  ;;  %v1048_v56 = vld [vmem:[#allocation7 + $0x1d8] sm:$0xff]  ;;  %v853_v62 = vld [vmem:[#allocation7 + $0x150] sm:$0xff]  ;;  %v4888_v1 = vld [vmem:[%s4748_s13 + $0x20] sm:$0xff] }
  0x4b   : > { %353 = vst [vmem:[#allocation2 + $0x187] sm:$0x1] %v4594_v0  ;;  %4341 = vmatpush.msra.mxu3 %v525_v20  ;;  %706 = vmatpush.msra.mxu1 %v525_v20  ;;  %v4879_v58 = vld [vmem:[%s4748_s13 + $0x18] sm:$0xff]  ;;  %v1047_v63 = vld [vmem:[#allocation7 + $0x1d0] sm:$0xff]  ;;  %v443_v4 = vld [vmem:[%s4748_s13 + $0xa8] sm:$0xff] }
  0x4c   : > { %354 = vst [vmem:[#allocation2 + $0x1a7] sm:$0x1] %v4594_v0  ;;  %594 = vmatpush.msra.mxu0 %v573_v21  ;;  %4326 = vmatpush.msra.mxu2 %v573_v21  ;;  %v852_v5 = vld [vmem:[#allocation7 + $0x148] sm:$0xff]  ;;  %v1241_v7 = vld [vmem:[#allocation7 + $0x250] sm:$0xff]  ;;  %v851_v12 = vld [vmem:[#allocation7 + $0x140] sm:$0xff] }
  0x4d   : > { %355 = vst [vmem:[#allocation2 + $0x1c7] sm:$0x1] %v4594_v0  ;;  %4342 = vmatpush.msra.mxu3 %v524_v22  ;;  %707 = vmatpush.msra.mxu1 %v524_v22  ;;  %v1046_v6 = vld [vmem:[#allocation7 + $0x1c8] sm:$0xff]  ;;  %v444_v11 = vld [vmem:[%s4748_s13 + $0xb0] sm:$0xff]  ;;  %v1045_v13 = vld [vmem:[#allocation7 + $0x1c0] sm:$0xff] }
  0x4e   : > { %356 = vst [vmem:[#allocation2 + $0x1e7] sm:$0x1] %v4594_v0  ;;  %595 = vmatpush.msra.mxu0 %v572_v23  ;;  %4327 = vmatpush.msra.mxu2 %v572_v23  ;;  %v4897_v8 = vld [vmem:[%s4748_s13 + $0x28] sm:$0xff]  ;;  %v4906_v15 = vld [vmem:[%s4748_s13 + $0x30] sm:$0xff]  ;;  %v445_v18 = vld [vmem:[%s4748_s13 + $0xb8] sm:$0xff] }
  0x4f   : > { %357 = vst [vmem:[#allocation2 + $0x207] sm:$0x1] %v4594_v0  ;;  %4343 = vmatpush.msra.mxu3 %v523_v24  ;;  %708 = vmatpush.msra.mxu1 %v523_v24  ;;  %v1240_v14 = vld [vmem:[#allocation7 + $0x248] sm:$0xff]  ;;  %v850_v19 = vld [vmem:[#allocation7 + $0x138] sm:$0xff]  ;;  %v1239_v21 = vld [vmem:[#allocation7 + $0x240] sm:$0xff] }
  0x50   : > { %360 = vst [vmem:[#allocation2 + $0x38] sm:$0x1] %v4594_v0  ;;  %596 = vmatpush.msra.mxu0 %v571_v25  ;;  %4328 = vmatpush.msra.mxu2 %v571_v25  ;;  %v1044_v20 = vld [vmem:[#allocation7 + $0x1b8] sm:$0xff]  ;;  %v446_v25 = vld [vmem:[%s4748_s13 + $0xc0] sm:$0xff] }
  0x51   : > { %361 = vst [vmem:[#allocation2 + $0x58] sm:$0x1] %v4594_v0  ;;  %4344 = vmatpush.msra.mxu3 %v522_v26  ;;  %709 = vmatpush.msra.mxu1 %v522_v26  ;;  %v4915_v22 = vld [vmem:[%s4748_s13 + $0x38] sm:$0xff]  ;;  %v849_v26 = vld [vmem:[#allocation7 + $0x130] sm:$0xff] }
  0x52   : > { %362 = vst [vmem:[#allocation2 + $0x78] sm:$0x1] %v4594_v0  ;;  %597 = vmatpush.msra.mxu0 %v570_v27  ;;  %4329 = vmatpush.msra.mxu2 %v570_v27  ;;  %v1043_v27 = vld [vmem:[#allocation7 + $0x1b0] sm:$0xff] }
  0x53   : > { %363 = vst [vmem:[#allocation2 + $0x98] sm:$0x1] %v4594_v0  ;;  %4345 = vmatpush.msra.mxu3 %v521_v28  ;;  %710 = vmatpush.msra.mxu1 %v521_v28  ;;  %v1238_v28 = vld [vmem:[#allocation7 + $0x238] sm:$0xff] }
  0x54   : > { %364 = vst [vmem:[#allocation2 + $0xb8] sm:$0x1] %v4594_v0  ;;  %598 = vmatpush.msra.mxu0 %v569_v29  ;;  %4330 = vmatpush.msra.mxu2 %v569_v29  ;;  %v4924_v29 = vld [vmem:[%s4748_s13 + $0x40] sm:$0xff] }
  0x55   : > { %365 = vst [vmem:[#allocation2 + $0xd8] sm:$0x1] %v4594_v0  ;;  %4346 = vmatpush.msra.mxu3 %v520_v30  ;;  %711 = vmatpush.msra.mxu1 %v520_v30 }
  0x56   : > { %366 = vst [vmem:[#allocation2 + $0xf8] sm:$0x1] %v4594_v0  ;;  %599 = vmatpush.msra.mxu0 %v568_v31  ;;  %4331 = vmatpush.msra.mxu2 %v568_v31 }
  0x57   : > { %367 = vst [vmem:[#allocation2 + $0x118] sm:$0x1] %v4594_v0  ;;  %4347 = vmatpush.msra.mxu3 %v519_v32  ;;  %600 = vmatmul.f32.vlgmr.msra.gmra.mxu0 %v4594_v0 }
  0x58   : > { %368 = vst [vmem:[#allocation2 + $0x138] sm:$0x1] %v4594_v0  ;;  %648 = vmatmul.f32.vlgmr.msra.gmra.mxu2 %v4799_v33  ;;  %712 = vmatpush.msra.mxu1 %v519_v32  ;;  %v447_v32 = vld [vmem:[%s4748_s13 + $0xc8] sm:$0xff] }
  0x59   : > { %369 = vst [vmem:[#allocation2 + $0x158] sm:$0x1] %v4594_v0  ;;  %859 = vmatpush.msrb.mxu2 %v858_v35  ;;  %1053 = vmatpush.msrb.mxu3 %v1052_v36  ;;  %v1237_v35 = vld [vmem:[#allocation7 + $0x230] sm:$0xff]  ;;  %v4933_v36 = vld [vmem:[%s4748_s13 + $0x48] sm:$0xff] }
  0x5a   : > { %370 = vst [vmem:[#allocation2 + $0x178] sm:$0x1] %v4594_v0  ;;  %1247 = vmatpush.msrb.mxu0 %v1246_v40  ;;  %v847_v40 = vld [vmem:[#allocation7 + $0x120] sm:$0xff] }
  0x5b   : > { %371 = vst [vmem:[#allocation2 + $0x198] sm:$0x1] %v4594_v0  ;;  %860 = vmatpush.msrb.mxu2 %v857_v38  ;;  %1054 = vmatpush.msrb.mxu3 %v1051_v39  ;;  %v448_v39 = vld [vmem:[%s4748_s13 + $0xd0] sm:$0xff] }
  0x5c   : > { %372 = vst [vmem:[#allocation2 + $0x1b8] sm:$0x1] %v4594_v0  ;;  %1248 = vmatpush.msrb.mxu0 %v1245_v45 }
  0x5d   : > { %373 = vst [vmem:[#allocation2 + $0x1d8] sm:$0x1] %v4594_v0  ;;  %861 = vmatpush.msrb.mxu2 %v856_v43  ;;  %1055 = vmatpush.msrb.mxu3 %v1050_v44  ;;  %v1236_v43 = vld [vmem:[#allocation7 + $0x228] sm:$0xff]  ;;  %v4942_v44 = vld [vmem:[%s4748_s13 + $0x50] sm:$0xff] }
  0x5e   : > { %374 = vst [vmem:[#allocation2 + $0x1f8] sm:$0x1] %v4594_v0  ;;  %1249 = vmatpush.msrb.mxu0 %v1244_v50  ;;  %v1040_v50 = vld [vmem:[#allocation7 + $0x198] sm:$0xff] }
  0x5f   : > { %375 = vst [vmem:[#allocation2 + $0x218] sm:$0x1] %v4594_v0  ;;  %603 = vmatmul.f32.gmra.mxu0 %v4594_v0  ;;  %862 = vmatpush.msrb.mxu2 %v855_v48  ;;  %v449_v48 = vld [vmem:[%s4748_s13 + $0xd8] sm:$0xff] }
  0x60   : > { %377 = vst [vmem:[#allocation3] sm:$0xff] %v4594_v0  ;;  %651 = vmatmul.f32.gmra.mxu2 %v4821_v34  ;;  %1056 = vmatpush.msrb.mxu3 %v1049_v49  ;;  %v846_v49 = vld [vmem:[#allocation7 + $0x118] sm:$0xff] }
  0x61   : > { %378 = vst [vmem:[#allocation3 + $0x8] sm:$0xff] %v4594_v0  ;;  %863 = vmatpush.msrb.mxu2 %v854_v55  ;;  %1250 = vmatpush.msrb.mxu0 %v1243_v57  ;;  %v845_v57 = vld [vmem:[#allocation7 + $0x110] sm:$0xff] }
  0x62   : > { %379 = vst [vmem:[#allocation3 + $0x10] sm:$0xff] %v4594_v0  ;;  %1057 = vmatpush.msrb.mxu3 %v1048_v56  ;;  %v450_v56 = vld [vmem:[%s4748_s13 + $0xe0] sm:$0xff] }
  0x63   : > { %380 = vst [vmem:[#allocation3 + $0x18] sm:$0x1] %v4594_v0  ;;  %864 = vmatpush.msrb.mxu2 %v853_v62  ;;  %v1439_v62 = vld [vmem:[#allocation7 + $0x2f0] sm:$0xff] }
  0x64   : > { %382 = vst [vmem:[#allocation3 + $0x220] sm:$0xff] %v4594_v0  ;;  %1058 = vmatpush.msrb.mxu3 %v1047_v63  ;;  %v4960_v63 = vld [vmem:[%s4748_s13 + $0x60] sm:$0xff] }
  0x65   : > { %383 = vst [vmem:[#allocation3 + $0x228] sm:$0xff] %v4594_v0  ;;  %865 = vmatpush.msrb.mxu2 %v852_v5  ;;  %v844_v5 = vld [vmem:[#allocation7 + $0x108] sm:$0xff] }
  0x66   : > { %384 = vst [vmem:[#allocation3 + $0x230] sm:$0xff] %v4594_v0  ;;  %1059 = vmatpush.msrb.mxu3 %v1046_v6  ;;  %v1438_v6 = vld [vmem:[#allocation7 + $0x2e8] sm:$0xff] }
  0x67   : > { %385 = vst [vmem:[#allocation3 + $0x238] sm:$0x1] %v4594_v0  ;;  %606 = vmatmul.f32.gmra.mxu0 %v4840_v41  ;;  %866 = vmatpush.msrb.mxu2 %v851_v12  ;;  %v1436_v12 = vld [vmem:[#allocation7 + $0x2d8] sm:$0xff] }
  0x68   : > { %387 = vst [vmem:[#allocation3 + $0x27] sm:$0x1] %v4594_v0  ;;  %654 = vmatmul.f32.gmra.mxu2 %v4834_v37  ;;  %1060 = vmatpush.msrb.mxu3 %v1045_v13  ;;  %v4969_v13 = vld [vmem:[%s4748_s13 + $0x68] sm:$0xff] }
  0x69   : > { %388 = vst [vmem:[#allocation3 + $0x47] sm:$0x1] %v4594_v0  ;;  %867 = vmatpush.msrb.mxu2 %v850_v19  ;;  %v843_v19 = vld [vmem:[#allocation7 + $0x100] sm:$0xff] }
  0x6a   : > { %389 = vst [vmem:[#allocation3 + $0x67] sm:$0x1] %v4594_v0  ;;  %1061 = vmatpush.msrb.mxu3 %v1044_v20  ;;  %v1434_v20 = vld [vmem:[#allocation7 + $0x2c8] sm:$0xff] }
  0x6b   : > { %390 = vst [vmem:[#allocation3 + $0x87] sm:$0x1] %v4594_v0  ;;  %868 = vmatpush.msrb.mxu2 %v849_v26 }
  0x6c   : > { %391 = vst [vmem:[#allocation3 + $0xa7] sm:$0x1] %v4594_v0  ;;  %1062 = vmatpush.msrb.mxu3 %v1043_v27  ;;  %v1432_v27 = vld [vmem:[#allocation7 + $0x2b8] sm:$0xff] }
  0x6d   : > { %392 = vst [vmem:[#allocation3 + $0xc7] sm:$0x1] %v4594_v0 }
  0x6e   : > { %393 = vst [vmem:[#allocation3 + $0xe7] sm:$0x1] %v4594_v0 }
  0x6f   : > { %394 = vst [vmem:[#allocation3 + $0x107] sm:$0x1] %v4594_v0  ;;  %609 = vmatmul.f32.gmra.mxu0 %v4853_v46 }
  0x70   : > { %395 = vst [vmem:[#allocation3 + $0x127] sm:$0x1] %v4594_v0  ;;  %657 = vmatmul.f32.gmra.mxu2 %v439_v42 }
  0x71   : > { %396 = vst [vmem:[#allocation3 + $0x147] sm:$0x1] %v4594_v0 }
  0x72   : > { %397 = vst [vmem:[#allocation3 + $0x167] sm:$0x1] %v4594_v0 }
  0x73   : > { %398 = vst [vmem:[#allocation3 + $0x187] sm:$0x1] %v4594_v0 }
  0x74   : > { %399 = vst [vmem:[#allocation3 + $0x1a7] sm:$0x1] %v4594_v0 }
  0x75   : > { %400 = vst [vmem:[#allocation3 + $0x1c7] sm:$0x1] %v4594_v0 }
  0x76   : > { %401 = vst [vmem:[#allocation3 + $0x1e7] sm:$0x1] %v4594_v0 }
  0x77   : > { %402 = vst [vmem:[#allocation3 + $0x207] sm:$0x1] %v4594_v0  ;;  %612 = vmatmul.f32.gmra.mxu0 %v4866_v51 }
  0x78   : > { %405 = vst [vmem:[#allocation3 + $0x38] sm:$0x1] %v4594_v0  ;;  %660 = vmatmul.f32.gmra.mxu2 %v440_v47 }
  0x79   : > { %406 = vst [vmem:[#allocation3 + $0x58] sm:$0x1] %v4594_v0 }
  0x7a   : > { %407 = vst [vmem:[#allocation3 + $0x78] sm:$0x1] %v4594_v0 }
  0x7b   : > { %408 = vst [vmem:[#allocation3 + $0x98] sm:$0x1] %v4594_v0 }
  0x7c   : > { %409 = vst [vmem:[#allocation3 + $0xb8] sm:$0x1] %v4594_v0 }
  0x7d   : > { %410 = vst [vmem:[#allocation3 + $0xd8] sm:$0x1] %v4594_v0 }
  0x7e   : > { %411 = vst [vmem:[#allocation3 + $0xf8] sm:$0x1] %v4594_v0 }
  0x7f   : > { %412 = vst [vmem:[#allocation3 + $0x118] sm:$0x1] %v4594_v0  ;;  %615 = vmatmul.f32.gmra.mxu0 %v4879_v58 }
  0x80   : > { %413 = vst [vmem:[#allocation3 + $0x138] sm:$0x1] %v4594_v0  ;;  %663 = vmatmul.f32.gmra.mxu2 %v441_v54 }
  0x81   : > { %414 = vst [vmem:[#allocation3 + $0x158] sm:$0x1] %v4594_v0 }
  0x82   : > { %415 = vst [vmem:[#allocation3 + $0x178] sm:$0x1] %v4594_v0 }
  0x83   : > { %416 = vst [vmem:[#allocation3 + $0x198] sm:$0x1] %v4594_v0 }
  0x84   : > { %417 = vst [vmem:[#allocation3 + $0x1b8] sm:$0x1] %v4594_v0 }
  0x85   : > { %418 = vst [vmem:[#allocation3 + $0x1d8] sm:$0x1] %v4594_v0 }
  0x86   : > { %419 = vst [vmem:[#allocation3 + $0x1f8] sm:$0x1] %v4594_v0 }
  0x87   : > { %420 = vst [vmem:[#allocation3 + $0x218] sm:$0x1] %v4594_v0  ;;  %618 = vmatmul.f32.gmra.mxu0 %v4888_v1 }
  0x88   : > { %469 = vst [vmem:[#allocation2 + $0x108] sm:$0xff] %v4799_v33  ;;  %666 = vmatmul.f32.gmra.mxu2 %v442_v61  ;;  %v848_v33 = vld [vmem:[#allocation7 + $0x128] sm:$0xff] }
  0x89   : > { %341 = vst [vmem:[#allocation2 + $0x7] sm:$0x1] %v4594_v0  ;;  %869 = vmatpush.msrb.mxu2 %v848_v33 }
  0x8a   : > { %358 = vst [vmem:[#allocation2 + $0x227] sm:$0x1] %v4594_v0 }
  0x8b   : > { %359 = vst [vmem:[#allocation2 + $0x18] sm:$0x1] %v4594_v0  ;;  %870 = vmatpush.msrb.mxu2 %v847_v40  ;;  %v1829_v40 = vld [vmem:[#allocation7 + $0x3f8] sm:$0xff] }
  0x8c   : > { %376 = vst [vmem:[#allocation2 + $0x238] sm:$0x1] %v4594_v0 }
  0x8d   : > { %386 = vst [vmem:[#allocation3 + $0x7] sm:$0x1] %v4594_v0  ;;  %871 = vmatpush.msrb.mxu2 %v846_v49  ;;  %v1427_v49 = vld [vmem:[#allocation7 + $0x290] sm:$0xff] }
  0x8e   : > { %403 = vst [vmem:[#allocation3 + $0x227] sm:$0x1] %v4594_v0 }
  0x8f   : > { %404 = vst [vmem:[#allocation3 + $0x18] sm:$0x1] %v4594_v0  ;;  %v503_v52 = vld [vmem:[#allocation2 + $0x107] sm:$0xff]  ;;  %621 = vmatmul.f32.gmra.mxu0 %v4897_v8  ;;  %872 = vmatpush.msrb.mxu2 %v845_v57 }
  0x90   : > { %421 = vst [vmem:[#allocation3 + $0x238] sm:$0x1] %v4594_v0  ;;  %761 = vmatmul.f32.vlgmr.msra.gmra.mxu3 %v503_v52  ;;  %v487_v53 = vld [vmem:[#allocation2 + $0x7] sm:$0xff]  ;;  %v1242_v0 = vld [vmem:[#allocation7 + $0x258] sm:$0xff]  ;;  %669 = vmatmul.f32.gmra.mxu2 %v443_v4 }
  0x91   : > { %470 = vst [vmem:[#allocation2 + $0x110] sm:$0xff] %v4821_v34  ;;  %713 = vmatmul.f32.vlgmr.msra.gmra.mxu1 %v487_v53  ;;  %1251 = vmatpush.msrb.mxu0 %v1242_v0  ;;  %v1042_v34 = vld [vmem:[#allocation7 + $0x1a8] sm:$0xff]  ;;  %v1235_v52 = vld [vmem:[#allocation7 + $0x220] sm:$0xff]  ;;  %v4951_v53 = vld [vmem:[%s4748_s13 + $0x58] sm:$0xff] }
  0x92   : > { %455 = vst [vmem:[#allocation2 + $0x28] sm:$0xff] %v4840_v41  ;;  %1063 = vmatpush.msrb.mxu3 %v1042_v34  ;;  %873 = vmatpush.msrb.mxu2 %v844_v5  ;;  %v1425_v57 = vld [vmem:[#allocation7 + $0x280] sm:$0xff] }
  0x93   : > { %471 = vst [vmem:[#allocation2 + $0x128] sm:$0xff] %v4834_v37  ;;  %1252 = vmatpush.msrb.mxu0 %v1241_v7  ;;  %v1038_v7 = vld [vmem:[#allocation7 + $0x188] sm:$0xff] }
  0x94   : > { %456 = vst [vmem:[#allocation2 + $0x30] sm:$0xff] %v4853_v46  ;;  %874 = vmatpush.msrb.mxu2 %v843_v19  ;;  %v1633_v19 = vld [vmem:[#allocation7 + $0x368] sm:$0xff] }
  0x95   : > { %472 = vst [vmem:[#allocation2 + $0x130] sm:$0xff] %v439_v42  ;;  %1253 = vmatpush.msrb.mxu0 %v1240_v14  ;;  %v1041_v42 = vld [vmem:[#allocation7 + $0x1a0] sm:$0xff]  ;;  %v1435_v14 = vld [vmem:[#allocation7 + $0x2d0] sm:$0xff] }
  0x96   : > { %457 = vst [vmem:[#allocation2 + $0x48] sm:$0xff] %v4866_v51  ;;  %1064 = vmatpush.msrb.mxu3 %v1041_v42  ;;  %v1429_v42 = vld [vmem:[#allocation7 + $0x2a0] sm:$0xff] }
  0x97   : > { %473 = vst [vmem:[#allocation2 + $0x148] sm:$0xff] %v440_v47  ;;  %624 = vmatmul.f32.gmra.mxu0 %v4906_v15 }
  0x98   : > { %v504_v60 = vld [vmem:[#allocation2 + $0x10f] sm:$0xff]  ;;  %458 = vst [vmem:[#allocation2 + $0x50] sm:$0xff] %v4879_v58  ;;  %672 = vmatmul.f32.gmra.mxu2 %v444_v11  ;;  %1254 = vmatpush.msrb.mxu0 %v1239_v21  ;;  %v1037_v21 = vld [vmem:[#allocation7 + $0x180] sm:$0xff] }
  0x99   : > { %764 = vmatmul.f32.gmra.mxu3 %v504_v60  ;;  %716 = vmatmul.f32.gmra.mxu1 %v488_v59  ;;  %474 = vst [vmem:[#allocation2 + $0x150] sm:$0xff] %v441_v54  ;;  %v4892_v3 = vld [vmem:[#allocation2 + $0x27] sm:$0xff]  ;;  %v1039_v59 = vld [vmem:[#allocation7 + $0x190] sm:$0xff]  ;;  %v1234_v60 = vld [vmem:[#allocation7 + $0x218] sm:$0xff] }
  0x9a   : > { %475 = vst [vmem:[#allocation2 + $0x168] sm:$0xff] %v442_v61  ;;  %v505_v2 = vld [vmem:[#allocation2 + $0x127] sm:$0xff]  ;;  %1255 = vmatpush.msrb.mxu0 %v1238_v28  ;;  %1065 = vmatpush.msrb.mxu3 %v1040_v50  ;;  %v1440_v61 = vld [vmem:[#allocation7 + $0x2f8] sm:$0xff] }
  0x9b   : > { %459 = vst [vmem:[#allocation2 + $0x68] sm:$0xff] %v4888_v1  ;;  %v4901_v10 = vld [vmem:[#allocation2 + $0x2f] sm:$0xff]  ;;  %1441 = vmatpush.msrb.mxu1 %v1440_v61  ;;  %v1231_v28 = vld [vmem:[#allocation7 + $0x200] sm:$0xff] }
  0x9c   : > { %476 = vst [vmem:[#allocation2 + $0x170] sm:$0xff] %v443_v4  ;;  %v506_v9 = vld [vmem:[#allocation2 + $0x12f] sm:$0xff]  ;;  %1256 = vmatpush.msrb.mxu0 %v1237_v35  ;;  %1066 = vmatpush.msrb.mxu3 %v1039_v59  ;;  %v1635_v35 = vld [vmem:[#allocation7 + $0x378] sm:$0xff] }
  0x9d   : > { %460 = vst [vmem:[#allocation2 + $0x70] sm:$0xff] %v4897_v8  ;;  %v4910_v17 = vld [vmem:[#allocation2 + $0x47] sm:$0xff]  ;;  %1442 = vmatpush.msrb.mxu1 %v1439_v62  ;;  %1636 = vmatpush.msra.mxu2 %v1635_v35  ;;  %v1393_v5 = vld [vmem:[#allocation2 + $0x31] sm:$0xff] }
  0x9e   : > { %477 = vst [vmem:[#allocation2 + $0x188] sm:$0xff] %v444_v11  ;;  %v507_v16 = vld [vmem:[#allocation2 + $0x147] sm:$0xff]  ;;  %1257 = vmatpush.msrb.mxu0 %v1236_v43  ;;  %1067 = vmatpush.msrb.mxu3 %v1038_v7 }
  0x9f   : > { %461 = vst [vmem:[#allocation2 + $0x88] sm:$0xff] %v4906_v15  ;;  %627 = vmatmul.f32.gmra.mxu0 %v4915_v22  ;;  %v4919_v24 = vld [vmem:[#allocation2 + $0x4f] sm:$0xff]  ;;  %1443 = vmatpush.msrb.mxu1 %v1438_v6  ;;  %v1437_v11 = vld [vmem:[#allocation7 + $0x2e0] sm:$0xff] }
  0xa0   : > { %478 = vst [vmem:[#allocation2 + $0x190] sm:$0xff] %v445_v18  ;;  %675 = vmatmul.f32.gmra.mxu2 %v445_v18  ;;  %v508_v23 = vld [vmem:[#allocation2 + $0x14f] sm:$0xff]  ;;  %1258 = vmatpush.msrb.mxu0 %v1235_v52 }
  0xa1   : > { %767 = vmatmul.f32.gmra.mxu3 %v505_v2  ;;  %719 = vmatmul.f32.gmra.mxu1 %v4892_v3  ;;  %462 = vst [vmem:[#allocation2 + $0x90] sm:$0xff] %v4915_v22  ;;  %v509_v30 = vld [vmem:[#allocation2 + $0x167] sm:$0xff] }
  0xa2   : > { %479 = vst [vmem:[#allocation2 + $0x1a8] sm:$0xff] %v446_v25  ;;  %v4928_v31 = vld [vmem:[#allocation2 + $0x67] sm:$0xff]  ;;  %1259 = vmatpush.msrb.mxu0 %v1234_v60  ;;  %1444 = vmatpush.msrb.mxu1 %v1437_v11 }
  0xa3   : > { %463 = vst [vmem:[#allocation2 + $0xa8] sm:$0xff] %v4924_v29  ;;  %v510_v37 = vld [vmem:[#allocation2 + $0x16f] sm:$0xff]  ;;  %1068 = vmatpush.msrb.mxu3 %v1037_v21 }
  0xa4   : > { %480 = vst [vmem:[#allocation2 + $0x1b0] sm:$0xff] %v447_v32  ;;  %v4937_v38 = vld [vmem:[#allocation2 + $0x6f] sm:$0xff]  ;;  %1445 = vmatpush.msrb.mxu1 %v1436_v12 }
  0xa5   : > { %464 = vst [vmem:[#allocation2 + $0xb0] sm:$0xff] %v4933_v36  ;;  %v511_v45 = vld [vmem:[#allocation2 + $0x187] sm:$0xff]  ;;  %1830 = vmatpush.msra.mxu3 %v1829_v40 }
  0xa6   : > { %481 = vst [vmem:[#allocation2 + $0x1c8] sm:$0xff] %v448_v39  ;;  %v4946_v47 = vld [vmem:[#allocation2 + $0x87] sm:$0xff]  ;;  %1446 = vmatpush.msrb.mxu1 %v1435_v14 }
  0xa7   : > { %630 = vmatmul.f32.gmra.mxu0 %v4924_v29  ;;  %465 = vst [vmem:[#allocation2 + $0xc8] sm:$0xff] %v4942_v44  ;;  %v512_v54 = vld [vmem:[#allocation2 + $0x18f] sm:$0xff] }
  0xa8   : > { %678 = vmatmul.f32.gmra.mxu2 %v446_v25  ;;  %482 = vst [vmem:[#allocation2 + $0x1d0] sm:$0xff] %v449_v48  ;;  %v4955_v55 = vld [vmem:[#allocation2 + $0x8f] sm:$0xff]  ;;  %1447 = vmatpush.msrb.mxu1 %v1434_v20  ;;  %v1433_v25 = vld [vmem:[#allocation7 + $0x2c0] sm:$0xff] }
  0xa9   : > { %770 = vmatmul.f32.gmra.mxu3 %v506_v9  ;;  %722 = vmatmul.f32.gmra.mxu1 %v4901_v10  ;;  %466 = vst [vmem:[#allocation2 + $0xd0] sm:$0xff] %v4951_v53  ;;  %v513_v0 = vld [vmem:[#allocation2 + $0x1a7] sm:$0xff]  ;;  %v1233_v9 = vld [vmem:[#allocation7 + $0x210] sm:$0xff] }
  0xaa   : > { %483 = vst [vmem:[#allocation2 + $0x1e8] sm:$0xff] %v450_v56  ;;  %v4964_v2 = vld [vmem:[#allocation2 + $0xa7] sm:$0xff]  ;;  %1260 = vmatpush.msrb.mxu0 %v1233_v9  ;;  %1448 = vmatpush.msrb.mxu1 %v1433_v25  ;;  %v1395_v25 = vld [vmem:[#allocation2 + $0x51] sm:$0xff] }
  0xab   : > { %467 = vst [vmem:[#allocation2 + $0xe8] sm:$0xff] %v4960_v63  ;;  %v451_v4 = vld [vmem:[%s4748_s13 + $0xe8] sm:$0xff] }
  0xac   : > { %484 = vst [vmem:[#allocation2 + $0x1f0] sm:$0xff] %v451_v4  ;;  %v4973_v18 = vld [vmem:[#allocation2 + $0xaf] sm:$0xff]  ;;  %1449 = vmatpush.msrb.mxu1 %v1432_v27 }
  0xad   : > { %468 = vst [vmem:[#allocation2 + $0xf0] sm:$0xff] %v4969_v13  ;;  %v515_v33 = vld [vmem:[#allocation2 + $0x1c7] sm:$0xff] }
  0xae   : > { %v4978_v34 = vld [vmem:[#allocation2 + $0xc7] sm:$0xff] }
  0xaf   : > { %633 = vmatmul.f32.gmra.mxu0 %v4933_v36  ;;  %v1426_v52 = vld [vmem:[#allocation7 + $0x288] sm:$0xff] }
  0xb0   : > { %681 = vmatmul.f32.gmra.mxu2 %v447_v32  ;;  %v1431_v32 = vld [vmem:[#allocation7 + $0x2b0] sm:$0xff]  ;;  %v1827_v20 = vld [vmem:[#allocation7 + $0x3e8] sm:$0xff] }
  0xb1   : > { %773 = vmatmul.f32.gmra.mxu3 %v507_v16  ;;  %725 = vmatmul.f32.gmra.mxu1 %v4910_v17  ;;  %v514_v16 = vld [vmem:[#allocation2 + $0x1af] sm:$0xff]  ;;  %v517_v61 = vld [vmem:[#allocation2 + $0x1e7] sm:$0xff] }
  0xb2   : > { %1450 = vmatpush.msrb.mxu1 %v1431_v32  ;;  %v4986_v50 = vld [vmem:[#allocation2 + $0xcf] sm:$0xff]  ;;  %v4992_v62 = vld [vmem:[#allocation2 + $0xe7] sm:$0xff] }
  0xb3   : > { %v1392_v59 = vld [vmem:[#allocation2 + $0x29] sm:$0xff] }
  0xb4   : > { %v518_v7 = vld [vmem:[#allocation2 + $0x1ef] sm:$0xff] }
  0xb5   : > { %v4998_v9 = vld [vmem:[#allocation2 + $0xef] sm:$0xff] }
  0xb6   : > { %v1394_v12 = vld [vmem:[#allocation2 + $0x49] sm:$0xff] }
  0xb7   : > { %636 = vmatmul.f32.gmra.mxu0 %v4942_v44  ;;  %v1396_v32 = vld [vmem:[#allocation2 + $0x69] sm:$0xff] }
  0xb8   : > { %684 = vmatmul.f32.gmra.mxu2 %v448_v39 }
  0xb9   : > { %776 = vmatmul.f32.gmra.mxu3 %v508_v23  ;;  %728 = vmatmul.f32.gmra.mxu1 %v4919_v24  ;;  %v1232_v23 = vld [vmem:[#allocation7 + $0x208] sm:$0xff] }
  0xba   : > { %1261 = vmatpush.msrb.mxu0 %v1232_v23 }
  0xbc   : > { %1262 = vmatpush.msrb.mxu0 %v1231_v28 }
  0xbf   : > { %639 = vmatmul.f32.gmra.mxu0 %v4951_v53 }
  0xc0   : > { %687 = vmatmul.f32.gmra.mxu2 %v449_v48  ;;  %v811_v48 = vld [vmem:[#allocation2 + $0x11] sm:$0xff] }
  0xc1   : > { %779 = vmatmul.f32.gmra.mxu3 %v509_v30  ;;  %731 = vmatmul.f32.gmra.mxu1 %v4928_v31  ;;  %v810_v30 = vld [vmem:[#allocation2 + $0x9] sm:$0xff] }
  0xc7   : > { %642 = vmatmul.f32.gmra.mxu0 %v4960_v63 }
  0xc8   : > { %690 = vmatmul.f32.gmra.mxu2 %v450_v56 }
  0xc9   : > { %782 = vmatmul.f32.gmra.mxu3 %v510_v37  ;;  %734 = vmatmul.f32.gmra.mxu1 %v4937_v38  ;;  %v1430_v37 = vld [vmem:[#allocation7 + $0x2a8] sm:$0xff] }
  0xca   : > { %1451 = vmatpush.msrb.mxu1 %v1430_v37 }
  0xcc   : > { %1452 = vmatpush.msrb.mxu1 %v1429_v42  ;;  %v1397_v42 = vld [vmem:[#allocation2 + $0x71] sm:$0xff] }
  0xcf   : > { %645 = vmatmul.f32.gmra.mxu0 %v4969_v13 }
  0xd0   : > { %693 = vmatmul.f32.gmra.mxu2 %v451_v4 }
  0xd1   : > { %785 = vmatmul.f32.gmra.mxu3 %v511_v45  ;;  %737 = vmatmul.f32.gmra.mxu1 %v4946_v47  ;;  %v1428_v45 = vld [vmem:[#allocation7 + $0x298] sm:$0xff] }
  0xd2   : > { %1453 = vmatpush.msrb.mxu1 %v1428_v45 }
  0xd4   : > { %v4976_v26 = vpop.f32.mrf.mxu0  ;;  %1454 = vmatpush.msrb.mxu1 %v1427_v49 }
  0xd6   : > { %1455 = vmatpush.msrb.mxu1 %v1426_v52  ;;  %v1398_v52 = vld [vmem:[#allocation2 + $0x89] sm:$0xff] }
  0xd7   : > { %1263 = vmatmul.f32.vlgmr.msrb.gmra.mxu0 %v4840_v41  ;;  %v516_v41 = vld [vmem:[#allocation2 + $0x1cf] sm:$0xff] }
  0xd8   : > { %875 = vmatmul.f32.vlgmr.msrb.gmra.mxu2 %v810_v30  ;;  %1456 = vmatpush.msrb.mxu1 %v1425_v57 }
  0xd9   : > { %788 = vmatmul.f32.gmra.mxu3 %v512_v54  ;;  %740 = vmatmul.f32.gmra.mxu1 %v4955_v55  ;;  %v2023_v54 = vld [vmem:[#allocation7 + $0x478] sm:$0xff] }
  0xda   : > { %2024 = vmatpush.msra.mxu0 %v2023_v54 }
  0xdb   : > { %v4982_v39 = vpop.f32.mrf.mxu2 }
  0xdc   : > { %v4984_v43 = vpop.f32.mrf.mxu0 }
  0xdf   : > { %1266 = vmatmul.f32.gmra.mxu0 %v4853_v46  ;;  %v1634_v46 = vld [vmem:[#allocation7 + $0x370] sm:$0xff] }
  0xe0   : > { %878 = vmatmul.f32.gmra.mxu2 %v811_v48 }
  0xe1   : > { %791 = vmatmul.f32.gmra.mxu3 %v513_v0  ;;  %743 = vmatmul.f32.gmra.mxu1 %v4964_v2  ;;  %v1828_v0 = vld [vmem:[#allocation7 + $0x3f0] sm:$0xff] }
  0xe2   : > { %1637 = vmatpush.msra.mxu2 %v1634_v46  ;;  %1831 = vmatpush.msra.mxu3 %v1828_v0  ;;  %v1399_v46 = vld [vmem:[#allocation2 + $0x91] sm:$0xff] }
  0xe3   : > { %v652_v56 = vpop.f32.mrf.mxu2 }
  0xe4   : > { %v4990_v60 = vpop.f32.mrf.mxu0  ;;  %1638 = vmatpush.msra.mxu2 %v1633_v19  ;;  %1832 = vmatpush.msra.mxu3 %v1827_v20 }
  0xe7   : > { %1269 = vmatmul.f32.gmra.mxu0 %v4866_v51  ;;  %v2022_v51 = vld [vmem:[#allocation7 + $0x470] sm:$0xff] }
  0xe8   : > { %881 = vmatmul.f32.gmra.mxu2 %v1392_v59  ;;  %2025 = vmatpush.msra.mxu0 %v2022_v51  ;;  %v1400_v51 = vld [vmem:[#allocation2 + $0xa9] sm:$0xff] }
  0xe9   : > { %794 = vmatmul.f32.gmra.mxu3 %v514_v16  ;;  %746 = vmatmul.f32.gmra.mxu1 %v4973_v18 }
  0xeb   : > { %v655_v4 = vpop.f32.mrf.mxu2 }
  0xec   : > { %v4996_v6 = vpop.f32.mrf.mxu0 }
  0xef   : > { %1272 = vmatmul.f32.gmra.mxu0 %v4879_v58 }
  0xf0   : > { %884 = vmatmul.f32.gmra.mxu2 %v1393_v5 }
  0xf1   : > { %797 = vmatmul.f32.gmra.mxu3 %v515_v33  ;;  %749 = vmatmul.f32.gmra.mxu1 %v4978_v34 }
  0xf3   : > { %v658_v11 = vpop.f32.mrf.mxu2 }
  0xf4   : > { %v5002_v14 = vpop.f32.mrf.mxu0 }
  0xf7   : > { %1275 = vmatmul.f32.gmra.mxu0 %v4888_v1  ;;  %v2021_v1 = vld [vmem:[#allocation7 + $0x468] sm:$0xff] }
  0xf8   : > { %887 = vmatmul.f32.gmra.mxu2 %v1394_v12  ;;  %2026 = vmatpush.msra.mxu0 %v2021_v1 }
  0xf9   : > { %800 = vmatmul.f32.gmra.mxu3 %v516_v41  ;;  %752 = vmatmul.f32.gmra.mxu1 %v4986_v50 }
  0xfb   : > { %v661_v58 = vpop.f32.mrf.mxu2 }
  0xfc   : > { %v5011_v27 = vpop.f32.mrf.mxu0 }
  0xff   : > { %1278 = vmatmul.f32.gmra.mxu0 %v4897_v8  ;;  %v1632_v8 = vld [vmem:[#allocation7 + $0x360] sm:$0xff] }
 0x100   : > { %890 = vmatmul.f32.gmra.mxu2 %v1395_v25 }
 0x101   : > { %803 = vmatmul.f32.gmra.mxu3 %v517_v61  ;;  %755 = vmatmul.f32.gmra.mxu1 %v4992_v62 }
 0x102   : > { %1639 = vmatpush.msra.mxu2 %v1632_v8 }
 0x104   : > { %v5019_v35 = vpop.f32.mrf.mxu0 }
 0x107   : > { %1281 = vmatmul.f32.gmra.mxu0 %v4906_v15  ;;  %v2020_v15 = vld [vmem:[#allocation7 + $0x460] sm:$0xff] }
 0x108   : > { %893 = vmatmul.f32.gmra.mxu2 %v1396_v32  ;;  %2027 = vmatpush.msra.mxu0 %v2020_v15  ;;  %v1403_v15 = vld [vmem:[#allocation2 + $0xd1] sm:$0xff] }
 0x109   : > { %806 = vmatmul.f32.gmra.mxu3 %v518_v7  ;;  %758 = vmatmul.f32.gmra.mxu1 %v4998_v9 }
 0x10c   : > { %v5027_v48 = vpop.f32.mrf.mxu0 }
 0x10e   : > { %v5004_v16 = vpop.f32.mrf.mxu1 }
 0x10f   : > { %1284 = vmatmul.f32.gmra.mxu0 %v4915_v22  ;;  %v1631_v22 = vld [vmem:[#allocation7 + $0x358] sm:$0xff] }
 0x110   : > { %896 = vmatmul.f32.gmra.mxu2 %v1397_v42 }
 0x111   : > { %1069 = vmatmul.f32.vlgmr.msrb.gmra.mxu3 %v4892_v3  ;;  %1457 = vmatmul.f32.vlgmr.msrb.gmra.mxu1 %v1392_v59  ;;  %v664_v3 = vpop.f32.mrf.mxu2 }
 0x112   : > { %1640 = vmatpush.msra.mxu2 %v1631_v22 }
 0x113   : > { %v762_v21 = vpop.f32.mrf.mxu3 }
 0x114   : > { %v5009_v23 = vadd.f32 %v762_v21, %v4982_v39  ;;  %v1401_v21 = vld [vmem:[#allocation2 + $0xb1] sm:$0xff] }
 0x116   : > { %v5013_v28 = vpop.f32.mrf.mxu1 }
 0x117   : > { %1287 = vmatmul.f32.gmra.mxu0 %v4924_v29  ;;  %v2019_v29 = vld [vmem:[#allocation7 + $0x458] sm:$0xff] }
 0x118   : > { %899 = vmatmul.f32.gmra.mxu2 %v1398_v52  ;;  %2028 = vmatpush.msra.mxu0 %v2019_v29  ;;  %v1212_v29 = vld [vmem:[#allocation2 + $0x108] sm:$0xff] }
 0x119   : > { %1072 = vmatmul.f32.gmra.mxu3 %v4901_v10  ;;  %1460 = vmatmul.f32.gmra.mxu1 %v1393_v5  ;;  %v1826_v10 = vld [vmem:[#allocation7 + $0x3e0] sm:$0xff]  ;;  %v667_v39 = vpop.f32.mrf.mxu2 }
 0x11a   : > { %1833 = vmatpush.msra.mxu3 %v1826_v10 }
 0x11c   : > { %v765_v30 = vpop.f32.mrf.mxu3 }
 0x11d   : > { %v5017_v33 = vadd.f32 %v765_v30, %v652_v56  ;;  %v5035_v56 = vpop.f32.mrf.mxu0 }
 0x11e   : > { %v5021_v37 = vpop.f32.mrf.mxu1 }
 0x11f   : > { %1290 = vmatmul.f32.gmra.mxu0 %v4933_v36  ;;  %v1630_v36 = vld [vmem:[#allocation7 + $0x350] sm:$0xff] }
 0x120   : > { %902 = vmatmul.f32.gmra.mxu2 %v1399_v46 }
 0x121   : > { %1075 = vmatmul.f32.gmra.mxu3 %v4910_v17  ;;  %1463 = vmatmul.f32.gmra.mxu1 %v1394_v12  ;;  %v670_v17 = vpop.f32.mrf.mxu2 }
 0x122   : > { %1641 = vmatpush.msra.mxu2 %v1630_v36  ;;  %v5092_v36 = vld [vmem:[#allocation2 + $0xf1] sm:$0xff] }
 0x124   : > { %v768_v40 = vpop.f32.mrf.mxu3 }
 0x125   : > { %v5025_v45 = vadd.f32 %v768_v40, %v655_v4  ;;  %v5043_v4 = vpop.f32.mrf.mxu0 }
 0x126   : > { %v5029_v49 = vpop.f32.mrf.mxu1 }
 0x127   : > { %1293 = vmatmul.f32.gmra.mxu0 %v4942_v44  ;;  %v2018_v44 = vld [vmem:[#allocation7 + $0x450] sm:$0xff] }
 0x128   : > { %905 = vmatmul.f32.gmra.mxu2 %v1400_v51  ;;  %2029 = vmatpush.msra.mxu0 %v2018_v44 }
 0x129   : > { %1078 = vmatmul.f32.gmra.mxu3 %v4919_v24  ;;  %1466 = vmatmul.f32.gmra.mxu1 %v1395_v25  ;;  %v1825_v24 = vld [vmem:[#allocation7 + $0x3d8] sm:$0xff]  ;;  %v673_v59 = vpop.f32.mrf.mxu2 }
 0x12a   : > { %1834 = vmatpush.msra.mxu3 %v1825_v24  ;;  %v1404_v24 = vld [vmem:[#allocation2 + $0xe9] sm:$0xff] }
 0x12c   : > { %v771_v41 = vpop.f32.mrf.mxu3 }
 0x12d   : > { %v5033_v54 = vadd.f32 %v771_v41, %v658_v11  ;;  %v5051_v12 = vpop.f32.mrf.mxu0 }
 0x12e   : > { %v5037_v57 = vpop.f32.mrf.mxu1 }
 0x12f   : > { %1296 = vmatmul.f32.gmra.mxu0 %v4951_v53  ;;  %v1629_v53 = vld [vmem:[#allocation7 + $0x348] sm:$0xff] }
 0x130   : > { %908 = vmatmul.f32.gmra.mxu2 %v1401_v21 }
 0x131   : > { %1081 = vmatmul.f32.gmra.mxu3 %v4928_v31  ;;  %1469 = vmatmul.f32.gmra.mxu1 %v1396_v32  ;;  %v676_v31 = vpop.f32.mrf.mxu2  ;;  %v1402_v32 = vld [vmem:[#allocation2 + $0xc9] sm:$0xff] }
 0x132   : > { %1642 = vmatpush.msra.mxu2 %v1629_v53 }
 0x134   : > { %v774_v61 = vpop.f32.mrf.mxu3 }
 0x135   : > { %v5041_v0 = vadd.f32 %v774_v61, %v661_v58  ;;  %v5059_v1 = vpop.f32.mrf.mxu0 }
 0x136   : > { %v5045_v5 = vpop.f32.mrf.mxu1 }
 0x137   : > { %1299 = vmatmul.f32.gmra.mxu0 %v4960_v63  ;;  %v2017_v63 = vld [vmem:[#allocation7 + $0x448] sm:$0xff] }
 0x138   : > { %911 = vmatmul.f32.gmra.mxu2 %v1402_v32  ;;  %2030 = vmatpush.msra.mxu0 %v2017_v63  ;;  %v1821_v63 = vld [vmem:[#allocation7 + $0x3b8] sm:$0xff] }
 0x139   : > { %1084 = vmatmul.f32.gmra.mxu3 %v4937_v38  ;;  %1472 = vmatmul.f32.gmra.mxu1 %v1397_v42  ;;  %v1824_v38 = vld [vmem:[#allocation7 + $0x3d0] sm:$0xff]  ;;  %v679_v20 = vpop.f32.mrf.mxu2 }
 0x13a   : > { %1835 = vmatpush.msra.mxu3 %v1824_v38 }
 0x13c   : > { %v777_v7 = vpop.f32.mrf.mxu3 }
 0x13d   : > { %v5049_v11 = vadd.f32 %v777_v7, %v664_v3  ;;  %v5067_v10 = vpop.f32.mrf.mxu0 }
 0x13e   : > { %v5053_v19 = vpop.f32.mrf.mxu1 }
 0x13f   : > { %1302 = vmatmul.f32.gmra.mxu0 %v4969_v13  ;;  %v1628_v13 = vld [vmem:[#allocation7 + $0x340] sm:$0xff] }
 0x140   : > { %914 = vmatmul.f32.gmra.mxu2 %v1403_v15 }
 0x141   : > { %1087 = vmatmul.f32.gmra.mxu3 %v4946_v47  ;;  %1475 = vmatmul.f32.gmra.mxu1 %v1398_v52  ;;  %v682_v47 = vpop.f32.mrf.mxu2 }
 0x142   : > { %1643 = vmatpush.msra.mxu2 %v1628_v13  ;;  %v5118_v13 = vld [vmem:[#allocation2 + $0x111] sm:$0xff] }
 0x143   : > { %6743 = vst [vmem:[#allocation14_spill] sm:$0xff] %v5118_v13 }
 0x144   : > { %v780_v58 = vpop.f32.mrf.mxu3 }
 0x145   : > { %v5057_v25 = vadd.f32 %v780_v58, %v667_v39 }
 0x146   : > { %v5061_v3 = vpop.f32.mrf.mxu1 }
 0x147   : > { %1305 = vmatmul.f32.gmra.mxu0 %v1212_v29 }
 0x148   : > { %917 = vmatmul.f32.gmra.mxu2 %v1404_v24 }
 0x149   : > { %1090 = vmatmul.f32.gmra.mxu3 %v4955_v55  ;;  %1478 = vmatmul.f32.gmra.mxu1 %v1399_v46  ;;  %v1823_v55 = vld [vmem:[#allocation7 + $0x3c8] sm:$0xff]  ;;  %v685_v40 = vpop.f32.mrf.mxu2 }
 0x14a   : > { %1836 = vmatpush.msra.mxu3 %v1823_v55 }
 0x14c   : > { %v783_v30 = vpop.f32.mrf.mxu3 }
 0x14d   : > { %v5065_v8 = vadd.f32 %v783_v30, %v670_v17  ;;  %v5075_v17 = vpop.f32.mrf.mxu0 }
 0x14e   : > { %v5069_v39 = vpop.f32.mrf.mxu1 }
 0x150   : > { %920 = vmatmul.f32.gmra.mxu2 %v5092_v36 }
 0x151   : > { %1093 = vmatmul.f32.gmra.mxu3 %v4964_v2  ;;  %1481 = vmatmul.f32.gmra.mxu1 %v1400_v51  ;;  %v5081_v2 = vpop.f32.mrf.mxu2 }
 0x154   : > { %v786_v42 = vpop.f32.mrf.mxu3 }
 0x155   : > { %v5073_v41 = vadd.f32 %v786_v42, %v673_v59  ;;  %v5085_v59 = vpop.f32.mrf.mxu0  ;;  %v1214_v42 = vld [vmem:[#allocation2 + $0x128] sm:$0xff] }
 0x156   : > { %v5077_v52 = vpop.f32.mrf.mxu1 }
 0x159   : > { %1096 = vmatmul.f32.gmra.mxu3 %v4973_v18  ;;  %1484 = vmatmul.f32.gmra.mxu1 %v1401_v21  ;;  %v1822_v18 = vld [vmem:[#allocation7 + $0x3c0] sm:$0xff]  ;;  %v5090_v7 = vpop.f32.mrf.mxu2 }
 0x15a   : > { %1837 = vmatpush.msra.mxu3 %v1822_v18  ;;  %v2016_v21 = vld [vmem:[#allocation7 + $0x440] sm:$0xff] }
 0x15b   : > { %2031 = vmatpush.msra.mxu0 %v2016_v21 }
 0x15c   : > { %v789_v22 = vpop.f32.mrf.mxu3  ;;  %1838 = vmatpush.msra.mxu3 %v1821_v63  ;;  %v1216_v63 = vld [vmem:[#allocation2 + $0x148] sm:$0xff] }
 0x15d   : > { %v5083_v61 = vadd.f32 %v789_v22, %v676_v31  ;;  %v5096_v38 = vpop.f32.mrf.mxu0 }
 0x15e   : > { %v5087_v46 = vpop.f32.mrf.mxu1 }
 0x161   : > { %1099 = vmatmul.f32.gmra.mxu3 %v4978_v34  ;;  %1487 = vmatmul.f32.gmra.mxu1 %v1402_v32  ;;  %v1213_v34 = vld [vmem:[#allocation2 + $0x110] sm:$0xff]  ;;  %v5102_v44 = vpop.f32.mrf.mxu2 }
 0x162   : > { %1308 = vmatmul.f32.gmra.mxu0 %v1213_v34  ;;  %v5104_v32 = vld [vmem:[#allocation2 + $0x109] sm:$0xff]  ;;  %v2015_v34 = vld [vmem:[#allocation7 + $0x438] sm:$0xff] }
 0x163   : > { %923 = vmatmul.f32.gmra.mxu2 %v5104_v32  ;;  %2032 = vmatpush.msra.mxu0 %v2015_v34 }
 0x164   : > { %v792_v51 = vpop.f32.mrf.mxu3 }
 0x165   : > { %v5094_v31 = vadd.f32 %v792_v51, %v679_v20  ;;  %v5108_v53 = vpop.f32.mrf.mxu0 }
 0x166   : > { %v5099_v58 = vpop.f32.mrf.mxu1 }
 0x169   : > { %1102 = vmatmul.f32.gmra.mxu3 %v4986_v50  ;;  %1490 = vmatmul.f32.gmra.mxu1 %v1403_v15  ;;  %v715_v50 = vadd.f32 %v5004_v16, %v4976_v26  ;;  %v1627_v15 = vld [vmem:[#allocation7 + $0x338] sm:$0xff]  ;;  %v876_v22 = vpop.f32.mrf.mxu2  ;;  %v1215_v16 = vld [vmem:[#allocation2 + $0x130] sm:$0xff] }
 0x16a   : > { %1311 = vmatmul.f32.gmra.mxu0 %v1214_v42  ;;  %1644 = vmatpush.msra.mxu2 %v1627_v15  ;;  %v721_v15 = vadd.f32 %v5021_v37, %v4990_v60  ;;  %v1019_v60 = vld [vmem:[#allocation2 + $0x10f] sm:$0xff] }
 0x16b   : > { %926 = vmatmul.f32.gmra.mxu2 %v5118_v13 }
 0x16c   : > { %v795_v30 = vpop.f32.mrf.mxu3 }
 0x16d   : > { %v5106_v20 = vadd.f32 %v795_v30, %v682_v47  ;;  %v5116_v47 = vadd.f32 %v876_v22, %v715_v50  ;;  %v5122_v51 = vpop.f32.mrf.mxu0  ;;  %v5133_v50 = vld [vmem:[#allocation2 + $0x129] sm:$0xff] }
 0x16e   : > { %v5111_v55 = vpop.f32.mrf.mxu1  ;;  %6744 = vst [vmem:[#allocation15_spill] sm:$0xff] %v5133_v50  ;;  %v1626_v22 = vld [vmem:[#allocation7 + $0x330] sm:$0xff] }
 0x16f   : > { %1645 = vmatpush.msra.mxu2 %v1626_v22 }
 0x171   : > { %1105 = vmatmul.f32.gmra.mxu3 %v4992_v62  ;;  %1493 = vmatmul.f32.gmra.mxu1 %v1404_v24  ;;  %v718_v62 = vadd.f32 %v5013_v28, %v4984_v43  ;;  %v2402_v24 = vld [vmem:[#allocation9 + $0xf8] sm:$0xff]  ;;  %v879_v21 = vpop.f32.mrf.mxu2 }
 0x172   : > { %1314 = vmatmul.f32.gmra.mxu0 %v1215_v16  ;;  %2403 = vmatpush.msra.mxu1 %v2402_v24  ;;  %v5148_v24 = vld [vmem:[#allocation2 + $0x131] sm:$0xff] }
 0x173   : > { %929 = vmatmul.f32.gmra.mxu2 %v5133_v50 }
 0x174   : > { %v798_v29 = vpop.f32.mrf.mxu3 }
 0x175   : > { %v5120_v18 = vadd.f32 %v798_v29, %v685_v40  ;;  %v5131_v40 = vadd.f32 %v879_v21, %v718_v62  ;;  %v5138_v43 = vpop.f32.mrf.mxu0  ;;  %v1820_v29 = vld [vmem:[#allocation7 + $0x3b0] sm:$0xff] }
 0x176   : > { %v5125_v26 = vpop.f32.mrf.mxu1  ;;  %1839 = vmatpush.msra.mxu3 %v1820_v29 }
 0x179   : > { %1108 = vmatmul.f32.gmra.mxu3 %v4998_v9  ;;  %1496 = vmatmul.f32.gmra.mxu1 %v5092_v36  ;;  %v1018_v9 = vld [vmem:[#allocation2 + $0x107] sm:$0xff]  ;;  %v882_v62 = vpop.f32.mrf.mxu2 }
 0x17a   : > { %1317 = vmatmul.f32.gmra.mxu0 %v1216_v63  ;;  %v2014_v63 = vld [vmem:[#allocation7 + $0x430] sm:$0xff] }
 0x17b   : > { %932 = vmatmul.f32.gmra.mxu2 %v5148_v24  ;;  %2033 = vmatpush.msra.mxu0 %v2014_v63 }
 0x17c   : > { %v801_v30 = vpop.f32.mrf.mxu3 }
 0x17d   : > { %v5136_v42 = vadd.f32 %v801_v30, %v5081_v2  ;;  %v5146_v2 = vadd.f32 %v882_v62, %v721_v15  ;;  %v5153_v21 = vpop.f32.mrf.mxu0  ;;  %v724_v30 = vadd.f32 %v5029_v49, %v4996_v6  ;;  %v2401_v15 = vld [vmem:[#allocation9 + $0xf0] sm:$0xff]  ;;  %v1020_v6 = vld [vmem:[#allocation2 + $0x127] sm:$0xff] }
 0x17e   : > { %v5141_v28 = vpop.f32.mrf.mxu1  ;;  %2404 = vmatpush.msra.mxu1 %v2401_v15  ;;  %v5163_v62 = vld [vmem:[#allocation2 + $0x149] sm:$0xff] }
 0x17f   : > { %6745 = vst [vmem:[#allocation16_spill] sm:$0xff] %v5136_v42  ;;  %v1819_v15 = vld [vmem:[#allocation7 + $0x3a8] sm:$0xff] }
 0x180   : > { %1840 = vmatpush.msra.mxu3 %v1819_v15  ;;  %v2400_v15 = vld [vmem:[#allocation9 + $0xe8] sm:$0xff] }
 0x181   : > { %1111 = vmatmul.f32.gmra.mxu3 %v1018_v9  ;;  %1499 = vmatmul.f32.gmra.mxu1 %v5104_v32  ;;  %v1217_v9 = vld [vmem:[#allocation2 + $0x150] sm:$0xff]  ;;  %v885_v22 = vpop.f32.mrf.mxu2 }
 0x182   : > { %1320 = vmatmul.f32.gmra.mxu0 %v1217_v9  ;;  %v1218_v9 = vld [vmem:[#allocation2 + $0x168] sm:$0xff]  ;;  %2405 = vmatpush.msra.mxu1 %v2400_v15  ;;  %v1818_v15 = vld [vmem:[#allocation7 + $0x3a0] sm:$0xff] }
 0x183   : > { %935 = vmatmul.f32.gmra.mxu2 %v5163_v62  ;;  %1841 = vmatpush.msra.mxu3 %v1818_v15 }
 0x184   : > { %v804_v16 = vpop.f32.mrf.mxu3 }
 0x185   : > { %v5151_v34 = vadd.f32 %v804_v16, %v5090_v7  ;;  %v5161_v7 = vadd.f32 %v885_v22, %v724_v30  ;;  %v1625_v30 = vld [vmem:[#allocation7 + $0x328] sm:$0xff] }
 0x186   : > { %v5156_v37 = vpop.f32.mrf.mxu1  ;;  %1646 = vmatpush.msra.mxu2 %v1625_v30  ;;  %v1219_v30 = vld [vmem:[#allocation2 + $0x170] sm:$0xff] }
 0x187   : > { %6746 = vst [vmem:[#allocation17_spill] sm:$0xff] %v5151_v34  ;;  %v5168_v34 = vpop.f32.mrf.mxu0 }
 0x189   : > { %1114 = vmatmul.f32.gmra.mxu3 %v1019_v60  ;;  %1502 = vmatmul.f32.gmra.mxu1 %v5118_v13  ;;  %v727_v60 = vadd.f32 %v5037_v57, %v5002_v14  ;;  %v888_v63 = vpop.f32.mrf.mxu2  ;;  %v1021_v14 = vld [vmem:[#allocation2 + $0x12f] sm:$0xff] }
 0x18a   : > { %1323 = vmatmul.f32.gmra.mxu0 %v1218_v9  ;;  %v730_v9 = vadd.f32 %v5045_v5, %v5011_v27  ;;  %v5190_v13 = vld [vmem:[#allocation2 + $0x169] sm:$0xff] }
 0x18b   : > { %v1022_v5 = vld [vmem:[#allocation2 + $0x147] sm:$0xff] }
 0x18c   : > { %v807_v29 = vpop.f32.mrf.mxu3 }
 0x18d   : > { %v5166_v16 = vadd.f32 %v807_v29, %v5102_v44  ;;  %v5174_v44 = vadd.f32 %v888_v63, %v727_v60  ;;  %v5176_v29 = vld [vmem:[#allocation2 + $0x151] sm:$0xff]  ;;  %v2013_v63 = vld [vmem:[#allocation7 + $0x428] sm:$0xff] }
 0x18e   : > { %v1458_v49 = vpop.f32.mrf.mxu1  ;;  %938 = vmatmul.f32.gmra.mxu2 %v5176_v29  ;;  %2034 = vmatpush.msra.mxu0 %v2013_v63 }
 0x18f   : > { %6747 = vst [vmem:[#allocation18_spill] sm:$0xff] %v5166_v16  ;;  %v5179_v42 = vpop.f32.mrf.mxu0 }
 0x191   : > { %1117 = vmatmul.f32.gmra.mxu3 %v1020_v6  ;;  %1505 = vmatmul.f32.gmra.mxu1 %v5133_v50 }
 0x192   : > { %1326 = vmatmul.f32.gmra.mxu0 %v1219_v30  ;;  %v1624_v30 = vld [vmem:[#allocation7 + $0x320] sm:$0xff] }
 0x193   : > { %1647 = vmatpush.msra.mxu2 %v1624_v30  ;;  %v2012_v30 = vld [vmem:[#allocation7 + $0x420] sm:$0xff] }
 0x194   : > { %v1070_v22 = vpop.f32.mrf.mxu3  ;;  %2035 = vmatpush.msra.mxu0 %v2012_v30 }
 0x195   : > { %v1166_v16 = vadd.f32 %v1070_v22, %v5116_v47  ;;  %v891_v47 = vpop.f32.mrf.mxu2 }
 0x196   : > { %v1461_v57 = vpop.f32.mrf.mxu1  ;;  %v5188_v22 = vadd.f32 %v891_v47, %v730_v9  ;;  %941 = vmatmul.f32.gmra.mxu2 %v5190_v13  ;;  %v5204_v47 = vld [vmem:[#allocation2 + $0x171] sm:$0xff] }
 0x197   : > { %v1360_v6 = vadd.f32 %v5108_v53, %v1166_v16  ;;  %v5193_v27 = vpop.f32.mrf.mxu0 }
 0x199   : > { %1120 = vmatmul.f32.gmra.mxu3 %v1021_v14  ;;  %v5185_v60 = vadd.f32 %v1458_v49, %v1360_v6  ;;  %1508 = vmatmul.f32.gmra.mxu1 %v5148_v24  ;;  %v733_v14 = vadd.f32 %v5053_v19, %v5019_v35  ;;  %v1220_v6 = vld [vmem:[#allocation2 + $0x188] sm:$0xff] }
 0x19a   : > { %1329 = vmatmul.f32.gmra.mxu0 %v1220_v6  ;;  %v1023_v19 = vld [vmem:[#allocation2 + $0x14f] sm:$0xff]  ;;  %v2399_v6 = vld [vmem:[#allocation9 + $0xe0] sm:$0xff] }
 0x19b   : > { %2406 = vmatpush.msra.mxu1 %v2399_v6  ;;  %v1817_v6 = vld [vmem:[#allocation7 + $0x398] sm:$0xff] }
 0x19c   : > { %v1073_v50 = vpop.f32.mrf.mxu3  ;;  %1842 = vmatpush.msra.mxu3 %v1817_v6 }
 0x19d   : > { %v1167_v53 = vadd.f32 %v1073_v50, %v5131_v40  ;;  %v894_v40 = vpop.f32.mrf.mxu2 }
 0x19e   : > { %v1464_v16 = vpop.f32.mrf.mxu1  ;;  %v5202_v50 = vadd.f32 %v894_v40, %v733_v14  ;;  %944 = vmatmul.f32.gmra.mxu2 %v5204_v47 }
 0x19f   : > { %v1361_v49 = vadd.f32 %v5122_v51, %v1167_v53  ;;  %v5207_v35 = vpop.f32.mrf.mxu0 }
 0x1a1   : > { %1123 = vmatmul.f32.gmra.mxu3 %v1022_v5  ;;  %v5199_v9 = vadd.f32 %v1461_v57, %v1361_v49  ;;  %1511 = vmatmul.f32.gmra.mxu1 %v5163_v62  ;;  %v736_v5 = vadd.f32 %v5061_v3, %v5027_v48  ;;  %v1221_v49 = vld [vmem:[#allocation2 + $0x190] sm:$0xff]  ;;  %v1024_v3 = vld [vmem:[#allocation2 + $0x167] sm:$0xff] }
 0x1a2   : > { %1332 = vmatmul.f32.gmra.mxu0 %v1221_v49  ;;  %v1623_v49 = vld [vmem:[#allocation7 + $0x318] sm:$0xff] }
 0x1a3   : > { %1648 = vmatpush.msra.mxu2 %v1623_v49 }
 0x1a4   : > { %v1076_v63 = vpop.f32.mrf.mxu3 }
 0x1a5   : > { %v1168_v51 = vadd.f32 %v1076_v63, %v5146_v2  ;;  %v897_v2 = vpop.f32.mrf.mxu2  ;;  %v5218_v63 = vld [vmem:[#allocation2 + $0x189] sm:$0xff] }
 0x1a6   : > { %v1467_v57 = vpop.f32.mrf.mxu1  ;;  %v5216_v15 = vadd.f32 %v897_v2, %v736_v5  ;;  %947 = vmatmul.f32.gmra.mxu2 %v5218_v63 }
 0x1a7   : > { %v1362_v53 = vadd.f32 %v5138_v43, %v1168_v51  ;;  %v5221_v48 = vpop.f32.mrf.mxu0  ;;  %v739_v51 = vadd.f32 %v5069_v39, %v5035_v56 }
 0x1a9   : > { %1126 = vmatmul.f32.gmra.mxu3 %v1023_v19  ;;  %v5213_v14 = vadd.f32 %v1464_v16, %v1362_v53  ;;  %1514 = vmatmul.f32.gmra.mxu1 %v5176_v29  ;;  %v1222_v53 = vld [vmem:[#allocation2 + $0x1a8] sm:$0xff] }
 0x1aa   : > { %1335 = vmatmul.f32.gmra.mxu0 %v1222_v53  ;;  %v2011_v53 = vld [vmem:[#allocation7 + $0x418] sm:$0xff] }
 0x1ab   : > { %2036 = vmatpush.msra.mxu0 %v2011_v53 }
 0x1ac   : > { %v1079_v40 = vpop.f32.mrf.mxu3 }
 0x1ad   : > { %v1169_v43 = vadd.f32 %v1079_v40, %v5161_v7  ;;  %v900_v7 = vpop.f32.mrf.mxu2 }
 0x1ae   : > { %v1470_v19 = vpop.f32.mrf.mxu1  ;;  %v5230_v30 = vadd.f32 %v900_v7, %v739_v51  ;;  %v2398_v51 = vld [vmem:[#allocation9 + $0xd8] sm:$0xff] }
 0x1af   : > { %v1363_v16 = vadd.f32 %v5153_v21, %v1169_v43  ;;  %v5232_v21 = vld [vmem:[#allocation2 + $0x191] sm:$0xff]  ;;  %v5235_v39 = vpop.f32.mrf.mxu0  ;;  %v742_v43 = vadd.f32 %v5077_v52, %v5043_v4  ;;  %2407 = vmatpush.msra.mxu1 %v2398_v51  ;;  %v1026_v52 = vld [vmem:[#allocation2 + $0x187] sm:$0xff] }
 0x1b0   : > { %950 = vmatmul.f32.gmra.mxu2 %v5232_v21 }
 0x1b1   : > { %1129 = vmatmul.f32.gmra.mxu3 %v1024_v3  ;;  %v5227_v5 = vadd.f32 %v1467_v57, %v1363_v16  ;;  %1517 = vmatmul.f32.gmra.mxu1 %v5190_v13  ;;  %v1025_v57 = vld [vmem:[#allocation2 + $0x16f] sm:$0xff] }
 0x1b2   : > { %v1223_v3 = vld [vmem:[#allocation2 + $0x1b0] sm:$0xff] }
 0x1b3   : > { %1338 = vmatmul.f32.gmra.mxu0 %v1223_v3  ;;  %v1816_v3 = vld [vmem:[#allocation7 + $0x390] sm:$0xff] }
 0x1b4   : > { %v1082_v2 = vpop.f32.mrf.mxu3  ;;  %1843 = vmatpush.msra.mxu3 %v1816_v3 }
 0x1b5   : > { %v1170_v56 = vadd.f32 %v1082_v2, %v5174_v44  ;;  %v903_v49 = vpop.f32.mrf.mxu2 }
 0x1b6   : > { %v1473_v44 = vpop.f32.mrf.mxu1  ;;  %v5244_v6 = vadd.f32 %v903_v49, %v742_v43  ;;  %v1622_v43 = vld [vmem:[#allocation7 + $0x310] sm:$0xff] }
 0x1b7   : > { %v1364_v40 = vadd.f32 %v5168_v34, %v1170_v56  ;;  %v1416_v34 = vld [vmem:[#allocation2 + $0x1a9] sm:$0xff]  ;;  %v5247_v4 = vpop.f32.mrf.mxu0  ;;  %v745_v56 = vadd.f32 %v5087_v46, %v5051_v12  ;;  %1649 = vmatpush.msra.mxu2 %v1622_v43 }
 0x1b8   : > { %953 = vmatmul.f32.gmra.mxu2 %v1416_v34  ;;  %v1027_v46 = vld [vmem:[#allocation2 + $0x18f] sm:$0xff] }
 0x1b9   : > { %1132 = vmatmul.f32.gmra.mxu3 %v1025_v57  ;;  %v5241_v16 = vadd.f32 %v1470_v19, %v1364_v40  ;;  %1520 = vmatmul.f32.gmra.mxu1 %v5204_v47  ;;  %v1224_v57 = vld [vmem:[#allocation2 + $0x1c8] sm:$0xff] }
 0x1bb   : > { %1341 = vmatmul.f32.gmra.mxu0 %v1224_v57  ;;  %v2010_v57 = vld [vmem:[#allocation7 + $0x410] sm:$0xff] }
 0x1bc   : > { %v1085_v7 = vpop.f32.mrf.mxu3  ;;  %2037 = vmatpush.msra.mxu0 %v2010_v57 }
 0x1bd   : > { %v1171_v2 = vadd.f32 %v1085_v7, %v5188_v22  ;;  %v906_v51 = vpop.f32.mrf.mxu2 }
 0x1be   : > { %v5255_v22 = vadd.f32 %v906_v51, %v745_v56  ;;  %v1476_v49 = vpop.f32.mrf.mxu1  ;;  %v2397_v56 = vld [vmem:[#allocation9 + $0xd0] sm:$0xff] }
 0x1bf   : > { %v1365_v19 = vadd.f32 %v5179_v42, %v1171_v2  ;;  %v1417_v42 = vld [vmem:[#allocation2 + $0x1b1] sm:$0xff]  ;;  %v5258_v12 = vpop.f32.mrf.mxu0  ;;  %v748_v2 = vadd.f32 %v5099_v58, %v5059_v1  ;;  %2408 = vmatpush.msra.mxu1 %v2397_v56  ;;  %v1418_v51 = vld [vmem:[#allocation2 + $0x1c9] sm:$0xff] }
 0x1c0   : > { %956 = vmatmul.f32.gmra.mxu2 %v1417_v42  ;;  %v1028_v1 = vld [vmem:[#allocation2 + $0x1a7] sm:$0xff] }
 0x1c1   : > { %1135 = vmatmul.f32.gmra.mxu3 %v1026_v52  ;;  %v5252_v40 = vadd.f32 %v1473_v44, %v1365_v19  ;;  %1523 = vmatmul.f32.gmra.mxu1 %v5218_v63  ;;  %v1225_v52 = vld [vmem:[#allocation2 + $0x1d0] sm:$0xff] }
 0x1c3   : > { %1344 = vmatmul.f32.gmra.mxu0 %v1225_v52  ;;  %v1815_v52 = vld [vmem:[#allocation7 + $0x388] sm:$0xff] }
 0x1c4   : > { %v1088_v53 = vpop.f32.mrf.mxu3  ;;  %1844 = vmatpush.msra.mxu3 %v1815_v52  ;;  %v757_v52 = vadd.f32 %v5141_v28, %v5085_v59  ;;  %v760_v28 = vadd.f32 %v5156_v37, %v5096_v38  ;;  %v1975_v38 = vld [vmem:[#allocation2 + $0x49] sm:$0xff] }
 0x1c5   : > { %v1172_v7 = vadd.f32 %v1088_v53, %v5202_v50  ;;  %v909_v43 = vpop.f32.mrf.mxu2 }
 0x1c6   : > { %v5266_v50 = vadd.f32 %v909_v43, %v748_v2  ;;  %v1479_v58 = vpop.f32.mrf.mxu1  ;;  %v1621_v2 = vld [vmem:[#allocation7 + $0x308] sm:$0xff]  ;;  %v1419_v43 = vld [vmem:[#allocation2 + $0x1d1] sm:$0xff] }
 0x1c7   : > { %v1366_v44 = vadd.f32 %v5193_v27, %v1172_v7  ;;  %v5269_v53 = vpop.f32.mrf.mxu0  ;;  %v751_v7 = vadd.f32 %v5111_v55, %v5067_v10  ;;  %1650 = vmatpush.msra.mxu2 %v1621_v2  ;;  %v1029_v10 = vld [vmem:[#allocation2 + $0x1af] sm:$0xff] }
 0x1c8   : > { %959 = vmatmul.f32.gmra.mxu2 %v1418_v51 }
 0x1c9   : > { %1138 = vmatmul.f32.gmra.mxu3 %v1027_v46  ;;  %v5263_v19 = vadd.f32 %v1476_v49, %v1366_v44  ;;  %1526 = vmatmul.f32.gmra.mxu1 %v5232_v21  ;;  %v1226_v46 = vld [vmem:[#allocation2 + $0x1e8] sm:$0xff] }
 0x1cb   : > { %1347 = vmatmul.f32.gmra.mxu0 %v1226_v46 }
 0x1cc   : > { %v1091_v3 = vpop.f32.mrf.mxu3 }
 0x1cd   : > { %v1173_v27 = vadd.f32 %v1091_v3, %v5216_v15  ;;  %v912_v56 = vpop.f32.mrf.mxu2 }
 0x1ce   : > { %v5276_v15 = vadd.f32 %v912_v56, %v751_v7  ;;  %v453_v56 = vld [vmem:[%s4748_s13 + $0xf8] sm:$0xff] }
 0x1cf   : > { %v1367_v49 = vadd.f32 %v5207_v35, %v1173_v27  ;;  %v5279_v3 = vpop.f32.mrf.mxu0  ;;  %v1227_v27 = vld [vmem:[#allocation2 + $0x1f0] sm:$0xff]  ;;  %486 = vst [vmem:[#allocation2 + $0x210] sm:$0xff] %v453_v56 }
 0x1d0   : > { %962 = vmatmul.f32.gmra.mxu2 %v1419_v43 }
 0x1d1   : > { %1141 = vmatmul.f32.gmra.mxu3 %v1028_v1  ;;  %v5274_v44 = vadd.f32 %v1479_v58, %v1367_v49  ;;  %1529 = vmatmul.f32.gmra.mxu1 %v1416_v34  ;;  %v754_v34 = vadd.f32 %v5125_v26, %v5075_v17  ;;  %v452_v1 = vld [vmem:[%s4748_s13 + $0xf0] sm:$0xff]  ;;  %v2396_v58 = vld [vmem:[#allocation9 + $0xc8] sm:$0xff] }
 0x1d2   : > { %v2009_v49 = vld [vmem:[#allocation7 + $0x408] sm:$0xff]  ;;  %485 = vst [vmem:[#allocation2 + $0x208] sm:$0xff] %v452_v1  ;;  %2409 = vmatpush.msra.mxu1 %v2396_v58 }
 0x1d3   : > { %1350 = vmatmul.f32.gmra.mxu0 %v1227_v27  ;;  %v1030_v17 = vld [vmem:[#allocation2 + $0x1c7] sm:$0xff]  ;;  %v1421_v27 = vld [vmem:[#allocation2 + $0x1f1] sm:$0xff] }
 0x1d4   : > { %v1094_v57 = vpop.f32.mrf.mxu3  ;;  %2038 = vmatpush.msra.mxu0 %v2009_v49  ;;  %v1031_v58 = vld [vmem:[#allocation2 + $0x1cf] sm:$0xff] }
 0x1d5   : > { %v1174_v35 = vadd.f32 %v1094_v57, %v5230_v30  ;;  %v915_v7 = vpop.f32.mrf.mxu2  ;;  %v1620_v57 = vld [vmem:[#allocation7 + $0x300] sm:$0xff] }
 0x1d6   : > { %v5287_v30 = vadd.f32 %v915_v7, %v754_v34  ;;  %1651 = vmatpush.msra.mxu2 %v1620_v57 }
 0x1d7   : > { %v5282_v55 = vadd.f32 %v5221_v48, %v1174_v35  ;;  %v1420_v48 = vld [vmem:[#allocation2 + $0x1e9] sm:$0xff]  ;;  %v1814_v35 = vld [vmem:[#allocation7 + $0x380] sm:$0xff] }
 0x1d8   : > { %965 = vmatmul.f32.gmra.mxu2 %v1420_v48  ;;  %1845 = vmatpush.msra.mxu3 %v1814_v35 }
 0x1d9   : > { %1144 = vmatmul.f32.gmra.mxu3 %v1029_v10  ;;  %1532 = vmatmul.f32.gmra.mxu1 %v1417_v42  ;;  %v5293_v42 = vpop.f32.mrf.mxu0 }
 0x1db   : > { %1353 = vmatmul.f32.gmra.mxu0 %v452_v1  ;;  %v2008_v1 = vld [vmem:[#allocation7 + $0x400] sm:$0xff] }
 0x1dc   : > { %v1097_v46 = vpop.f32.mrf.mxu3  ;;  %2039 = vmatpush.msra.mxu0 %v2008_v1  ;;  %v1034_v1 = vld [vmem:[#allocation2 + $0x207] sm:$0xff] }
 0x1dd   : > { %v1175_v2 = vadd.f32 %v1097_v46, %v5244_v6  ;;  %v918_v10 = vpop.f32.mrf.mxu2 }
 0x1de   : > { %v986_v6 = vadd.f32 %v918_v10, %v757_v52  ;;  %v1588_v10 = vld [vmem:[#allocation2 + $0x4f] sm:$0xff] }
 0x1df   : > { %v5291_v26 = vadd.f32 %v5235_v39, %v1175_v2 }
 0x1e0   : > { %968 = vmatmul.f32.gmra.mxu2 %v1421_v27 }
 0x1e1   : > { %1147 = vmatmul.f32.gmra.mxu3 %v1030_v17  ;;  %1535 = vmatmul.f32.gmra.mxu1 %v1418_v51  ;;  %v5302_v59 = vpop.f32.mrf.mxu0  ;;  %v2395_v51 = vld [vmem:[#allocation9 + $0xc0] sm:$0xff] }
 0x1e2   : > { %2410 = vmatpush.msra.mxu1 %v2395_v51  ;;  %v1587_v17 = vld [vmem:[#allocation2 + $0x47] sm:$0xff] }
 0x1e3   : > { %1356 = vmatmul.f32.gmra.mxu0 %v453_v56  ;;  %v1589_v51 = vld [vmem:[#allocation2 + $0x67] sm:$0xff] }
 0x1e4   : > { %v1100_v34 = vpop.f32.mrf.mxu3 }
 0x1e5   : > { %v1176_v39 = vadd.f32 %v1100_v34, %v5255_v22  ;;  %v921_v7 = vpop.f32.mrf.mxu2 }
 0x1e6   : > { %v987_v46 = vadd.f32 %v921_v7, %v760_v28  ;;  %v1422_v7 = vld [vmem:[#allocation2 + $0x209] sm:$0xff] }
 0x1e7   : > { %v5300_v49 = vadd.f32 %v5247_v4, %v1176_v39  ;;  %v1032_v4 = vld [vmem:[#allocation2 + $0x1e7] sm:$0xff]  ;;  %v1976_v39 = vld [vmem:[#allocation2 + $0x51] sm:$0xff] }
 0x1e8   : > { %1652 = vmatmul.f32.vlgmr.msra.gmra.mxu2 %v1587_v17 }
 0x1e9   : > { %1150 = vmatmul.f32.gmra.mxu3 %v1031_v58  ;;  %1538 = vmatmul.f32.gmra.mxu1 %v1419_v43  ;;  %v5310_v57 = vpop.f32.mrf.mxu0  ;;  %v2394_v58 = vld [vmem:[#allocation9 + $0xb8] sm:$0xff] }
 0x1ea   : > { %2411 = vmatpush.msra.mxu1 %v2394_v58  ;;  %v1591_v58 = vld [vmem:[#allocation2 + $0x87] sm:$0xff] }
 0x1eb   : > { %2040 = vmatmul.f32.vlgmr.msra.gmra.mxu0 %v1975_v38  ;;  %v1590_v38 = vld [vmem:[#allocation2 + $0x6f] sm:$0xff] }
 0x1ec   : > { %v1103_v22 = vpop.f32.mrf.mxu3 }
 0x1ed   : > { %v1177_v2 = vadd.f32 %v1103_v22, %v5266_v50  ;;  %v924_v37 = vpop.f32.mrf.mxu2  ;;  %v1033_v50 = vld [vmem:[#allocation2 + $0x1ef] sm:$0xff] }
 0x1ee   : > { %v988_v43 = vadd.f32 %v924_v37, %v5009_v23  ;;  %v1423_v37 = vld [vmem:[#allocation2 + $0x211] sm:$0xff] }
 0x1ef   : > { %v5308_v52 = vadd.f32 %v5258_v12, %v1177_v2  ;;  %v1977_v2 = vld [vmem:[#allocation2 + $0x69] sm:$0xff] }
 0x1f0   : > { %1655 = vmatmul.f32.gmra.mxu2 %v1588_v10  ;;  %v2393_v10 = vld [vmem:[#allocation9 + $0xb0] sm:$0xff] }
 0x1f1   : > { %1153 = vmatmul.f32.gmra.mxu3 %v1032_v4  ;;  %1541 = vmatmul.f32.gmra.mxu1 %v1420_v48  ;;  %v5317_v12 = vpop.f32.mrf.mxu0 }
 0x1f2   : > { %2412 = vmatpush.msra.mxu1 %v2393_v10  ;;  %v1783_v10 = vld [vmem:[#allocation2 + $0x68] sm:$0xff] }
 0x1f3   : > { %2043 = vmatmul.f32.gmra.mxu0 %v1976_v39 }
 0x1f4   : > { %v1106_v56 = vpop.f32.mrf.mxu3 }
 0x1f5   : > { %v1178_v35 = vadd.f32 %v1106_v56, %v5276_v15  ;;  %v927_v48 = vpop.f32.mrf.mxu2 }
 0x1f6   : > { %v989_v23 = vadd.f32 %v927_v48, %v5017_v33  ;;  %v1781_v48 = vld [vmem:[#allocation2 + $0x48] sm:$0xff] }
 0x1f7   : > { %v5315_v34 = vadd.f32 %v5269_v53, %v1178_v35  ;;  %v1978_v35 = vld [vmem:[#allocation2 + $0x71] sm:$0xff] }
 0x1f8   : > { %1658 = vmatmul.f32.gmra.mxu2 %v1589_v51 }
 0x1f9   : > { %1156 = vmatmul.f32.gmra.mxu3 %v1033_v50  ;;  %1544 = vmatmul.f32.gmra.mxu1 %v1421_v27  ;;  %v5324_v22 = vpop.f32.mrf.mxu0 }
 0x1fb   : > { %2046 = vmatmul.f32.gmra.mxu0 %v1977_v2 }
 0x1fc   : > { %v1109_v28 = vpop.f32.mrf.mxu3 }
 0x1fd   : > { %v1179_v15 = vadd.f32 %v1109_v28, %v5287_v30  ;;  %v930_v27 = vpop.f32.mrf.mxu2  ;;  %v1035_v30 = vld [vmem:[#allocation2 + $0x20f] sm:$0xff] }
 0x1fe   : > { %v990_v17 = vadd.f32 %v930_v27, %v5025_v45  ;;  %v1592_v27 = vld [vmem:[#allocation2 + $0x8f] sm:$0xff] }
 0x1ff   : > { %v5322_v53 = vadd.f32 %v5279_v3, %v1179_v15  ;;  %v1979_v15 = vld [vmem:[#allocation2 + $0x89] sm:$0xff] }
 0x200   : > { %1661 = vmatmul.f32.gmra.mxu2 %v1590_v38  ;;  %v2392_v38 = vld [vmem:[#allocation9 + $0xa8] sm:$0xff] }
 0x201   : > { %1159 = vmatmul.f32.gmra.mxu3 %v1034_v1  ;;  %1547 = vmatmul.f32.gmra.mxu1 %v1422_v7  ;;  %v5330_v3 = vpop.f32.mrf.mxu0 }
 0x202   : > { %2413 = vmatpush.msra.mxu1 %v2392_v38 }
 0x203   : > { %2049 = vmatmul.f32.gmra.mxu0 %v1978_v35  ;;  %v1593_v35 = vld [vmem:[#allocation2 + $0xa7] sm:$0xff] }
 0x204   : > { %v1112_v33 = vpop.f32.mrf.mxu3 }
 0x205   : > { %v1180_v4 = vadd.f32 %v1112_v33, %v986_v6  ;;  %v933_v50 = vpop.f32.mrf.mxu2 }
 0x206   : > { %v991_v45 = vadd.f32 %v933_v50, %v5033_v54  ;;  %v1782_v54 = vld [vmem:[#allocation2 + $0x50] sm:$0xff] }
 0x207   : > { %v5328_v56 = vadd.f32 %v5293_v42, %v1180_v4  ;;  %v5344_v4 = vpop.f32.mrf.mxu1 }
 0x208   : > { %1664 = vmatmul.f32.gmra.mxu2 %v1591_v58 }
 0x209   : > { %1162 = vmatmul.f32.gmra.mxu3 %v1035_v30  ;;  %1550 = vmatmul.f32.gmra.mxu1 %v1423_v37  ;;  %v5336_v42 = vpop.f32.mrf.mxu0 }
 0x20b   : > { %2052 = vmatmul.f32.gmra.mxu0 %v1979_v15 }
 0x20c   : > { %v1115_v39 = vpop.f32.mrf.mxu3 }
 0x20d   : > { %v1181_v6 = vadd.f32 %v1115_v39, %v987_v46  ;;  %v936_v51 = vpop.f32.mrf.mxu2  ;;  %v1981_v39 = vld [vmem:[#allocation2 + $0xa9] sm:$0xff] }
 0x20e   : > { %v992_v1 = vadd.f32 %v936_v51, %v5041_v0  ;;  %v1594_v51 = vld [vmem:[#allocation2 + $0xaf] sm:$0xff] }
 0x20f   : > { %v5334_v28 = vadd.f32 %v5302_v59, %v1181_v6  ;;  %v1980_v59 = vld [vmem:[#allocation2 + $0x91] sm:$0xff] }
 0x210   : > { %1667 = vmatmul.f32.gmra.mxu2 %v1592_v27  ;;  %v2391_v27 = vld [vmem:[#allocation9 + $0xa0] sm:$0xff] }
 0x211   : > { %1846 = vmatmul.f32.vlgmr.msra.gmra.mxu3 %v1781_v48  ;;  %v5342_v33 = vpop.f32.mrf.mxu0  ;;  %v5353_v48 = vpop.f32.mrf.mxu1  ;;  %2414 = vmatpush.msra.mxu1 %v2391_v27 }
 0x213   : > { %2055 = vmatmul.f32.gmra.mxu0 %v1980_v59 }
 0x214   : > { %v1118_v7 = vpop.f32.mrf.mxu3 }
 0x215   : > { %v1182_v2 = vadd.f32 %v1118_v7, %v988_v43  ;;  %v939_v30 = vpop.f32.mrf.mxu2 }
 0x216   : > { %v993_v0 = vadd.f32 %v939_v30, %v5049_v11  ;;  %v1595_v30 = vld [vmem:[#allocation2 + $0xc7] sm:$0xff] }
 0x217   : > { %v5340_v46 = vadd.f32 %v5310_v57, %v1182_v2  ;;  %v1982_v2 = vld [vmem:[#allocation2 + $0xb1] sm:$0xff] }
 0x218   : > { %1670 = vmatmul.f32.gmra.mxu2 %v1593_v35  ;;  %v1983_v35 = vld [vmem:[#allocation2 + $0xc9] sm:$0xff] }
 0x219   : > { %1849 = vmatmul.f32.gmra.mxu3 %v1782_v54  ;;  %v5350_v50 = vpop.f32.mrf.mxu0  ;;  %v5361_v38 = vpop.f32.mrf.mxu1 }
 0x21b   : > { %2058 = vmatmul.f32.gmra.mxu0 %v1981_v39 }
 0x21c   : > { %v1121_v37 = vpop.f32.mrf.mxu3 }
 0x21d   : > { %v1183_v43 = vadd.f32 %v1121_v37, %v989_v23  ;;  %v942_v6 = vpop.f32.mrf.mxu2  ;;  %v1784_v23 = vld [vmem:[#allocation2 + $0x70] sm:$0xff]  ;;  %v1785_v37 = vld [vmem:[#allocation2 + $0x88] sm:$0xff] }
 0x21e   : > { %v994_v58 = vadd.f32 %v942_v6, %v5057_v25 }
 0x21f   : > { %v5348_v57 = vadd.f32 %v5317_v12, %v1183_v43 }
 0x220   : > { %1673 = vmatmul.f32.gmra.mxu2 %v1594_v51 }
 0x221   : > { %1852 = vmatmul.f32.gmra.mxu3 %v1783_v10  ;;  %v5358_v12 = vpop.f32.mrf.mxu0 }
 0x223   : > { %2061 = vmatmul.f32.gmra.mxu0 %v1982_v2  ;;  %v2390_v2 = vld [vmem:[#allocation9 + $0x98] sm:$0xff] }
 0x224   : > { %v1124_v15 = vpop.f32.mrf.mxu3  ;;  %2415 = vmatpush.msra.mxu1 %v2390_v2 }
 0x225   : > { %v1184_v11 = vadd.f32 %v1124_v15, %v990_v17  ;;  %v945_v54 = vpop.f32.mrf.mxu2  ;;  %v1596_v15 = vld [vmem:[#allocation2 + $0xcf] sm:$0xff] }
 0x226   : > { %v995_v25 = vadd.f32 %v945_v54, %v5065_v8 }
 0x227   : > { %v5356_v7 = vadd.f32 %v5324_v22, %v1184_v11  ;;  %v1786_v11 = vld [vmem:[#allocation2 + $0x90] sm:$0xff] }
 0x228   : > { %1676 = vmatmul.f32.gmra.mxu2 %v1595_v30 }
 0x229   : > { %1855 = vmatmul.f32.gmra.mxu3 %v1784_v23  ;;  %v5366_v43 = vpop.f32.mrf.mxu0  ;;  %v1984_v23 = vld [vmem:[#allocation2 + $0xd1] sm:$0xff] }
 0x22b   : > { %2064 = vmatmul.f32.gmra.mxu0 %v1983_v35 }
 0x22c   : > { %v1127_v59 = vpop.f32.mrf.mxu3 }
 0x22d   : > { %v1185_v17 = vadd.f32 %v1127_v59, %v991_v45  ;;  %v948_v10 = vpop.f32.mrf.mxu2  ;;  %v5369_v45 = vpop.f32.mrf.mxu1  ;;  %v1597_v59 = vld [vmem:[#allocation2 + $0xe7] sm:$0xff] }
 0x22e   : > { %v996_v39 = vadd.f32 %v948_v10, %v5073_v41 }
 0x22f   : > { %v5364_v22 = vadd.f32 %v5330_v3, %v1185_v17  ;;  %v1787_v17 = vld [vmem:[#allocation2 + $0xa8] sm:$0xff] }
 0x230   : > { %1679 = vmatmul.f32.gmra.mxu2 %v1596_v15  ;;  %v1598_v15 = vld [vmem:[#allocation2 + $0xef] sm:$0xff] }
 0x231   : > { %1858 = vmatmul.f32.gmra.mxu3 %v1785_v37  ;;  %v5374_v3 = vpop.f32.mrf.mxu0  ;;  %v1985_v37 = vld [vmem:[#allocation2 + $0xe9] sm:$0xff] }
 0x233   : > { %2067 = vmatmul.f32.gmra.mxu0 %v1984_v23  ;;  %v2389_v23 = vld [vmem:[#allocation9 + $0x90] sm:$0xff] }
 0x234   : > { %v1130_v6 = vpop.f32.mrf.mxu3  ;;  %2416 = vmatpush.msra.mxu1 %v2389_v23 }
 0x235   : > { %v1186_v8 = vadd.f32 %v1130_v6, %v992_v1  ;;  %v951_v27 = vpop.f32.mrf.mxu2  ;;  %v5382_v35 = vpop.f32.mrf.mxu1 }
 0x236   : > { %v997_v41 = vadd.f32 %v951_v27, %v5083_v61 }
 0x237   : > { %v5372_v51 = vadd.f32 %v5336_v42, %v1186_v8 }
 0x238   : > { %1682 = vmatmul.f32.gmra.mxu2 %v1597_v59  ;;  %v1789_v59 = vld [vmem:[#allocation2 + $0xc8] sm:$0xff] }
 0x239   : > { %1861 = vmatmul.f32.gmra.mxu3 %v1786_v11  ;;  %v5380_v42 = vpop.f32.mrf.mxu0 }
 0x23b   : > { %2070 = vmatmul.f32.gmra.mxu0 %v1985_v37 }
 0x23c   : > { %v1133_v54 = vpop.f32.mrf.mxu3 }
 0x23d   : > { %v1187_v1 = vadd.f32 %v1133_v54, %v993_v0  ;;  %v954_v10 = vpop.f32.mrf.mxu2  ;;  %v1788_v0 = vld [vmem:[#allocation2 + $0xb0] sm:$0xff]  ;;  %v5392_v54 = vpop.f32.mrf.mxu1 }
 0x23e   : > { %v998_v6 = vadd.f32 %v954_v10, %v5094_v31 }
 0x23f   : > { %v5378_v30 = vadd.f32 %v5342_v33, %v1187_v1  ;;  %v1599_v1 = vld [vmem:[#allocation2 + $0x107] sm:$0xff] }
 0x240   : > { %1685 = vmatmul.f32.gmra.mxu2 %v1598_v15 }
 0x241   : > { %1864 = vmatmul.f32.gmra.mxu3 %v1787_v17  ;;  %v5388_v33 = vpop.f32.mrf.mxu0 }
 0x243   : > { %2073 = vmatmul.f32.gmra.mxu0 %v5092_v36 }
 0x244   : > { %v1136_v8 = vpop.f32.mrf.mxu3 }
 0x245   : > { %v1188_v61 = vadd.f32 %v1136_v8, %v994_v58  ;;  %v957_v2 = vpop.f32.mrf.mxu2 }
 0x246   : > { %v999_v27 = vadd.f32 %v957_v2, %v5106_v20  ;;  %v5401_v20 = vpop.f32.mrf.mxu1  ;;  %v6748_v2 = vld [vmem:[#allocation14_spill] sm:$0xff] }
 0x247   : > { %v5386_v11 = vadd.f32 %v5350_v50, %v1188_v61  ;;  %v1600_v61 = vld [vmem:[#allocation2 + $0x10f] sm:$0xff] }
 0x248   : > { %1688 = vmatmul.f32.gmra.mxu2 %v1599_v1  ;;  %v1601_v1 = vld [vmem:[#allocation2 + $0x127] sm:$0xff] }
 0x249   : > { %1867 = vmatmul.f32.gmra.mxu3 %v1788_v0  ;;  %v5397_v17 = vpop.f32.mrf.mxu0  ;;  %v2388_v0 = vld [vmem:[#allocation9 + $0x88] sm:$0xff] }
 0x24a   : > { %2417 = vmatpush.msra.mxu1 %v2388_v0 }
 0x24b   : > { %2076 = vmatmul.f32.gmra.mxu0 %v5104_v32  ;;  %v6749_v32 = vld [vmem:[#allocation16_spill] sm:$0xff] }
 0x24c   : > { %v1139_v31 = vpop.f32.mrf.mxu3 }
 0x24d   : > { %v1189_v58 = vadd.f32 %v1139_v31, %v995_v25  ;;  %v960_v37 = vpop.f32.mrf.mxu2  ;;  %v1790_v25 = vld [vmem:[#allocation2 + $0xd0] sm:$0xff] }
 0x24e   : > { %v1000_v36 = vadd.f32 %v960_v37, %v5120_v18 }
 0x24f   : > { %v5395_v50 = vadd.f32 %v5358_v12, %v1189_v58 }
 0x250   : > { %1691 = vmatmul.f32.gmra.mxu2 %v1600_v61  ;;  %v6752_v61 = vld [vmem:[#allocation17_spill] sm:$0xff] }
 0x251   : > { %1870 = vmatmul.f32.gmra.mxu3 %v1789_v59  ;;  %v5406_v12 = vpop.f32.mrf.mxu0  ;;  %v5410_v59 = vpop.f32.mrf.mxu1 }
 0x253   : > { %2079 = vmatmul.f32.gmra.mxu0 %v6748_v2  ;;  %v1602_v2 = vld [vmem:[#allocation2 + $0x12f] sm:$0xff] }
 0x254   : > { %v1142_v10 = vpop.f32.mrf.mxu3 }
 0x255   : > { %v1190_v8 = vadd.f32 %v1142_v10, %v996_v39  ;;  %v963_v23 = vpop.f32.mrf.mxu2  ;;  %v1791_v39 = vld [vmem:[#allocation2 + $0xe8] sm:$0xff] }
 0x256   : > { %v1001_v18 = vadd.f32 %v963_v23, %v6749_v32 }
 0x257   : > { %v5404_v15 = vadd.f32 %v5366_v43, %v1190_v8  ;;  %v6751_v8 = vld [vmem:[#allocation15_spill] sm:$0xff] }
 0x258   : > { %1694 = vmatmul.f32.gmra.mxu2 %v1601_v1 }
 0x259   : > { %1873 = vmatmul.f32.gmra.mxu3 %v1790_v25  ;;  %v5415_v37 = vpop.f32.mrf.mxu0 }
 0x25b   : > { %2082 = vmatmul.f32.gmra.mxu0 %v6751_v8  ;;  %v5428_v8 = vld [vmem:[#allocation2 + $0x8] sm:$0xff] }
 0x25c   : > { %v1145_v31 = vpop.f32.mrf.mxu3 }
 0x25d   : > { %v1191_v58 = vadd.f32 %v1145_v31, %v997_v41  ;;  %v966_v10 = vpop.f32.mrf.mxu2  ;;  %v1792_v41 = vld [vmem:[#allocation2 + $0xf0] sm:$0xff] }
 0x25e   : > { %v1002_v25 = vadd.f32 %v966_v10, %v6752_v61 }
 0x25f   : > { %v5413_v43 = vadd.f32 %v5374_v3, %v1191_v58  ;;  %v5424_v3 = vpop.f32.mrf.mxu1  ;;  %v2387_v58 = vld [vmem:[#allocation9 + $0x80] sm:$0xff] }
 0x260   : > { %1697 = vmatmul.f32.gmra.mxu2 %v1602_v2  ;;  %2418 = vmatpush.msra.mxu1 %v2387_v58  ;;  %v1793_v2 = vld [vmem:[#allocation2 + $0x108] sm:$0xff] }
 0x261   : > { %6750 = vst [vmem:[#allocation14_spill] sm:$0xff] %v5413_v43  ;;  %1876 = vmatmul.f32.gmra.mxu3 %v1791_v39  ;;  %v5422_v31 = vpop.f32.mrf.mxu0  ;;  %v6754_v39 = vld [vmem:[#allocation18_spill] sm:$0xff]  ;;  %2419 = vmatmul.f32.vlgmr.msra.gmra.mxu1 %v5428_v8 }
 0x263   : > { %2085 = vmatmul.f32.gmra.mxu0 %v5148_v24 }
 0x264   : > { %v1148_v0 = vpop.f32.mrf.mxu3 }
 0x265   : > { %v1192_v23 = vadd.f32 %v1148_v0, %v998_v6  ;;  %v969_v1 = vpop.f32.mrf.mxu2  ;;  %v2677_v0 = vld [vmem:[#allocation9 + $0x178] sm:$0xff] }
 0x266   : > { %v1003_v10 = vadd.f32 %v969_v1, %v6754_v39  ;;  %2678 = vmatpush.msrb.mxu3 %v2677_v0  ;;  %v1794_v39 = vld [vmem:[#allocation2 + $0x110] sm:$0xff] }
 0x267   : > { %v5420_v32 = vadd.f32 %v5380_v42, %v1192_v23  ;;  %v2353_v42 = vld [vmem:[#allocation9 + $0x78] sm:$0xff]  ;;  %v1603_v23 = vld [vmem:[#allocation2 + $0x147] sm:$0xff]  ;;  %v5437_v58 = vpop.f32.mrf.mxu1 }
 0x268   : > { %2516 = vmatpush.msrb.mxu2 %v2353_v42 }
 0x269   : > { %6753 = vst [vmem:[#allocation16_spill] sm:$0xff] %v5420_v32  ;;  %1879 = vmatmul.f32.gmra.mxu3 %v1792_v41  ;;  %v5434_v32 = vpop.f32.mrf.mxu0  ;;  %1700 = vmatmul.f32.gmra.mxu2 %v1603_v23 }
 0x26a   : > { %2422 = vmatmul.f32.gmra.mxu1 %v5428_v8 }
 0x26b   : > { %2088 = vmatmul.f32.gmra.mxu0 %v5163_v62 }
 0x26c   : > { %v1151_v6 = vpop.f32.mrf.mxu3 }
 0x26d   : > { %v1193_v61 = vadd.f32 %v1151_v6, %v999_v27  ;;  %v1653_v24 = vpop.f32.mrf.mxu2 }
 0x26f   : > { %v5432_v41 = vadd.f32 %v5388_v33, %v1193_v61  ;;  %v1604_v33 = vld [vmem:[#allocation2 + $0x14f] sm:$0xff]  ;;  %v5446_v0 = vpop.f32.mrf.mxu1 }
 0x271   : > { %6755 = vst [vmem:[#allocation15_spill] sm:$0xff] %v5432_v41  ;;  %1882 = vmatmul.f32.gmra.mxu3 %v1793_v2  ;;  %v5443_v42 = vpop.f32.mrf.mxu0  ;;  %1703 = vmatmul.f32.gmra.mxu2 %v1604_v33  ;;  %v1795_v2 = vld [vmem:[#allocation2 + $0x128] sm:$0xff] }
 0x273   : > { %2091 = vmatmul.f32.gmra.mxu0 %v5176_v29 }
 0x274   : > { %v1154_v27 = vpop.f32.mrf.mxu3 }
 0x275   : > { %v1194_v1 = vadd.f32 %v1154_v27, %v1000_v36  ;;  %v1656_v62 = vpop.f32.mrf.mxu2  ;;  %v2871_v36 = vld [vmem:[#allocation9 + $0x1f8] sm:$0xff] }
 0x276   : > { %v3065_v27 = vld [vmem:[#allocation9 + $0x278] sm:$0xff]  ;;  %2872 = vmatpush.msrb.mxu0 %v2871_v36 }
 0x277   : > { %v5441_v6 = vadd.f32 %v5397_v17, %v1194_v1  ;;  %3066 = vmatpush.msrb.mxu1 %v3065_v27  ;;  %v1605_v1 = vld [vmem:[#allocation2 + $0x167] sm:$0xff] }
 0x278   : > { %v1797_v27 = vld [vmem:[#allocation2 + $0x148] sm:$0xff] }
 0x279   : > { %6756 = vst [vmem:[#allocation17_spill] sm:$0xff] %v5441_v6  ;;  %1885 = vmatmul.f32.gmra.mxu3 %v1794_v39  ;;  %v5451_v17 = vpop.f32.mrf.mxu0  ;;  %1706 = vmatmul.f32.gmra.mxu2 %v1605_v1 }
 0x27b   : > { %2094 = vmatmul.f32.gmra.mxu0 %v5190_v13 }
 0x27c   : > { %v1157_v61 = vpop.f32.mrf.mxu3 }
 0x27d   : > { %v1195_v23 = vadd.f32 %v1157_v61, %v1001_v18  ;;  %v5454_v39 = vpop.f32.mrf.mxu2  ;;  %v1796_v18 = vld [vmem:[#allocation2 + $0x130] sm:$0xff]  ;;  %v5456_v61 = vpop.f32.mrf.mxu1 }
 0x27f   : > { %v5449_v41 = vadd.f32 %v5406_v12, %v1195_v23  ;;  %v2352_v23 = vld [vmem:[#allocation9 + $0x70] sm:$0xff] }
 0x280   : > { %2517 = vmatpush.msrb.mxu2 %v2352_v23 }
 0x281   : > { %6757 = vst [vmem:[#allocation18_spill] sm:$0xff] %v5449_v41  ;;  %1888 = vmatmul.f32.gmra.mxu3 %v1795_v2  ;;  %v2676_v41 = vld [vmem:[#allocation9 + $0x170] sm:$0xff]  ;;  %v5461_v6 = vpop.f32.mrf.mxu0 }
 0x282   : > { %2679 = vmatpush.msrb.mxu3 %v2676_v41  ;;  %v1606_v2 = vld [vmem:[#allocation2 + $0x16f] sm:$0xff]  ;;  %v1607_v41 = vld [vmem:[#allocation2 + $0x187] sm:$0xff] }
 0x283   : > { %1709 = vmatmul.f32.gmra.mxu2 %v1606_v2  ;;  %2097 = vmatmul.f32.gmra.mxu0 %v5204_v47  ;;  %v1749_v47 = vadd.f32 %v1653_v24, %v5185_v60  ;;  %v5480_v2 = vld [vmem:[%s6725_s3] ss:$0 sm:$0xff]  ;;  %v2351_v60 = vld [vmem:[#allocation9 + $0x68] sm:$0xff] }
 0x284   : > { %v1160_v29 = vpop.f32.mrf.mxu3  ;;  %v2675_v24 = vld [vmem:[#allocation9 + $0x168] sm:$0xff]  ;;  %2518 = vmatpush.msrb.mxu2 %v2351_v60 }
 0x285   : > { %v1196_v33 = vadd.f32 %v1160_v29, %v1002_v25  ;;  %v5464_v36 = vpop.f32.mrf.mxu2  ;;  %v3064_v29 = vld [vmem:[#allocation9 + $0x270] sm:$0xff]  ;;  %v5471_v23 = vpop.f32.mrf.mxu1  ;;  %2680 = vmatpush.msrb.mxu3 %v2675_v24  ;;  %v1799_v60 = vld [vmem:[#allocation2 + $0x168] sm:$0xff] }
 0x286   : > { %3067 = vmatpush.msrb.mxu1 %v3064_v29 }
 0x287   : > { %v5459_v12 = vadd.f32 %v5415_v37, %v1196_v33  ;;  %v2870_v37 = vld [vmem:[#allocation9 + $0x1f0] sm:$0xff] }
 0x288   : > { %2873 = vmatpush.msrb.mxu0 %v2870_v37  ;;  %v1608_v37 = vld [vmem:[#allocation2 + $0x18f] sm:$0xff] }
 0x289   : > { %6758 = vst [vmem:[#allocation19_spill] sm:$0xff] %v5459_v12  ;;  %1891 = vmatmul.f32.gmra.mxu3 %v1796_v18  ;;  %v5469_v33 = vpop.f32.mrf.mxu0 }
 0x28b   : > { %1712 = vmatmul.f32.gmra.mxu2 %v1607_v41  ;;  %2100 = vmatmul.f32.gmra.mxu0 %v5218_v63  ;;  %v1750_v41 = vadd.f32 %v1656_v62, %v5199_v9  ;;  %v1997_v62 = vld [vmem:[#allocation2 + $0x1a9] sm:$0xff] }
 0x28c   : > { %v1163_v13 = vpop.f32.mrf.mxu3 }
 0x28d   : > { %v1197_v25 = vadd.f32 %v1163_v13, %v1003_v10  ;;  %v5475_v18 = vpop.f32.mrf.mxu2  ;;  %v1798_v13 = vld [vmem:[#allocation2 + $0x150] sm:$0xff] }
 0x28f   : > { %v5467_v1 = vadd.f32 %v5422_v31, %v1197_v25 }
 0x291   : > { %6759 = vst [vmem:[#allocation20_spill] sm:$0xff] %v5467_v1  ;;  %1894 = vmatmul.f32.gmra.mxu3 %v1797_v27  ;;  %v5486_v27 = vld [vmem:[%s6726_s4] ss:$0 sm:$0xff]  ;;  %v5488_v63 = vpop.f32.mrf.mxu0 }
 0x293   : > { %1715 = vmatmul.f32.gmra.mxu2 %v1608_v37  ;;  %2103 = vmatmul.f32.gmra.mxu0 %v5232_v21  ;;  %v1609_v21 = vld [vmem:[#allocation2 + $0x1a7] sm:$0xff] }
 0x294   : > { %v1847_v10 = vpop.f32.mrf.mxu3 }
 0x295   : > { %v1943_v31 = vadd.f32 %v1847_v10, %v1749_v47 }
 0x297   : > { %v2137_v25 = vadd.f32 %v5434_v32, %v1943_v31  ;;  %v5493_v32 = vpop.f32.mrf.mxu1  ;;  %v5496_v31 = vpop.f32.mrf.mxu2 }
 0x299   : > { %v2173_v29 = vmul.f32 %v5480_v2, %v2137_v25  ;;  %1897 = vmatmul.f32.gmra.mxu3 %v1798_v13  ;;  %v2869_v13 = vld [vmem:[#allocation9 + $0x1e8] sm:$0xff]  ;;  %v5499_v9 = vpop.f32.mrf.mxu0 }
 0x29a   : > { %v3063_v25 = vld [vmem:[#allocation9 + $0x268] sm:$0xff]  ;;  %2874 = vmatpush.msrb.mxu0 %v2869_v13  ;;  %v1800_v13 = vld [vmem:[#allocation2 + $0x170] sm:$0xff] }
 0x29b   : > { %v2209_v47 = vadd.f32 %v5486_v27, %v2173_v29  ;;  %3068 = vmatpush.msrb.mxu1 %v3063_v25  ;;  %v1751_v29 = vadd.f32 %v5454_v39, %v5213_v14  ;;  %1718 = vmatmul.f32.gmra.mxu2 %v1609_v21  ;;  %v1610_v14 = vld [vmem:[#allocation2 + $0x1af] sm:$0xff] }
 0x29c   : > { %v1850_v10 = vpop.f32.mrf.mxu3  ;;  %2106 = vmatmul.f32.gmra.mxu0 %v1997_v62  ;;  %v1998_v39 = vld [vmem:[#allocation2 + $0x1b1] sm:$0xff]  ;;  %v1752_v62 = vadd.f32 %v5464_v36, %v5227_v5  ;;  %v1611_v5 = vld [vmem:[#allocation2 + $0x1c7] sm:$0xff] }
 0x29d   : > { %v2241_v1 = vmax.f32 %v2209_v47, 0.0  ;;  %v1944_v12 = vadd.f32 %v1850_v10, %v1750_v41  ;;  %v1999_v36 = vld [vmem:[#allocation2 + $0x1c9] sm:$0xff] }
 0x29f   : > { %2274 = vst [vmem:[#allocation3 + $0x28] sm:$0xff] %v2241_v1  ;;  %v2138_v24 = vadd.f32 %v5443_v42, %v1944_v12  ;;  %2425 = vmatmul.f32.gmra.mxu1 %v2241_v1  ;;  %v5505_v12 = vpop.f32.mrf.mxu2  ;;  %v5507_v1 = vpop.f32.mrf.mxu1 }
 0x2a1   : > { %v2174_v37 = vmul.f32 %v5480_v2, %v2138_v24  ;;  %1900 = vmatmul.f32.gmra.mxu3 %v1799_v60  ;;  %v2350_v60 = vld [vmem:[#allocation9 + $0x60] sm:$0xff]  ;;  %v5510_v43 = vpop.f32.mrf.mxu0 }
 0x2a2   : > { %v2674_v24 = vld [vmem:[#allocation9 + $0x160] sm:$0xff]  ;;  %2519 = vmatpush.msrb.mxu2 %v2350_v60 }
 0x2a3   : > { %v2210_v41 = vadd.f32 %v5486_v27, %v2174_v37  ;;  %2681 = vmatpush.msrb.mxu3 %v2674_v24  ;;  %1721 = vmatmul.f32.gmra.mxu2 %v1610_v14 }
 0x2a4   : > { %v1853_v42 = vpop.f32.mrf.mxu3  ;;  %2109 = vmatmul.f32.gmra.mxu0 %v1998_v39  ;;  %v1753_v39 = vadd.f32 %v5475_v18, %v5241_v16  ;;  %v1612_v16 = vld [vmem:[#allocation2 + $0x1cf] sm:$0xff] }
 0x2a5   : > { %v2242_v47 = vmax.f32 %v2210_v41, 0.0  ;;  %v1945_v10 = vadd.f32 %v1853_v42, %v1751_v29  ;;  %v2000_v18 = vld [vmem:[#allocation2 + $0x1d1] sm:$0xff] }
 0x2a7   : > { %2275 = vst [vmem:[#allocation3 + $0x30] sm:$0xff] %v2242_v47  ;;  %v2139_v25 = vadd.f32 %v5451_v17, %v1945_v10  ;;  %2428 = vmatmul.f32.gmra.mxu1 %v2242_v47  ;;  %v5516_v29 = vpop.f32.mrf.mxu2  ;;  %v1801_v47 = vld [vmem:[#allocation2 + $0x188] sm:$0xff]  ;;  %v5518_v10 = vpop.f32.mrf.mxu1 }
 0x2a9   : > { %v2175_v21 = vmul.f32 %v5480_v2, %v2139_v25  ;;  %1903 = vmatmul.f32.gmra.mxu3 %v1800_v13  ;;  %v2868_v13 = vld [vmem:[#allocation9 + $0x1e0] sm:$0xff]  ;;  %v5521_v24 = vpop.f32.mrf.mxu0 }
 0x2aa   : > { %v3062_v25 = vld [vmem:[#allocation9 + $0x260] sm:$0xff]  ;;  %2875 = vmatpush.msrb.mxu0 %v2868_v13  ;;  %v2349_v13 = vld [vmem:[#allocation9 + $0x58] sm:$0xff] }
 0x2ab   : > { %v2211_v37 = vadd.f32 %v5486_v27, %v2175_v21  ;;  %3069 = vmatpush.msrb.mxu1 %v3062_v25  ;;  %1724 = vmatmul.f32.gmra.mxu2 %v1611_v5 }
 0x2ac   : > { %v1856_v17 = vpop.f32.mrf.mxu3  ;;  %2112 = vmatmul.f32.gmra.mxu0 %v1999_v36  ;;  %2520 = vmatpush.msrb.mxu2 %v2349_v13  ;;  %v1754_v36 = vadd.f32 %v5496_v31, %v5252_v40  ;;  %v2867_v13 = vld [vmem:[#allocation9 + $0x1d8] sm:$0xff]  ;;  %v1613_v40 = vld [vmem:[#allocation2 + $0x1e7] sm:$0xff] }
 0x2ad   : > { %v2243_v41 = vmax.f32 %v2211_v37, 0.0  ;;  %v1946_v42 = vadd.f32 %v1856_v17, %v1752_v62  ;;  %2876 = vmatpush.msrb.mxu0 %v2867_v13  ;;  %v2001_v31 = vld [vmem:[#allocation2 + $0x1e9] sm:$0xff] }
 0x2af   : > { %2276 = vst [vmem:[#allocation3 + $0x48] sm:$0xff] %v2243_v41  ;;  %v2140_v60 = vadd.f32 %v5461_v6, %v1946_v42  ;;  %2431 = vmatmul.f32.gmra.mxu1 %v2243_v41  ;;  %v5527_v62 = vpop.f32.mrf.mxu2  ;;  %v1802_v41 = vld [vmem:[#allocation2 + $0x190] sm:$0xff]  ;;  %v5532_v25 = vpop.f32.mrf.mxu1 }
 0x2b1   : > { %v2176_v14 = vmul.f32 %v5480_v2, %v2140_v60  ;;  %1906 = vmatmul.f32.gmra.mxu3 %v1801_v47  ;;  %v2673_v60 = vld [vmem:[#allocation9 + $0x158] sm:$0xff]  ;;  %v5530_v47 = vpop.f32.mrf.mxu0 }
 0x2b2   : > { %2682 = vmatpush.msrb.mxu3 %v2673_v60 }
 0x2b3   : > { %v2212_v21 = vadd.f32 %v5486_v27, %v2176_v14  ;;  %1727 = vmatmul.f32.gmra.mxu2 %v1612_v16  ;;  %v1755_v16 = vadd.f32 %v5505_v12, %v5263_v19  ;;  %v1614_v19 = vld [vmem:[#allocation2 + $0x1ef] sm:$0xff] }
 0x2b4   : > { %v1859_v6 = vpop.f32.mrf.mxu3  ;;  %2115 = vmatmul.f32.gmra.mxu0 %v2000_v18  ;;  %v2002_v12 = vld [vmem:[#allocation2 + $0x1f1] sm:$0xff] }
 0x2b5   : > { %v2244_v37 = vmax.f32 %v2212_v21, 0.0  ;;  %v1947_v17 = vadd.f32 %v1859_v6, %v1753_v39 }
 0x2b7   : > { %2277 = vst [vmem:[#allocation3 + $0x50] sm:$0xff] %v2244_v37  ;;  %v2141_v42 = vadd.f32 %v5469_v33, %v1947_v17  ;;  %2434 = vmatmul.f32.gmra.mxu1 %v2244_v37  ;;  %v5538_v39 = vpop.f32.mrf.mxu2  ;;  %v1803_v37 = vld [vmem:[#allocation2 + $0x1a8] sm:$0xff]  ;;  %v5546_v18 = vpop.f32.mrf.mxu1 }
 0x2b9   : > { %v2177_v5 = vmul.f32 %v5480_v2, %v2141_v42  ;;  %1909 = vmatmul.f32.gmra.mxu3 %v1802_v41  ;;  %v3061_v42 = vld [vmem:[#allocation9 + $0x258] sm:$0xff]  ;;  %v5541_v41 = vpop.f32.mrf.mxu0 }
 0x2ba   : > { %3070 = vmatpush.msrb.mxu1 %v3061_v42 }
 0x2bb   : > { %v2213_v33 = vadd.f32 %v5486_v27, %v2177_v5  ;;  %1730 = vmatmul.f32.gmra.mxu2 %v1613_v40  ;;  %v1756_v40 = vadd.f32 %v5516_v29, %v5274_v44  ;;  %v2866_v44 = vld [vmem:[#allocation9 + $0x1d0] sm:$0xff] }
 0x2bc   : > { %v1862_v14 = vpop.f32.mrf.mxu3  ;;  %2118 = vmatmul.f32.gmra.mxu0 %v2001_v31  ;;  %v3060_v29 = vld [vmem:[#allocation9 + $0x250] sm:$0xff] }
 0x2bd   : > { %v2245_v21 = vmax.f32 %v2213_v33, 0.0  ;;  %v1948_v6 = vadd.f32 %v1862_v14, %v1754_v36  ;;  %2877 = vmatpush.msrb.mxu0 %v2866_v44  ;;  %3071 = vmatpush.msrb.mxu1 %v3060_v29  ;;  %v2004_v44 = vld [vmem:[#allocation2 + $0x211] sm:$0xff] }
 0x2bf   : > { %2278 = vst [vmem:[#allocation3 + $0x68] sm:$0xff] %v2245_v21  ;;  %v2142_v17 = vadd.f32 %v5488_v63, %v1948_v6  ;;  %2437 = vmatmul.f32.gmra.mxu1 %v2245_v21  ;;  %v5549_v36 = vpop.f32.mrf.mxu2  ;;  %v1804_v21 = vld [vmem:[#allocation2 + $0x1b0] sm:$0xff] }
 0x2c1   : > { %v2178_v60 = vmul.f32 %v5480_v2, %v2142_v17  ;;  %1912 = vmatmul.f32.gmra.mxu3 %v1803_v37  ;;  %v2348_v37 = vld [vmem:[#allocation9 + $0x50] sm:$0xff]  ;;  %v5552_v13 = vpop.f32.mrf.mxu0 }
 0x2c2   : > { %v2672_v17 = vld [vmem:[#allocation9 + $0x150] sm:$0xff]  ;;  %2521 = vmatpush.msrb.mxu2 %v2348_v37  ;;  %v1615_v37 = vld [vmem:[#allocation2 + $0x207] sm:$0xff] }
 0x2c3   : > { %v2214_v63 = vadd.f32 %v5486_v27, %v2178_v60  ;;  %2683 = vmatpush.msrb.mxu3 %v2672_v17  ;;  %1733 = vmatmul.f32.gmra.mxu2 %v1614_v19  ;;  %v2003_v17 = vld [vmem:[#allocation2 + $0x209] sm:$0xff] }
 0x2c4   : > { %v1865_v5 = vpop.f32.mrf.mxu3  ;;  %2121 = vmatmul.f32.gmra.mxu0 %v2002_v12 }
 0x2c5   : > { %v2246_v33 = vmax.f32 %v2214_v63, 0.0  ;;  %v1949_v14 = vadd.f32 %v1865_v5, %v1755_v16  ;;  %v5560_v16 = vpop.f32.mrf.mxu1 }
 0x2c7   : > { %2279 = vst [vmem:[#allocation3 + $0x70] sm:$0xff] %v2246_v33  ;;  %v2143_v6 = vadd.f32 %v5499_v9, %v1949_v14  ;;  %2440 = vmatmul.f32.gmra.mxu1 %v2246_v33  ;;  %v5558_v60 = vpop.f32.mrf.mxu2  ;;  %v1805_v33 = vld [vmem:[#allocation2 + $0x1c8] sm:$0xff]  ;;  %v1562_v14 = vadd.f32 %v5344_v4, %v5282_v55 }
 0x2c9   : > { %v2179_v42 = vmul.f32 %v5480_v2, %v2143_v6  ;;  %1915 = vmatmul.f32.gmra.mxu3 %v1804_v21  ;;  %v5565_v6 = vpop.f32.mrf.mxu0  ;;  %v1757_v12 = vadd.f32 %v5527_v62, %v1562_v14  ;;  %v2347_v62 = vld [vmem:[#allocation9 + $0x48] sm:$0xff] }
 0x2ca   : > { %2522 = vmatpush.msrb.mxu2 %v2347_v62  ;;  %v1617_v62 = vld [vmem:[#allocation2 + $0x227] sm:$0xff] }
 0x2cb   : > { %v2215_v31 = vadd.f32 %v5486_v27, %v2179_v42  ;;  %1736 = vmatmul.f32.gmra.mxu2 %v1615_v37 }
 0x2cc   : > { %v1868_v9 = vpop.f32.mrf.mxu3  ;;  %2124 = vmatmul.f32.gmra.mxu0 %v2003_v17 }
 0x2cd   : > { %v2247_v63 = vmax.f32 %v2215_v31, 0.0  ;;  %v1950_v5 = vadd.f32 %v1868_v9, %v1756_v40  ;;  %v1806_v31 = vld [vmem:[#allocation2 + $0x1d0] sm:$0xff]  ;;  %v1563_v9 = vadd.f32 %v5353_v48, %v5291_v26 }
 0x2cf   : > { %2280 = vst [vmem:[#allocation3 + $0x88] sm:$0xff] %v2247_v63  ;;  %v2144_v21 = vadd.f32 %v5510_v43, %v1950_v5  ;;  %2443 = vmatmul.f32.gmra.mxu1 %v2247_v63  ;;  %v5570_v43 = vpop.f32.mrf.mxu2  ;;  %v5574_v63 = vpop.f32.mrf.mxu1  ;;  %v1758_v37 = vadd.f32 %v5538_v39, %v1563_v9  ;;  %v3059_v39 = vld [vmem:[#allocation9 + $0x248] sm:$0xff]  ;;  %v2670_v9 = vld [vmem:[#allocation9 + $0x140] sm:$0xff] }
 0x2d0   : > { %3072 = vmatpush.msrb.mxu1 %v3059_v39  ;;  %v2861_v39 = vld [vmem:[#allocation9 + $0x1a8] sm:$0xff] }
 0x2d1   : > { %v2180_v19 = vmul.f32 %v5480_v2, %v2144_v21  ;;  %1918 = vmatmul.f32.gmra.mxu3 %v1805_v33  ;;  %v2671_v33 = vld [vmem:[#allocation9 + $0x148] sm:$0xff]  ;;  %v5577_v14 = vpop.f32.mrf.mxu0 }
 0x2d2   : > { %2684 = vmatpush.msrb.mxu3 %v2671_v33  ;;  %v1616_v21 = vld [vmem:[#allocation2 + $0x20f] sm:$0xff] }
 0x2d3   : > { %v2216_v55 = vadd.f32 %v5486_v27, %v2180_v19  ;;  %1739 = vmatmul.f32.gmra.mxu2 %v1616_v21  ;;  %v2005_v33 = vld [vmem:[#allocation2 + $0x229] sm:$0xff] }
 0x2d4   : > { %v1871_v4 = vpop.f32.mrf.mxu3  ;;  %2127 = vmatmul.f32.gmra.mxu0 %v2004_v44  ;;  %2685 = vmatpush.msrb.mxu3 %v2670_v9  ;;  %v1565_v9 = vadd.f32 %v5369_v45, %v5308_v52  ;;  %v2341_v52 = vld [vmem:[#allocation9 + $0x18] sm:$0xff] }
 0x2d5   : > { %v2248_v42 = vmax.f32 %v2216_v55, 0.0  ;;  %v1951_v40 = vadd.f32 %v1871_v4, %v1757_v12  ;;  %v2865_v12 = vld [vmem:[#allocation9 + $0x1c8] sm:$0xff]  ;;  %v1564_v4 = vadd.f32 %v5361_v38, %v5300_v49  ;;  %v2345_v38 = vld [vmem:[#allocation9 + $0x38] sm:$0xff] }
 0x2d6   : > { %v1807_v55 = vld [vmem:[#allocation2 + $0x1e8] sm:$0xff]  ;;  %2878 = vmatpush.msrb.mxu0 %v2865_v12  ;;  %v2665_v45 = vld [vmem:[#allocation9 + $0x118] sm:$0xff] }
 0x2d7   : > { %2281 = vst [vmem:[#allocation3 + $0x90] sm:$0xff] %v2248_v42  ;;  %v2145_v5 = vadd.f32 %v5521_v24, %v1951_v40  ;;  %2446 = vmatmul.f32.gmra.mxu1 %v2248_v42  ;;  %v5582_v24 = vpop.f32.mrf.mxu2  ;;  %v2346_v40 = vld [vmem:[#allocation9 + $0x40] sm:$0xff]  ;;  %v5589_v21 = vpop.f32.mrf.mxu1  ;;  %v1759_v49 = vadd.f32 %v5549_v36, %v1564_v4  ;;  %v2343_v4 = vld [vmem:[#allocation9 + $0x28] sm:$0xff] }
 0x2d8   : > { %2523 = vmatpush.msrb.mxu2 %v2346_v40  ;;  %v1808_v40 = vld [vmem:[#allocation2 + $0x1f0] sm:$0xff] }
 0x2d9   : > { %v2181_v29 = vmul.f32 %v5480_v2, %v2145_v5  ;;  %1921 = vmatmul.f32.gmra.mxu3 %v1806_v31  ;;  %v5587_v31 = vpop.f32.mrf.mxu0  ;;  %v2864_v5 = vld [vmem:[#allocation9 + $0x1c0] sm:$0xff] }
 0x2da   : > { %2879 = vmatpush.msrb.mxu0 %v2864_v5  ;;  %2524 = vmatpush.msrb.mxu2 %v2345_v38  ;;  %v1618_v38 = vld [vmem:[#allocation2 + $0x22f] sm:$0xff] }
 0x2db   : > { %v2217_v26 = vadd.f32 %v5486_v27, %v2181_v29  ;;  %v2863_v29 = vld [vmem:[#allocation9 + $0x1b8] sm:$0xff]  ;;  %1742 = vmatmul.f32.gmra.mxu2 %v1617_v62 }
 0x2dc   : > { %v1874_v48 = vpop.f32.mrf.mxu3  ;;  %2130 = vmatmul.f32.gmra.mxu0 %v2005_v33  ;;  %v2342_v33 = vld [vmem:[#allocation9 + $0x20] sm:$0xff] }
 0x2dd   : > { %v2249_v17 = vmax.f32 %v2217_v26, 0.0  ;;  %v1952_v19 = vadd.f32 %v1874_v48, %v1758_v37  ;;  %v2344_v26 = vld [vmem:[#allocation9 + $0x30] sm:$0xff]  ;;  %2880 = vmatpush.msrb.mxu0 %v2863_v29 }
 0x2de   : > { %v2668_v48 = vld [vmem:[#allocation9 + $0x130] sm:$0xff]  ;;  %2525 = vmatpush.msrb.mxu2 %v2344_v26 }
 0x2df   : > { %2282 = vst [vmem:[#allocation3 + $0xa8] sm:$0xff] %v2249_v17  ;;  %v2146_v42 = vadd.f32 %v5530_v47, %v1952_v19  ;;  %2449 = vmatmul.f32.gmra.mxu1 %v2249_v17  ;;  %v2669_v47 = vld [vmem:[#allocation9 + $0x138] sm:$0xff]  ;;  %v2862_v17 = vld [vmem:[#allocation9 + $0x1b0] sm:$0xff]  ;;  %v5594_v12 = vpop.f32.mrf.mxu2  ;;  %v5603_v26 = vpop.f32.mrf.mxu1 }
 0x2e0   : > { %2686 = vmatpush.msrb.mxu3 %v2669_v47  ;;  %2881 = vmatpush.msrb.mxu0 %v2862_v17  ;;  %v2006_v47 = vld [vmem:[#allocation2 + $0x231] sm:$0xff] }
 0x2e1   : > { %v2182_v44 = vmul.f32 %v5480_v2, %v2146_v42  ;;  %1924 = vmatmul.f32.gmra.mxu3 %v1807_v55  ;;  %v2667_v42 = vld [vmem:[#allocation9 + $0x128] sm:$0xff]  ;;  %v5599_v62 = vpop.f32.mrf.mxu0  ;;  %2526 = vmatpush.msrb.mxu2 %v2343_v4  ;;  %v2340_v17 = vld [vmem:[#allocation9 + $0x10] sm:$0xff] }
 0x2e2   : > { %2687 = vmatpush.msrb.mxu3 %v2668_v48  ;;  %2882 = vmatpush.msrb.mxu0 %v2861_v39  ;;  %v2339_v39 = vld [vmem:[#allocation9 + $0x8] sm:$0xff] }
 0x2e3   : > { %v2218_v37 = vadd.f32 %v5486_v27, %v2182_v44  ;;  %v2666_v44 = vld [vmem:[#allocation9 + $0x120] sm:$0xff]  ;;  %2527 = vmatpush.msrb.mxu2 %v2342_v33 }
 0x2e4   : > { %v1877_v19 = vpop.f32.mrf.mxu3  ;;  %2688 = vmatpush.msrb.mxu3 %v2667_v42  ;;  %1745 = vmatmul.f32.gmra.mxu2 %v1618_v38  ;;  %v2663_v38 = vld [vmem:[#allocation9 + $0x108] sm:$0xff] }
 0x2e5   : > { %v2250_v55 = vmax.f32 %v2218_v37, 0.0  ;;  %v1953_v36 = vadd.f32 %v1877_v19, %v1759_v49  ;;  %v2860_v49 = vld [vmem:[#allocation9 + $0x1a0] sm:$0xff]  ;;  %v1760_v37 = vadd.f32 %v5558_v60, %v1565_v9  ;;  %2133 = vmatmul.f32.gmra.mxu0 %v2006_v47  ;;  %v2664_v19 = vld [vmem:[#allocation9 + $0x110] sm:$0xff]  ;;  %2528 = vmatpush.msrb.mxu2 %v2341_v52  ;;  %v2857_v9 = vld [vmem:[#allocation9 + $0x188] sm:$0xff] }
 0x2e6   : > { %2689 = vmatpush.msrb.mxu3 %v2666_v44  ;;  %2883 = vmatpush.msrb.mxu0 %v2860_v49  ;;  %v2858_v60 = vld [vmem:[#allocation9 + $0x190] sm:$0xff]  ;;  %v3058_v44 = vld [vmem:[#allocation9 + $0x240] sm:$0xff] }
 0x2e7   : > { %2283 = vst [vmem:[#allocation3 + $0xb0] sm:$0xff] %v2250_v55  ;;  %v2147_v5 = vadd.f32 %v5541_v41, %v1953_v36  ;;  %2452 = vmatmul.f32.gmra.mxu1 %v2250_v55  ;;  %v2859_v41 = vld [vmem:[#allocation9 + $0x198] sm:$0xff]  ;;  %v5606_v36 = vpop.f32.mrf.mxu2  ;;  %2529 = vmatpush.msrb.mxu2 %v2340_v17  ;;  %v2338_v47 = vld [vmem:[#allocation9] sm:$0xff] }
 0x2e8   : > { %2690 = vmatpush.msrb.mxu3 %v2665_v45  ;;  %2884 = vmatpush.msrb.mxu0 %v2859_v41 }
 0x2e9   : > { %v2183_v29 = vmul.f32 %v5480_v2, %v2147_v5  ;;  %1927 = vmatmul.f32.gmra.mxu3 %v1808_v40  ;;  %v1809_v40 = vld [vmem:[#allocation2 + $0x208] sm:$0xff]  ;;  %v1566_v5 = vadd.f32 %v5382_v35, %v5315_v34  ;;  %v5611_v49 = vpop.f32.mrf.mxu0  ;;  %3073 = vmatpush.msrb.mxu1 %v3058_v44  ;;  %v2662_v34 = vld [vmem:[#allocation9 + $0x100] sm:$0xff] }
 0x2ea   : > { %2691 = vmatpush.msrb.mxu3 %v2664_v19  ;;  %2885 = vmatpush.msrb.mxu0 %v2858_v60  ;;  %v1810_v60 = vld [vmem:[#allocation2 + $0x210] sm:$0xff] }
 0x2eb   : > { %v2219_v48 = vadd.f32 %v5486_v27, %v2183_v29  ;;  %2530 = vmatpush.msrb.mxu2 %v2339_v39  ;;  %v2856_v29 = vld [vmem:[#allocation9 + $0x180] sm:$0xff]  ;;  %v1761_v45 = vadd.f32 %v5570_v43, %v1566_v5  ;;  %v1567_v43 = vadd.f32 %v5392_v54, %v5322_v53  ;;  %v2307_v39 = vld [vmem:[#allocation3 + $0xf] sm:$0xff] }
 0x2ec   : > { %v1880_v55 = vpop.f32.mrf.mxu3  ;;  %2886 = vmatpush.msrb.mxu0 %v2857_v9  ;;  %2692 = vmatpush.msrb.mxu3 %v2663_v38 }
 0x2ed   : > { %v2251_v4 = vmax.f32 %v2219_v48, 0.0  ;;  %v1954_v42 = vadd.f32 %v1880_v55, %v1760_v37  ;;  %v2306_v37 = vld [vmem:[#allocation3 + $0x7] sm:$0xff]  ;;  %2531 = vmatpush.msrb.mxu2 %v2338_v47  ;;  %v5618_v55 = vpop.f32.mrf.mxu1  ;;  %v1762_v9 = vadd.f32 %v5582_v24, %v1567_v43 }
 0x2ee   : > { %2887 = vmatpush.msrb.mxu0 %v2856_v29  ;;  %2532 = vmatmul.f32.vlgmr.msrb.gmra.mxu2 %v2306_v37  ;;  %v3057_v29 = vld [vmem:[#allocation9 + $0x238] sm:$0xff] }
 0x2ef   : > { %2284 = vst [vmem:[#allocation3 + $0xc8] sm:$0xff] %v2251_v4  ;;  %v2148_v33 = vadd.f32 %v5552_v13, %v1954_v42  ;;  %2455 = vmatmul.f32.gmra.mxu1 %v2251_v4  ;;  %v2823_v13 = vld [vmem:[#allocation3 + $0x27] sm:$0xff]  ;;  %2693 = vmatpush.msrb.mxu3 %v2662_v34  ;;  %v5616_v48 = vpop.f32.mrf.mxu2 }
 0x2f0   : > { %2888 = vmatmul.f32.vlgmr.msrb.gmra.mxu0 %v2823_v13  ;;  %3074 = vmatpush.msrb.mxu1 %v3057_v29 }
 0x2f1   : > { %v2184_v52 = vmul.f32 %v5480_v2, %v2148_v33  ;;  %1930 = vmatmul.f32.gmra.mxu3 %v1809_v40  ;;  %v5623_v42 = vpop.f32.mrf.mxu0  ;;  %v2824_v33 = vld [vmem:[#allocation3 + $0x2f] sm:$0xff] }
 0x2f3   : > { %v2220_v35 = vadd.f32 %v5486_v27, %v2184_v52 }
 0x2f4   : > { %v1883_v41 = vpop.f32.mrf.mxu3 }
 0x2f5   : > { %v2252_v17 = vmax.f32 %v2220_v35, 0.0  ;;  %v1955_v19 = vadd.f32 %v1883_v41, %v1761_v45  ;;  %v5635_v24 = vpop.f32.mrf.mxu1 }
 0x2f6   : > { %2535 = vmatmul.f32.gmra.mxu2 %v2307_v39  ;;  %v2826_v39 = vld [vmem:[#allocation3 + $0x4f] sm:$0xff] }
 0x2f7   : > { %2285 = vst [vmem:[#allocation3 + $0xd0] sm:$0xff] %v2252_v17  ;;  %v2149_v4 = vadd.f32 %v5565_v6, %v1955_v19  ;;  %2458 = vmatmul.f32.gmra.mxu1 %v2252_v17  ;;  %v5628_v38 = vpop.f32.mrf.mxu2  ;;  %v1568_v6 = vadd.f32 %v5401_v20, %v5328_v56  ;;  %v2825_v56 = vld [vmem:[#allocation3 + $0x47] sm:$0xff]  ;;  %v1569_v17 = vadd.f32 %v5410_v59, %v5334_v28 }
 0x2f8   : > { %2891 = vmatmul.f32.gmra.mxu0 %v2824_v33 }
 0x2f9   : > { %v2185_v40 = vmul.f32 %v5480_v2, %v2149_v4  ;;  %1933 = vmatmul.f32.gmra.mxu3 %v1810_v60  ;;  %v5633_v37 = vpop.f32.mrf.mxu0  ;;  %v1763_v45 = vadd.f32 %v5594_v12, %v1568_v6  ;;  %v1764_v43 = vadd.f32 %v5606_v36, %v1569_v17 }
 0x2fb   : > { %v2221_v5 = vadd.f32 %v5486_v27, %v2185_v40 }
 0x2fc   : > { %v1886_v44 = vpop.f32.mrf.mxu3 }
 0x2fd   : > { %v2253_v53 = vmax.f32 %v2221_v5, 0.0  ;;  %v1956_v54 = vadd.f32 %v1886_v44, %v1762_v9  ;;  %v5648_v12 = vpop.f32.mrf.mxu1  ;;  %v2629_v9 = vld [vmem:[#allocation3 + $0x9] sm:$0xff]  ;;  %v1570_v5 = vadd.f32 %v5424_v3, %v5340_v46 }
 0x2fe   : > { %2538 = vmatmul.f32.gmra.mxu2 %v2823_v13 }
 0x2ff   : > { %2286 = vst [vmem:[#allocation3 + $0xe8] sm:$0xff] %v2253_v53  ;;  %v2150_v47 = vadd.f32 %v5577_v14, %v1956_v54  ;;  %2461 = vmatmul.f32.gmra.mxu1 %v2253_v53  ;;  %v5641_v14 = vpop.f32.mrf.mxu2  ;;  %v1765_v53 = vadd.f32 %v5616_v48, %v1570_v5 }
 0x300   : > { %2894 = vmatmul.f32.gmra.mxu0 %v2825_v56 }
 0x301   : > { %v2186_v52 = vmul.f32 %v5480_v2, %v2150_v47  ;;  %1936 = vmatmul.f32.gmra.mxu3 %v5428_v8  ;;  %v5646_v60 = vpop.f32.mrf.mxu0  ;;  %v2827_v47 = vld [vmem:[#allocation3 + $0x67] sm:$0xff] }
 0x303   : > { %v2222_v34 = vadd.f32 %v5486_v27, %v2186_v52  ;;  %v2630_v52 = vld [vmem:[#allocation3 + $0x11] sm:$0xff] }
 0x304   : > { %v1889_v20 = vpop.f32.mrf.mxu3 }
 0x305   : > { %v2254_v35 = vmax.f32 %v2222_v34, 0.0  ;;  %v1957_v41 = vadd.f32 %v1889_v20, %v1763_v45  ;;  %v5663_v54 = vpop.f32.mrf.mxu1  ;;  %v1571_v45 = vadd.f32 %v5437_v58, %v5348_v57 }
 0x306   : > { %2541 = vmatmul.f32.gmra.mxu2 %v2824_v33 }
 0x307   : > { %2287 = vst [vmem:[#allocation3 + $0xf0] sm:$0xff] %v2254_v35  ;;  %v2151_v19 = vadd.f32 %v5587_v31, %v1957_v41  ;;  %2464 = vmatmul.f32.gmra.mxu1 %v2254_v35  ;;  %v5654_v28 = vpop.f32.mrf.mxu2  ;;  %v2828_v41 = vld [vmem:[#allocation3 + $0x6f] sm:$0xff] }
 0x308   : > { %2897 = vmatmul.f32.gmra.mxu0 %v2826_v39 }
 0x309   : > { %v2187_v13 = vmul.f32 %v5480_v2, %v2151_v19  ;;  %1939 = vmatmul.f32.gmra.mxu3 %v5428_v8  ;;  %v3056_v8 = vld [vmem:[#allocation9 + $0x230] sm:$0xff]  ;;  %v5659_v36 = vpop.f32.mrf.mxu0 }
 0x30a   : > { %3075 = vmatpush.msrb.mxu1 %v3056_v8  ;;  %v1573_v8 = vadd.f32 %v5456_v61, %v5364_v22 }
 0x30b   : > { %v2223_v4 = vadd.f32 %v5486_v27, %v2187_v13 }
 0x30c   : > { %v1892_v40 = vpop.f32.mrf.mxu3 }
 0x30d   : > { %v2255_v59 = vmax.f32 %v2223_v4, 0.0  ;;  %v1958_v31 = vadd.f32 %v1892_v40, %v1764_v43 }
 0x30e   : > { %2544 = vmatmul.f32.gmra.mxu2 %v2825_v56  ;;  %v1766_v56 = vadd.f32 %v5628_v38, %v1571_v45  ;;  %v3055_v38 = vld [vmem:[#allocation9 + $0x228] sm:$0xff]  ;;  %v1574_v45 = vadd.f32 %v5471_v23, %v5372_v51 }
 0x30f   : > { %2288 = vst [vmem:[#allocation3 + $0x108] sm:$0xff] %v2255_v59  ;;  %v2152_v44 = vadd.f32 %v5599_v62, %v1958_v31  ;;  %2467 = vmatmul.f32.gmra.mxu1 %v2255_v59  ;;  %v5666_v3 = vpop.f32.mrf.mxu2 }
 0x310   : > { %2900 = vmatmul.f32.gmra.mxu0 %v2827_v47  ;;  %3076 = vmatpush.msrb.mxu1 %v3055_v38 }
 0x311   : > { %v2188_v33 = vmul.f32 %v5480_v2, %v2152_v44  ;;  %2694 = vmatmul.f32.vlgmr.msrb.gmra.mxu3 %v2629_v9  ;;  %v5671_v48 = vpop.f32.mrf.mxu0  ;;  %v2829_v9 = vld [vmem:[#allocation3 + $0x87] sm:$0xff] }
 0x313   : > { %v2224_v6 = vadd.f32 %v5486_v27, %v2188_v33 }
 0x314   : > { %v1895_v46 = vpop.f32.mrf.mxu3 }
 0x315   : > { %v2256_v62 = vmax.f32 %v2224_v6, 0.0  ;;  %v1959_v29 = vadd.f32 %v1895_v46, %v1765_v53  ;;  %v2632_v53 = vld [vmem:[#allocation3 + $0x31] sm:$0xff] }
 0x316   : > { %2547 = vmatmul.f32.gmra.mxu2 %v2826_v39  ;;  %v2631_v39 = vld [vmem:[#allocation3 + $0x29] sm:$0xff] }
 0x317   : > { %2289 = vst [vmem:[#allocation3 + $0x110] sm:$0xff] %v2256_v62  ;;  %v2153_v34 = vadd.f32 %v5611_v49, %v1959_v29  ;;  %2470 = vmatmul.f32.gmra.mxu1 %v2256_v62  ;;  %v5678_v13 = vpop.f32.mrf.mxu2  ;;  %v1572_v49 = vadd.f32 %v5446_v0, %v5356_v7  ;;  %v2830_v62 = vld [vmem:[#allocation3 + $0x8f] sm:$0xff] }
 0x318   : > { %2903 = vmatmul.f32.gmra.mxu0 %v2828_v41 }
 0x319   : > { %v2189_v20 = vmul.f32 %v5480_v2, %v2153_v34  ;;  %2697 = vmatmul.f32.gmra.mxu3 %v2630_v52  ;;  %v5683_v4 = vpop.f32.mrf.mxu0  ;;  %v1767_v59 = vadd.f32 %v5641_v14, %v1572_v49 }
 0x31b   : > { %v2225_v35 = vadd.f32 %v5486_v27, %v2189_v20 }
 0x31c   : > { %v1898_v17 = vpop.f32.mrf.mxu3  ;;  %v5676_v19 = vpop.f32.mrf.mxu1 }
 0x31d   : > { %v2257_v57 = vmax.f32 %v2225_v35, 0.0  ;;  %v1960_v58 = vadd.f32 %v1898_v17, %v1766_v56  ;;  %v2633_v56 = vld [vmem:[#allocation3 + $0x49] sm:$0xff] }
 0x31e   : > { %2550 = vmatmul.f32.gmra.mxu2 %v2827_v47  ;;  %v1768_v47 = vadd.f32 %v5654_v28, %v1573_v8  ;;  %v3054_v28 = vld [vmem:[#allocation9 + $0x220] sm:$0xff] }
 0x31f   : > { %2290 = vst [vmem:[#allocation3 + $0x128] sm:$0xff] %v2257_v57  ;;  %v2154_v43 = vadd.f32 %v5623_v42, %v1960_v58  ;;  %2473 = vmatmul.f32.gmra.mxu1 %v2257_v57  ;;  %v5690_v44 = vpop.f32.mrf.mxu2  ;;  %v2831_v57 = vld [vmem:[#allocation3 + $0xa7] sm:$0xff] }
 0x320   : > { %2906 = vmatmul.f32.gmra.mxu0 %v2829_v9  ;;  %3077 = vmatpush.msrb.mxu1 %v3054_v28 }
 0x321   : > { %v2190_v40 = vmul.f32 %v5480_v2, %v2154_v43  ;;  %2700 = vmatmul.f32.gmra.mxu3 %v2631_v39  ;;  %v5695_v14 = vpop.f32.mrf.mxu0  ;;  %v1575_v43 = vadd.f32 %v5493_v32, %v5378_v30  ;;  %v2634_v39 = vld [vmem:[#allocation3 + $0x51] sm:$0xff] }
 0x323   : > { %v2226_v31 = vadd.f32 %v5486_v27, %v2190_v40 }
 0x324   : > { %v1901_v5 = vpop.f32.mrf.mxu3  ;;  %v5688_v7 = vpop.f32.mrf.mxu1 }
 0x325   : > { %v2258_v0 = vmax.f32 %v2226_v31, 0.0  ;;  %v1961_v42 = vadd.f32 %v1901_v5, %v1767_v59  ;;  %v1770_v59 = vadd.f32 %v5678_v13, %v1575_v43  ;;  %v3053_v13 = vld [vmem:[#allocation9 + $0x218] sm:$0xff] }
 0x326   : > { %2553 = vmatmul.f32.gmra.mxu2 %v2828_v41  ;;  %v1769_v41 = vadd.f32 %v5666_v3, %v1574_v45  ;;  %3078 = vmatpush.msrb.mxu1 %v3053_v13 }
 0x327   : > { %2291 = vst [vmem:[#allocation3 + $0x130] sm:$0xff] %v2258_v0  ;;  %v2155_v33 = vadd.f32 %v5633_v37, %v1961_v42  ;;  %2476 = vmatmul.f32.gmra.mxu1 %v2258_v0  ;;  %v5702_v37 = vpop.f32.mrf.mxu2  ;;  %v1576_v42 = vadd.f32 %v5507_v1, %v5386_v11 }
 0x328   : > { %2909 = vmatmul.f32.gmra.mxu0 %v2830_v62 }
 0x329   : > { %v2191_v6 = vmul.f32 %v5480_v2, %v2155_v33  ;;  %2703 = vmatmul.f32.gmra.mxu3 %v2632_v53  ;;  %v5707_v20 = vpop.f32.mrf.mxu0  ;;  %v2635_v53 = vld [vmem:[#allocation3 + $0x69] sm:$0xff] }
 0x32b   : > { %v2227_v46 = vadd.f32 %v5486_v27, %v2191_v6 }
 0x32c   : > { %v1904_v29 = vpop.f32.mrf.mxu3  ;;  %v5700_v52 = vpop.f32.mrf.mxu1 }
 0x32d   : > { %v2259_v22 = vmax.f32 %v2227_v46, 0.0  ;;  %v1962_v61 = vadd.f32 %v1904_v29, %v1768_v47  ;;  %v1771_v47 = vadd.f32 %v5690_v44, %v1576_v42  ;;  %v2638_v42 = vld [vmem:[#allocation3 + $0x91] sm:$0xff] }
 0x32e   : > { %2556 = vmatmul.f32.gmra.mxu2 %v2829_v9  ;;  %v2832_v9 = vld [vmem:[#allocation3 + $0xaf] sm:$0xff] }
 0x32f   : > { %2292 = vst [vmem:[#allocation3 + $0x148] sm:$0xff] %v2259_v22  ;;  %v2156_v34 = vadd.f32 %v5646_v60, %v1962_v61  ;;  %2479 = vmatmul.f32.gmra.mxu1 %v2259_v22  ;;  %v5714_v49 = vpop.f32.mrf.mxu2  ;;  %v1577_v61 = vadd.f32 %v5518_v10, %v5395_v50 }
 0x330   : > { %2912 = vmatmul.f32.gmra.mxu0 %v2831_v57 }
 0x331   : > { %v2192_v35 = vmul.f32 %v5480_v2, %v2156_v34  ;;  %2706 = vmatmul.f32.gmra.mxu3 %v2633_v56  ;;  %v5719_v3 = vpop.f32.mrf.mxu0  ;;  %v2636_v34 = vld [vmem:[#allocation3 + $0x71] sm:$0xff]  ;;  %v1772_v56 = vadd.f32 %v5702_v37, %v1577_v61  ;;  %v2639_v61 = vld [vmem:[#allocation3 + $0xa9] sm:$0xff] }
 0x332   : > { %v3052_v37 = vld [vmem:[#allocation9 + $0x210] sm:$0xff] }
 0x333   : > { %v2228_v17 = vadd.f32 %v5486_v27, %v2192_v35  ;;  %3079 = vmatpush.msrb.mxu1 %v3052_v37 }
 0x334   : > { %v1907_v58 = vpop.f32.mrf.mxu3  ;;  %v5712_v51 = vpop.f32.mrf.mxu1 }
 0x335   : > { %v2260_v23 = vmax.f32 %v2228_v17, 0.0  ;;  %v1963_v60 = vadd.f32 %v1907_v58, %v1769_v41  ;;  %v2834_v41 = vld [vmem:[#allocation3 + $0xcf] sm:$0xff]  ;;  %v1578_v58 = vadd.f32 %v5532_v25, %v5404_v15  ;;  %v5767_v15 = vld [vmem:[%s6726_s4] ss:$0 sm:$0xff] }
 0x336   : > { %2559 = vmatmul.f32.gmra.mxu2 %v2830_v62  ;;  %v2833_v62 = vld [vmem:[#allocation3 + $0xc7] sm:$0xff] }
 0x337   : > { %2293 = vst [vmem:[#allocation3 + $0x150] sm:$0xff] %v2260_v23  ;;  %v2157_v38 = vadd.f32 %v5659_v36, %v1963_v60  ;;  %2482 = vmatmul.f32.gmra.mxu1 %v2260_v23  ;;  %v5726_v36 = vpop.f32.mrf.mxu2  ;;  %v5760_v60 = vld [vmem:[%s6725_s3] ss:$0 sm:$0xff] }
 0x338   : > { %2915 = vmatmul.f32.gmra.mxu0 %v2832_v9 }
 0x339   : > { %v2193_v40 = vmul.f32 %v5480_v2, %v2157_v38  ;;  %2709 = vmatmul.f32.gmra.mxu3 %v2634_v39  ;;  %v5731_v33 = vpop.f32.mrf.mxu0  ;;  %v1773_v38 = vadd.f32 %v5714_v49, %v1578_v58 }
 0x33b   : > { %v2229_v31 = vadd.f32 %v5486_v27, %v2193_v40 }
 0x33c   : > { %v1910_v5 = vpop.f32.mrf.mxu3  ;;  %v5724_v0 = vpop.f32.mrf.mxu1 }
 0x33d   : > { %v2261_v30 = vmax.f32 %v2229_v31, 0.0  ;;  %v1964_v32 = vadd.f32 %v1910_v5, %v1770_v59  ;;  %v6760_v5 = vld [vmem:[#allocation14_spill] sm:$0xff] }
 0x33e   : > { %2562 = vmatmul.f32.gmra.mxu2 %v2831_v57  ;;  %v1579_v49 = vadd.f32 %v5546_v18, %v6760_v5 }
 0x33f   : > { %2294 = vst [vmem:[#allocation3 + $0x168] sm:$0xff] %v2261_v30  ;;  %v2158_v8 = vadd.f32 %v5671_v48, %v1964_v32  ;;  %2485 = vmatmul.f32.gmra.mxu1 %v2261_v30  ;;  %v5738_v22 = vpop.f32.mrf.mxu2 }
 0x340   : > { %2918 = vmatmul.f32.gmra.mxu0 %v2833_v62  ;;  %v1774_v13 = vadd.f32 %v5726_v36, %v1579_v49  ;;  %v3051_v36 = vld [vmem:[#allocation9 + $0x208] sm:$0xff] }
 0x341   : > { %v2194_v6 = vmul.f32 %v5480_v2, %v2158_v8  ;;  %2712 = vmatmul.f32.gmra.mxu3 %v2635_v53  ;;  %v5743_v44 = vpop.f32.mrf.mxu0  ;;  %3080 = vmatpush.msrb.mxu1 %v3051_v36  ;;  %v3454_v36 = vld [vmem:[#allocation9 + $0x378] sm:$0xff] }
 0x342   : > { %3455 = vmatpush.msra.mxu3 %v3454_v36 }
 0x343   : > { %v2230_v46 = vadd.f32 %v5486_v27, %v2194_v6  ;;  %v2836_v6 = vld [vmem:[#allocation3 + $0xef] sm:$0xff] }
 0x344   : > { %v1913_v29 = vpop.f32.mrf.mxu3  ;;  %v5736_v11 = vpop.f32.mrf.mxu1 }
 0x345   : > { %v2262_v1 = vmax.f32 %v2230_v46, 0.0  ;;  %v1965_v48 = vadd.f32 %v1913_v29, %v1771_v47  ;;  %v6761_v29 = vld [vmem:[#allocation16_spill] sm:$0xff] }
 0x346   : > { %2565 = vmatmul.f32.gmra.mxu2 %v2832_v9 }
 0x347   : > { %2295 = vst [vmem:[#allocation3 + $0x170] sm:$0xff] %v2262_v1  ;;  %v2159_v45 = vadd.f32 %v5683_v4, %v1965_v48  ;;  %2488 = vmatmul.f32.gmra.mxu1 %v2262_v1  ;;  %v5750_v4 = vpop.f32.mrf.mxu2  ;;  %v1580_v1 = vadd.f32 %v5560_v16, %v6761_v29  ;;  %v6764_v29 = vld [vmem:[#allocation18_spill] sm:$0xff] }
 0x348   : > { %2921 = vmatmul.f32.gmra.mxu0 %v2834_v41 }
 0x349   : > { %v2195_v28 = vmul.f32 %v5480_v2, %v2159_v45  ;;  %2715 = vmatmul.f32.gmra.mxu3 %v2636_v34  ;;  %v5755_v23 = vpop.f32.mrf.mxu0 }
 0x34b   : > { %v2231_v35 = vadd.f32 %v5486_v27, %v2195_v28  ;;  %v2637_v27 = vld [vmem:[#allocation3 + $0x89] sm:$0xff]  ;;  %v1775_v28 = vadd.f32 %v5738_v22, %v1580_v1  ;;  %v2640_v22 = vld [vmem:[#allocation3 + $0xb1] sm:$0xff]  ;;  %v1583_v1 = vadd.f32 %v5603_v26, %v6764_v29 }
 0x34c   : > { %v1916_v17 = vpop.f32.mrf.mxu3  ;;  %v5748_v57 = vpop.f32.mrf.mxu1  ;;  %v3841_v29 = vld [vmem:[#allocation9 + $0x470] sm:$0xff] }
 0x34d   : > { %v2263_v50 = vmax.f32 %v2231_v35, 0.0  ;;  %v1966_v10 = vadd.f32 %v1916_v17, %v1772_v56  ;;  %v2837_v35 = vld [vmem:[#allocation3 + $0x107] sm:$0xff] }
 0x34e   : > { %2568 = vmatmul.f32.gmra.mxu2 %v2833_v62 }
 0x34f   : > { %2296 = vst [vmem:[#allocation3 + $0x188] sm:$0xff] %v2263_v50  ;;  %v2160_v2 = vadd.f32 %v5695_v14, %v1966_v10  ;;  %2491 = vmatmul.f32.gmra.mxu1 %v2263_v50  ;;  %v2835_v14 = vld [vmem:[#allocation3 + $0xe7] sm:$0xff]  ;;  %v5772_v9 = vpop.f32.mrf.mxu2 }
 0x350   : > { %2924 = vmatmul.f32.gmra.mxu0 %v2835_v14  ;;  %v6762_v10 = vld [vmem:[#allocation15_spill] sm:$0xff] }
 0x351   : > { %v2196_v43 = vmul.f32 %v5760_v60, %v2160_v2  ;;  %2718 = vmatmul.f32.gmra.mxu3 %v2637_v27  ;;  %v5777_v32 = vpop.f32.mrf.mxu0  ;;  %v1581_v58 = vadd.f32 %v5574_v63, %v6762_v10 }
 0x353   : > { %v2232_v25 = vadd.f32 %v5767_v15, %v2196_v43  ;;  %v1776_v43 = vadd.f32 %v5750_v4, %v1581_v58  ;;  %v3050_v4 = vld [vmem:[#allocation9 + $0x200] sm:$0xff] }
 0x354   : > { %v1919_v39 = vpop.f32.mrf.mxu3  ;;  %v5770_v40 = vpop.f32.mrf.mxu1  ;;  %3081 = vmatpush.msrb.mxu1 %v3050_v4 }
 0x355   : > { %v2264_v59 = vmax.f32 %v2232_v25, 0.0  ;;  %v1967_v31 = vadd.f32 %v1919_v39, %v1773_v38  ;;  %v2838_v25 = vld [vmem:[#allocation3 + $0x10f] sm:$0xff] }
 0x356   : > { %2571 = vmatmul.f32.gmra.mxu2 %v2834_v41 }
 0x357   : > { %2297 = vst [vmem:[#allocation3 + $0x190] sm:$0xff] %v2264_v59  ;;  %v2161_v30 = vadd.f32 %v5707_v20, %v1967_v31  ;;  %2494 = vmatmul.f32.gmra.mxu1 %v2264_v59  ;;  %v5784_v20 = vpop.f32.mrf.mxu2  ;;  %v6763_v31 = vld [vmem:[#allocation17_spill] sm:$0xff] }
 0x358   : > { %2927 = vmatmul.f32.gmra.mxu0 %v2836_v6  ;;  %v1582_v5 = vadd.f32 %v5589_v21, %v6763_v31 }
 0x359   : > { %v2197_v8 = vmul.f32 %v5760_v60, %v2161_v30  ;;  %2721 = vmatmul.f32.gmra.mxu3 %v2638_v42  ;;  %v5789_v45 = vpop.f32.mrf.mxu0  ;;  %v2641_v30 = vld [vmem:[#allocation3 + $0xc9] sm:$0xff] }
 0x35b   : > { %v2233_v53 = vadd.f32 %v5767_v15, %v2197_v8  ;;  %v1777_v8 = vadd.f32 %v5772_v9, %v1582_v5  ;;  %v2841_v5 = vld [vmem:[#allocation3 + $0x147] sm:$0xff] }
 0x35c   : > { %v1922_v47 = vpop.f32.mrf.mxu3  ;;  %v5782_v46 = vpop.f32.mrf.mxu1 }
 0x35d   : > { %v2265_v18 = vmax.f32 %v2233_v53, 0.0  ;;  %v1968_v62 = vadd.f32 %v1922_v47, %v1774_v13 }
 0x35e   : > { %2574 = vmatmul.f32.gmra.mxu2 %v2835_v14 }
 0x35f   : > { %2298 = vst [vmem:[#allocation3 + $0x1a8] sm:$0xff] %v2265_v18  ;;  %v2162_v48 = vadd.f32 %v5719_v3, %v1968_v62  ;;  %2497 = vmatmul.f32.gmra.mxu1 %v2265_v18  ;;  %v5796_v50 = vpop.f32.mrf.mxu2 }
 0x360   : > { %2930 = vmatmul.f32.gmra.mxu0 %v2837_v35 }
 0x361   : > { %v2198_v34 = vmul.f32 %v5760_v60, %v2162_v48  ;;  %2724 = vmatmul.f32.gmra.mxu3 %v2639_v61  ;;  %v3259_v48 = vld [vmem:[#allocation9 + $0x2f8] sm:$0xff] }
 0x362   : > { %v5801_v37 = vpop.f32.mrf.mxu0  ;;  %v3648_v61 = vld [vmem:[#allocation9 + $0x3f8] sm:$0xff]  ;;  %3260 = vmatpush.msra.mxu2 %v3259_v48 }
 0x363   : > { %v2234_v56 = vadd.f32 %v5767_v15, %v2198_v34  ;;  %v2642_v34 = vld [vmem:[#allocation3 + $0xd1] sm:$0xff]  ;;  %3649 = vmatpush.msra.mxu0 %v3648_v61  ;;  %v3257_v61 = vld [vmem:[#allocation9 + $0x2e8] sm:$0xff] }
 0x364   : > { %v1925_v41 = vpop.f32.mrf.mxu3  ;;  %v5794_v16 = vpop.f32.mrf.mxu1 }
 0x365   : > { %v2266_v3 = vmax.f32 %v2234_v56, 0.0  ;;  %v1969_v17 = vadd.f32 %v1925_v41, %v1775_v28  ;;  %v1778_v56 = vadd.f32 %v5784_v20, %v1583_v1  ;;  %v3842_v41 = vld [vmem:[#allocation9 + $0x478] sm:$0xff]  ;;  %v6765_v20 = vld [vmem:[#allocation19_spill] sm:$0xff] }
 0x366   : > { %2577 = vmatmul.f32.gmra.mxu2 %v2836_v6  ;;  %v2839_v6 = vld [vmem:[#allocation3 + $0x127] sm:$0xff]  ;;  %3843 = vmatpush.msra.mxu1 %v3842_v41 }
 0x367   : > { %2299 = vst [vmem:[#allocation3 + $0x1b0] sm:$0xff] %v2266_v3  ;;  %v2163_v2 = vadd.f32 %v5731_v33, %v1969_v17  ;;  %2500 = vmatmul.f32.gmra.mxu1 %v2266_v3  ;;  %v5808_v33 = vpop.f32.mrf.mxu2  ;;  %v2645_v41 = vld [vmem:[#allocation3 + $0x109] sm:$0xff] }
 0x368   : > { %2933 = vmatmul.f32.gmra.mxu0 %v2838_v25  ;;  %3844 = vmatpush.msra.mxu1 %v3841_v29  ;;  %v3645_v29 = vld [vmem:[#allocation9 + $0x3e0] sm:$0xff] }
 0x369   : > { %v2199_v27 = vmul.f32 %v5760_v60, %v2163_v2  ;;  %2727 = vmatmul.f32.gmra.mxu3 %v2640_v22  ;;  %v3258_v2 = vld [vmem:[#allocation9 + $0x2f0] sm:$0xff] }
 0x36a   : > { %v3453_v22 = vld [vmem:[#allocation9 + $0x370] sm:$0xff]  ;;  %3261 = vmatpush.msra.mxu2 %v3258_v2 }
 0x36b   : > { %v2235_v38 = vadd.f32 %v5767_v15, %v2199_v27  ;;  %3456 = vmatpush.msra.mxu3 %v3453_v22 }
 0x36c   : > { %v1928_v14 = vpop.f32.mrf.mxu3  ;;  %v5806_v39 = vpop.f32.mrf.mxu1  ;;  %3262 = vmatpush.msra.mxu2 %v3257_v61 }
 0x36d   : > { %v2267_v63 = vmax.f32 %v2235_v38, 0.0  ;;  %v1970_v59 = vadd.f32 %v1928_v14, %v1776_v43  ;;  %v5815_v13 = vpop.f32.mrf.mxu0  ;;  %v1584_v43 = vadd.f32 %v5618_v55, %v6765_v20 }
 0x36e   : > { %2580 = vmatmul.f32.gmra.mxu2 %v2837_v35 }
 0x36f   : > { %2300 = vst [vmem:[#allocation3 + $0x1c8] sm:$0xff] %v2267_v63  ;;  %v2164_v49 = vadd.f32 %v5743_v44, %v1970_v59  ;;  %2503 = vmatmul.f32.gmra.mxu1 %v2267_v63  ;;  %v1779_v63 = vadd.f32 %v5796_v50, %v1584_v43  ;;  %v3646_v43 = vld [vmem:[#allocation9 + $0x3e8] sm:$0xff] }
 0x370   : > { %2936 = vmatmul.f32.gmra.mxu0 %v2839_v6 }
 0x371   : > { %v2200_v42 = vmul.f32 %v5760_v60, %v2164_v49  ;;  %2730 = vmatmul.f32.gmra.mxu3 %v2641_v30  ;;  %v5820_v62 = vpop.f32.mrf.mxu2 }
 0x373   : > { %v2236_v53 = vadd.f32 %v5767_v15, %v2200_v42 }
 0x374   : > { %v1931_v47 = vpop.f32.mrf.mxu3  ;;  %v5818_v21 = vpop.f32.mrf.mxu1 }
 0x375   : > { %v2268_v44 = vmax.f32 %v2236_v53, 0.0  ;;  %v1971_v18 = vadd.f32 %v1931_v47, %v1777_v8  ;;  %v5827_v35 = vpop.f32.mrf.mxu0  ;;  %v6766_v8 = vld [vmem:[#allocation20_spill] sm:$0xff] }
 0x376   : > { %2583 = vmatmul.f32.gmra.mxu2 %v2838_v25  ;;  %v2643_v25 = vld [vmem:[#allocation3 + $0xe9] sm:$0xff]  ;;  %v1585_v53 = vadd.f32 %v5635_v24, %v6766_v8  ;;  %v2644_v47 = vld [vmem:[#allocation3 + $0xf1] sm:$0xff] }
 0x377   : > { %2301 = vst [vmem:[#allocation3 + $0x1d0] sm:$0xff] %v2268_v44  ;;  %v2165_v9 = vadd.f32 %v5755_v23, %v1971_v18  ;;  %2506 = vmatmul.f32.gmra.mxu1 %v2268_v44  ;;  %v2840_v23 = vld [vmem:[#allocation3 + $0x12f] sm:$0xff] }
 0x378   : > { %2939 = vmatmul.f32.gmra.mxu0 %v2840_v23  ;;  %v1780_v44 = vadd.f32 %v5808_v33, %v1585_v53 }
 0x379   : > { %v2201_v28 = vmul.f32 %v5760_v60, %v2165_v9  ;;  %2733 = vmatmul.f32.gmra.mxu3 %v2642_v34  ;;  %v5832_v27 = vpop.f32.mrf.mxu2  ;;  %v2842_v9 = vld [vmem:[#allocation3 + $0x14f] sm:$0xff] }
 0x37a   : > { %v3452_v34 = vld [vmem:[#allocation9 + $0x368] sm:$0xff] }
 0x37b   : > { %v2237_v26 = vadd.f32 %v5767_v15, %v2201_v28  ;;  %v3017_v28 = vld [vmem:[#allocation3 + $0x28] sm:$0xff]  ;;  %3457 = vmatpush.msra.mxu3 %v3452_v34 }
 0x37c   : > { %v1934_v3 = vpop.f32.mrf.mxu3  ;;  %v5830_v17 = vpop.f32.mrf.mxu1 }
 0x37d   : > { %v2269_v10 = vmax.f32 %v2237_v26, 0.0  ;;  %v1972_v58 = vadd.f32 %v1934_v3, %v1778_v56  ;;  %v5839_v59 = vpop.f32.mrf.mxu0 }
 0x37e   : > { %2586 = vmatmul.f32.gmra.mxu2 %v2839_v6 }
 0x37f   : > { %2302 = vst [vmem:[#allocation3 + $0x1e8] sm:$0xff] %v2269_v10  ;;  %v2166_v38 = vadd.f32 %v5777_v32, %v1972_v58  ;;  %2509 = vmatmul.f32.gmra.mxu1 %v2269_v10  ;;  %v3647_v32 = vld [vmem:[#allocation9 + $0x3f0] sm:$0xff]  ;;  %v2843_v58 = vld [vmem:[#allocation3 + $0x167] sm:$0xff] }
 0x380   : > { %2942 = vmatmul.f32.gmra.mxu0 %v2841_v5 }
 0x381   : > { %v2202_v14 = vmul.f32 %v5760_v60, %v2166_v38  ;;  %2736 = vmatmul.f32.gmra.mxu3 %v2643_v25  ;;  %v5844_v42 = vpop.f32.mrf.mxu2  ;;  %3650 = vmatpush.msra.mxu0 %v3647_v32  ;;  %v3018_v38 = vld [vmem:[#allocation3 + $0x30] sm:$0xff] }
 0x382   : > { %v2540_v8 = vadd.f32 %v5844_v42, %v5676_v19  ;;  %v2648_v19 = vld [vmem:[#allocation3 + $0x131] sm:$0xff] }
 0x383   : > { %v2238_v31 = vadd.f32 %v5767_v15, %v2202_v14  ;;  %3651 = vmatpush.msra.mxu0 %v3646_v43  ;;  %v3840_v14 = vld [vmem:[#allocation9 + $0x468] sm:$0xff]  ;;  %v3644_v43 = vld [vmem:[#allocation9 + $0x3d8] sm:$0xff] }
 0x384   : > { %v1937_v49 = vpop.f32.mrf.mxu3  ;;  %v5842_v4 = vpop.f32.mrf.mxu1  ;;  %3845 = vmatpush.msra.mxu1 %v3840_v14  ;;  %v3838_v14 = vld [vmem:[#allocation9 + $0x458] sm:$0xff] }
 0x385   : > { %v2270_v55 = vmax.f32 %v2238_v31, 0.0  ;;  %v1973_v30 = vadd.f32 %v1937_v49, %v1779_v63  ;;  %v5851_v18 = vpop.f32.mrf.mxu0  ;;  %v2844_v63 = vld [vmem:[#allocation3 + $0x16f] sm:$0xff]  ;;  %3652 = vmatpush.msra.mxu0 %v3645_v29 }
 0x386   : > { %2589 = vmatmul.f32.gmra.mxu2 %v2840_v23  ;;  %v2534_v23 = vadd.f32 %v5820_v62, %v5648_v12 }
 0x387   : > { %2303 = vst [vmem:[#allocation3 + $0x1f0] sm:$0xff] %v2270_v55  ;;  %v2167_v50 = vadd.f32 %v5789_v45, %v1973_v30  ;;  %2512 = vmatmul.f32.gmra.mxu1 %v2270_v55  ;;  %v3256_v55 = vld [vmem:[#allocation9 + $0x2e0] sm:$0xff]  ;;  %3653 = vmatpush.msra.mxu0 %v3644_v43  ;;  %v5949_v43 = vld [vmem:[#allocation3 + $0xa8] sm:$0xff] }
 0x388   : > { %2945 = vmatmul.f32.gmra.mxu0 %v2842_v9  ;;  %v3451_v30 = vld [vmem:[#allocation9 + $0x360] sm:$0xff]  ;;  %3263 = vmatpush.msra.mxu2 %v3256_v55 }
 0x389   : > { %v2203_v6 = vmul.f32 %v5760_v60, %v2167_v50  ;;  %2739 = vmatmul.f32.gmra.mxu3 %v2644_v47  ;;  %v5856_v56 = vpop.f32.mrf.mxu2  ;;  %v2845_v50 = vld [vmem:[#allocation3 + $0x187] sm:$0xff] }
 0x38a   : > { %3458 = vmatpush.msra.mxu3 %v3451_v30  ;;  %v2543_v42 = vadd.f32 %v5856_v56, %v5688_v7  ;;  %v2649_v56 = vld [vmem:[#allocation3 + $0x149] sm:$0xff] }
 0x38b   : > { %v2239_v1 = vadd.f32 %v5767_v15, %v2203_v6  ;;  %v3254_v30 = vld [vmem:[#allocation9 + $0x2d0] sm:$0xff] }
 0x38c   : > { %v1940_v48 = vpop.f32.mrf.mxu3  ;;  %v5854_v24 = vpop.f32.mrf.mxu1 }
 0x38d   : > { %v2271_v45 = vmax.f32 %v2239_v1, 0.0  ;;  %v1974_v36 = vadd.f32 %v1940_v48, %v1780_v44  ;;  %v5862_v3 = vpop.f32.mrf.mxu0  ;;  %v5890_v1 = vld [vmem:[#allocation3 + $0x50] sm:$0xff] }
 0x38e   : > { %2592 = vmatmul.f32.gmra.mxu2 %v2841_v5 }
 0x38f   : > { %2304 = vst [vmem:[#allocation3 + $0x208] sm:$0xff] %v2271_v45  ;;  %v2168_v33 = vadd.f32 %v5801_v37, %v1974_v36  ;;  %3082 = vmatmul.f32.vlgmr.msrb.gmra.mxu1 %v3017_v28  ;;  %v3839_v45 = vld [vmem:[#allocation9 + $0x460] sm:$0xff]  ;;  %v2846_v36 = vld [vmem:[#allocation3 + $0x18f] sm:$0xff] }
 0x390   : > { %2948 = vmatmul.f32.gmra.mxu0 %v2843_v58  ;;  %3846 = vmatpush.msra.mxu1 %v3839_v45  ;;  %v3643_v45 = vld [vmem:[#allocation9 + $0x3d0] sm:$0xff] }
 0x391   : > { %v2204_v26 = vmul.f32 %v5760_v60, %v2168_v33  ;;  %2742 = vmatmul.f32.gmra.mxu3 %v2645_v41  ;;  %v5867_v25 = vpop.f32.mrf.mxu2  ;;  %v2646_v60 = vld [vmem:[#allocation3 + $0x111] sm:$0xff]  ;;  %3654 = vmatpush.msra.mxu0 %v3643_v45 }
 0x392   : > { %v3255_v33 = vld [vmem:[#allocation9 + $0x2d8] sm:$0xff]  ;;  %3847 = vmatpush.msra.mxu1 %v3838_v14  ;;  %v2851_v14 = vld [vmem:[#allocation3 + $0x1e7] sm:$0xff] }
 0x393   : > { %v2240_v10 = vadd.f32 %v5767_v15, %v2204_v26  ;;  %v2537_v15 = vadd.f32 %v5832_v27, %v5663_v54  ;;  %v2647_v27 = vld [vmem:[#allocation3 + $0x129] sm:$0xff]  ;;  %v3450_v41 = vld [vmem:[#allocation9 + $0x358] sm:$0xff]  ;;  %3264 = vmatpush.msra.mxu2 %v3255_v33 }
 0x394   : > { %v2695_v2 = vpop.f32.mrf.mxu3  ;;  %v5865_v22 = vpop.f32.mrf.mxu1  ;;  %3459 = vmatpush.msra.mxu3 %v3450_v41  ;;  %v3837_v33 = vld [vmem:[#allocation9 + $0x450] sm:$0xff] }
 0x395   : > { %v2272_v20 = vmax.f32 %v2240_v10, 0.0  ;;  %v2791_v37 = vadd.f32 %v2695_v2, %v2534_v23  ;;  %v5874_v62 = vpop.f32.mrf.mxu0  ;;  %v2546_v23 = vadd.f32 %v5867_v25, %v5700_v52  ;;  %v2650_v52 = vld [vmem:[#allocation3 + $0x151] sm:$0xff]  ;;  %3265 = vmatpush.msra.mxu2 %v3254_v30  ;;  %3848 = vmatpush.msra.mxu1 %v3837_v33  ;;  %v3642_v30 = vld [vmem:[#allocation9 + $0x3c8] sm:$0xff]  ;;  %v3447_v33 = vld [vmem:[#allocation9 + $0x340] sm:$0xff] }
 0x396   : > { %2595 = vmatmul.f32.gmra.mxu2 %v2842_v9  ;;  %v2850_v41 = vld [vmem:[#allocation3 + $0x1cf] sm:$0xff]  ;;  %3655 = vmatpush.msra.mxu0 %v3642_v30 }
 0x397   : > { %2305 = vst [vmem:[#allocation3 + $0x210] sm:$0xff] %v2272_v20  ;;  %3085 = vmatmul.f32.gmra.mxu1 %v3018_v38  ;;  %v5870_v12 = vadd.f32 %v5815_v13, %v2791_v37  ;;  %v5878_v13 = vld [vmem:[#allocation3 + $0x48] sm:$0xff]  ;;  %v5914_v38 = vld [vmem:[#allocation3 + $0x70] sm:$0xff] }
 0x398   : > { %2951 = vmatmul.f32.gmra.mxu0 %v2844_v63 }
 0x399   : > { %2745 = vmatmul.f32.gmra.mxu3 %v2646_v60  ;;  %v2548_v32 = vpop.f32.mrf.mxu2 }
 0x39a   : > { %v2549_v25 = vadd.f32 %v2548_v32, %v5712_v51  ;;  %v2651_v32 = vld [vmem:[#allocation3 + $0x169] sm:$0xff] }
 0x39c   : > { %v2698_v31 = vpop.f32.mrf.mxu3  ;;  %v5876_v5 = vpop.f32.mrf.mxu1 }
 0x39d   : > { %v2792_v49 = vadd.f32 %v2698_v31, %v2537_v15  ;;  %v5886_v53 = vpop.f32.mrf.mxu0 }
 0x39e   : > { %2598 = vmatmul.f32.gmra.mxu2 %v2843_v58  ;;  %v2847_v58 = vld [vmem:[#allocation3 + $0x1a7] sm:$0xff] }
 0x39f   : > { %3088 = vmatmul.f32.gmra.mxu1 %v5878_v13  ;;  %v5882_v54 = vadd.f32 %v5827_v35, %v2792_v49 }
 0x3a0   : > { %2954 = vmatmul.f32.gmra.mxu0 %v2845_v50 }
 0x3a1   : > { %2748 = vmatmul.f32.gmra.mxu3 %v2647_v27  ;;  %v2551_v9 = vpop.f32.mrf.mxu2  ;;  %v3449_v27 = vld [vmem:[#allocation9 + $0x350] sm:$0xff] }
 0x3a2   : > { %3460 = vmatpush.msra.mxu3 %v3449_v27  ;;  %v5962_v27 = vld [vmem:[#allocation3 + $0xb0] sm:$0xff] }
 0x3a4   : > { %v2701_v47 = vpop.f32.mrf.mxu3  ;;  %v5888_v6 = vpop.f32.mrf.mxu1 }
 0x3a5   : > { %v2793_v44 = vadd.f32 %v2701_v47, %v2540_v8  ;;  %v5898_v48 = vpop.f32.mrf.mxu0  ;;  %v5925_v8 = vld [vmem:[#allocation3 + $0x88] sm:$0xff] }
 0x3a6   : > { %2601 = vmatmul.f32.gmra.mxu2 %v2844_v63  ;;  %v2848_v63 = vld [vmem:[#allocation3 + $0x1af] sm:$0xff] }
 0x3a7   : > { %3091 = vmatmul.f32.gmra.mxu1 %v5890_v1  ;;  %v5894_v35 = vadd.f32 %v5839_v59, %v2793_v44  ;;  %v5902_v59 = vld [vmem:[#allocation3 + $0x68] sm:$0xff] }
 0x3a8   : > { %2957 = vmatmul.f32.gmra.mxu0 %v2846_v36  ;;  %v2849_v44 = vld [vmem:[#allocation3 + $0x1c7] sm:$0xff] }
 0x3a9   : > { %2751 = vmatmul.f32.gmra.mxu3 %v2648_v19  ;;  %v2554_v26 = vpop.f32.mrf.mxu2 }
 0x3ac   : > { %v2704_v61 = vpop.f32.mrf.mxu3  ;;  %v5900_v34 = vpop.f32.mrf.mxu1 }
 0x3ad   : > { %v2794_v28 = vadd.f32 %v2704_v61, %v2543_v42  ;;  %v5910_v10 = vpop.f32.mrf.mxu0 }
 0x3ae   : > { %2604 = vmatmul.f32.gmra.mxu2 %v2845_v50  ;;  %v2552_v50 = vadd.f32 %v2551_v9, %v5724_v0  ;;  %v2652_v0 = vld [vmem:[#allocation3 + $0x171] sm:$0xff]  ;;  %v2555_v9 = vadd.f32 %v2554_v26, %v5736_v11  ;;  %v2653_v26 = vld [vmem:[#allocation3 + $0x189] sm:$0xff] }
 0x3af   : > { %3094 = vmatmul.f32.gmra.mxu1 %v5902_v59  ;;  %v5906_v7 = vadd.f32 %v5851_v18, %v2794_v28 }
 0x3b0   : > { %2960 = vmatmul.f32.gmra.mxu0 %v2847_v58 }
 0x3b1   : > { %2754 = vmatmul.f32.gmra.mxu3 %v2649_v56  ;;  %v2557_v60 = vpop.f32.mrf.mxu2 }
 0x3b4   : > { %v2707_v2 = vpop.f32.mrf.mxu3  ;;  %v5912_v20 = vpop.f32.mrf.mxu1 }
 0x3b5   : > { %v2795_v37 = vadd.f32 %v2707_v2, %v2546_v23  ;;  %v5921_v15 = vpop.f32.mrf.mxu0  ;;  %v3253_v2 = vld [vmem:[#allocation9 + $0x2c8] sm:$0xff] }
 0x3b6   : > { %2607 = vmatmul.f32.gmra.mxu2 %v2846_v36  ;;  %v5936_v36 = vld [vmem:[#allocation3 + $0x90] sm:$0xff] }
 0x3b7   : > { %3097 = vmatmul.f32.gmra.mxu1 %v5914_v38  ;;  %v5918_v18 = vadd.f32 %v5862_v3, %v2795_v37  ;;  %v3448_v37 = vld [vmem:[#allocation9 + $0x348] sm:$0xff]  ;;  %3266 = vmatpush.msra.mxu2 %v3253_v2 }
 0x3b8   : > { %2963 = vmatmul.f32.gmra.mxu0 %v2848_v63  ;;  %3461 = vmatpush.msra.mxu3 %v3448_v37  ;;  %v3251_v37 = vld [vmem:[#allocation9 + $0x2b8] sm:$0xff] }
 0x3b9   : > { %2757 = vmatmul.f32.gmra.mxu3 %v2650_v52  ;;  %v2560_v3 = vpop.f32.mrf.mxu2  ;;  %v2558_v52 = vadd.f32 %v2557_v60, %v5748_v57  ;;  %v2654_v57 = vld [vmem:[#allocation3 + $0x191] sm:$0xff] }
 0x3ba   : > { %v2561_v60 = vadd.f32 %v2560_v3, %v5770_v40  ;;  %3462 = vmatpush.msra.mxu3 %v3447_v33  ;;  %v2655_v3 = vld [vmem:[#allocation3 + $0x1a9] sm:$0xff]  ;;  %v3443_v33 = vld [vmem:[#allocation9 + $0x320] sm:$0xff] }
 0x3bc   : > { %v2710_v31 = vpop.f32.mrf.mxu3  ;;  %v5923_v49 = vpop.f32.mrf.mxu1 }
 0x3bd   : > { %v2796_v55 = vadd.f32 %v2710_v31, %v2549_v25  ;;  %v5932_v47 = vpop.f32.mrf.mxu0 }
 0x3be   : > { %2610 = vmatmul.f32.gmra.mxu2 %v2847_v58 }
 0x3bf   : > { %3100 = vmatmul.f32.gmra.mxu1 %v5925_v8  ;;  %v5929_v51 = vadd.f32 %v5874_v62, %v2796_v55 }
 0x3c0   : > { %2966 = vmatmul.f32.gmra.mxu0 %v2849_v44 }
 0x3c1   : > { %2760 = vmatmul.f32.gmra.mxu3 %v2651_v32  ;;  %v5938_v61 = vpop.f32.mrf.mxu2 }
 0x3c4   : > { %v2713_v29 = vpop.f32.mrf.mxu3  ;;  %v5934_v19 = vpop.f32.mrf.mxu1 }
 0x3c5   : > { %v2797_v42 = vadd.f32 %v2713_v29, %v2552_v50  ;;  %v5945_v28 = vpop.f32.mrf.mxu0  ;;  %v2852_v29 = vld [vmem:[#allocation3 + $0x1ef] sm:$0xff] }
 0x3c6   : > { %2613 = vmatmul.f32.gmra.mxu2 %v2848_v63 }
 0x3c7   : > { %3103 = vmatmul.f32.gmra.mxu1 %v5936_v36  ;;  %v5942_v62 = vadd.f32 %v5886_v53, %v2797_v42 }
 0x3c8   : > { %2969 = vmatmul.f32.gmra.mxu0 %v2850_v41 }
 0x3c9   : > { %2763 = vmatmul.f32.gmra.mxu3 %v2652_v0  ;;  %v5951_v53 = vpop.f32.mrf.mxu2 }
 0x3cc   : > { %v2716_v56 = vpop.f32.mrf.mxu3  ;;  %v5947_v23 = vpop.f32.mrf.mxu1 }
 0x3cd   : > { %v2798_v58 = vadd.f32 %v2716_v56, %v2555_v9  ;;  %v5958_v25 = vpop.f32.mrf.mxu0  ;;  %v3252_v9 = vld [vmem:[#allocation9 + $0x2c0] sm:$0xff] }
 0x3ce   : > { %2616 = vmatmul.f32.gmra.mxu2 %v2849_v44  ;;  %v3836_v44 = vld [vmem:[#allocation9 + $0x448] sm:$0xff]  ;;  %v3641_v56 = vld [vmem:[#allocation9 + $0x3c0] sm:$0xff] }
 0x3cf   : > { %3106 = vmatmul.f32.gmra.mxu1 %v5949_v43  ;;  %v5955_v11 = vadd.f32 %v5898_v48, %v2798_v58  ;;  %3267 = vmatpush.msra.mxu2 %v3252_v9  ;;  %v3638_v9 = vld [vmem:[#allocation9 + $0x3a8] sm:$0xff] }
 0x3d0   : > { %2972 = vmatmul.f32.gmra.mxu0 %v2851_v14  ;;  %3849 = vmatpush.msra.mxu1 %v3836_v44  ;;  %v3445_v44 = vld [vmem:[#allocation9 + $0x330] sm:$0xff] }
 0x3d1   : > { %2766 = vmatmul.f32.gmra.mxu3 %v2653_v26  ;;  %v5964_v32 = vpop.f32.mrf.mxu2  ;;  %3656 = vmatpush.msra.mxu0 %v3641_v56  ;;  %v3446_v26 = vld [vmem:[#allocation9 + $0x338] sm:$0xff] }
 0x3d2   : > { %3268 = vmatpush.msra.mxu2 %v3251_v37  ;;  %3463 = vmatpush.msra.mxu3 %v3446_v26  ;;  %v2567_v37 = vadd.f32 %v5951_v53, %v5794_v16  ;;  %v3246_v16 = vld [vmem:[#allocation9 + $0x290] sm:$0xff] }
 0x3d3   : > { %v3441_v53 = vld [vmem:[#allocation9 + $0x310] sm:$0xff] }
 0x3d4   : > { %v2719_v63 = vpop.f32.mrf.mxu3  ;;  %v5960_v31 = vpop.f32.mrf.mxu1  ;;  %3464 = vmatpush.msra.mxu3 %v3445_v44 }
 0x3d5   : > { %v2799_v55 = vadd.f32 %v2719_v63, %v2558_v52  ;;  %v5971_v50 = vpop.f32.mrf.mxu0  ;;  %v3640_v52 = vld [vmem:[#allocation9 + $0x3b8] sm:$0xff]  ;;  %v2853_v63 = vld [vmem:[#allocation3 + $0x207] sm:$0xff] }
 0x3d6   : > { %2619 = vmatmul.f32.gmra.mxu2 %v2850_v41  ;;  %v2564_v41 = vadd.f32 %v5938_v61, %v5782_v46  ;;  %3657 = vmatpush.msra.mxu0 %v3640_v52  ;;  %v3639_v46 = vld [vmem:[#allocation9 + $0x3b0] sm:$0xff]  ;;  %v3835_v52 = vld [vmem:[#allocation9 + $0x440] sm:$0xff] }
 0x3d7   : > { %3109 = vmatmul.f32.gmra.mxu1 %v5962_v27  ;;  %v5968_v48 = vadd.f32 %v5910_v10, %v2799_v55  ;;  %v5975_v10 = vld [vmem:[#allocation3 + $0xc8] sm:$0xff] }
 0x3d8   : > { %2975 = vmatmul.f32.gmra.mxu0 %v2852_v29  ;;  %3850 = vmatpush.msra.mxu1 %v3835_v52  ;;  %v2570_v52 = vadd.f32 %v5964_v32, %v5806_v39 }
 0x3d9   : > { %6767 = vst [vmem:[#allocation14_spill] sm:$0xff] %v5968_v48  ;;  %2769 = vmatmul.f32.gmra.mxu3 %v2654_v57  ;;  %v5977_v58 = vpop.f32.mrf.mxu2  ;;  %3658 = vmatpush.msra.mxu0 %v3639_v46  ;;  %v6175_v48 = vld [vmem:[#allocation3 + $0x1a8] sm:$0xff] }
 0x3db   : > { %3659 = vmatpush.msra.mxu0 %v3638_v9 }
 0x3dc   : > { %v2722_v42 = vpop.f32.mrf.mxu3  ;;  %v5973_v45 = vpop.f32.mrf.mxu1 }
 0x3dd   : > { %v2800_v0 = vadd.f32 %v2722_v42, %v2561_v60  ;;  %v5985_v2 = vpop.f32.mrf.mxu0  ;;  %v3250_v60 = vld [vmem:[#allocation9 + $0x2b0] sm:$0xff]  ;;  %v3249_v42 = vld [vmem:[#allocation9 + $0x2a8] sm:$0xff] }
 0x3de   : > { %2622 = vmatmul.f32.gmra.mxu2 %v2851_v14  ;;  %v3248_v14 = vld [vmem:[#allocation9 + $0x2a0] sm:$0xff] }
 0x3df   : > { %3112 = vmatmul.f32.gmra.mxu1 %v5975_v10  ;;  %v5981_v40 = vadd.f32 %v5921_v15, %v2800_v0  ;;  %v5989_v15 = vld [vmem:[#allocation3 + $0xd0] sm:$0xff]  ;;  %3269 = vmatpush.msra.mxu2 %v3250_v60  ;;  %v3444_v0 = vld [vmem:[#allocation9 + $0x328] sm:$0xff] }
 0x3e0   : > { %2978 = vmatmul.f32.gmra.mxu0 %v2853_v63  ;;  %3465 = vmatpush.msra.mxu3 %v3444_v0  ;;  %v3247_v63 = vld [vmem:[#allocation9 + $0x298] sm:$0xff]  ;;  %v6003_v0 = vld [vmem:[#allocation3 + $0xe8] sm:$0xff] }
 0x3e1   : > { %6768 = vst [vmem:[#allocation16_spill] sm:$0xff] %v5981_v40  ;;  %2772 = vmatmul.f32.gmra.mxu3 %v2655_v3  ;;  %v5991_v61 = vpop.f32.mrf.mxu2  ;;  %v2656_v3 = vld [vmem:[#allocation3 + $0x1b1] sm:$0xff]  ;;  %3270 = vmatpush.msra.mxu2 %v3249_v42 }
 0x3e2   : > { %3466 = vmatpush.msra.mxu3 %v3443_v33  ;;  %v3635_v42 = vld [vmem:[#allocation9 + $0x390] sm:$0xff]  ;;  %v3634_v33 = vld [vmem:[#allocation9 + $0x388] sm:$0xff] }
 0x3e3   : > { %3271 = vmatpush.msra.mxu2 %v3248_v14  ;;  %v3245_v14 = vld [vmem:[#allocation9 + $0x288] sm:$0xff] }
 0x3e4   : > { %v2725_v55 = vpop.f32.mrf.mxu3  ;;  %v5987_v30 = vpop.f32.mrf.mxu1 }
 0x3e5   : > { %v2801_v57 = vadd.f32 %v2725_v55, %v2564_v41  ;;  %v3637_v41 = vld [vmem:[#allocation9 + $0x3a0] sm:$0xff]  ;;  %v5999_v26 = vpop.f32.mrf.mxu0  ;;  %v3442_v55 = vld [vmem:[#allocation9 + $0x318] sm:$0xff]  ;;  %3272 = vmatpush.msra.mxu2 %v3247_v63 }
 0x3e6   : > { %3660 = vmatpush.msra.mxu0 %v3637_v41  ;;  %2625 = vmatmul.f32.gmra.mxu2 %v2852_v29  ;;  %v3440_v29 = vld [vmem:[#allocation9 + $0x308] sm:$0xff] }
 0x3e7   : > { %3115 = vmatmul.f32.gmra.mxu1 %v5989_v15  ;;  %v5995_v56 = vadd.f32 %v5932_v47, %v2801_v57  ;;  %v2854_v47 = vld [vmem:[#allocation3 + $0x20f] sm:$0xff]  ;;  %v3636_v57 = vld [vmem:[#allocation9 + $0x398] sm:$0xff]  ;;  %3467 = vmatpush.msra.mxu3 %v3442_v55  ;;  %v3439_v55 = vld [vmem:[#allocation9 + $0x300] sm:$0xff] }
 0x3e8   : > { %2981 = vmatmul.f32.gmra.mxu0 %v2854_v47  ;;  %3273 = vmatpush.msra.mxu2 %v3246_v16  ;;  %v2657_v41 = vld [vmem:[#allocation3 + $0x1c9] sm:$0xff]  ;;  %v3633_v47 = vld [vmem:[#allocation9 + $0x380] sm:$0xff] }
 0x3e9   : > { %6769 = vst [vmem:[#allocation15_spill] sm:$0xff] %v5995_v56  ;;  %2775 = vmatmul.f32.gmra.mxu3 %v2656_v3  ;;  %3661 = vmatpush.msra.mxu0 %v3636_v57  ;;  %v6005_v9 = vpop.f32.mrf.mxu2  ;;  %v6018_v16 = vld [vmem:[#allocation3 + $0xf0] sm:$0xff]  ;;  %v6149_v56 = vld [vmem:[#allocation3 + $0x188] sm:$0xff] }
 0x3ea   : > { %3468 = vmatpush.msra.mxu3 %v3441_v53  ;;  %3274 = vmatpush.msra.mxu2 %v3245_v14  ;;  %v2658_v53 = vld [vmem:[#allocation3 + $0x1d1] sm:$0xff] }
 0x3eb   : > { %3662 = vmatpush.msra.mxu0 %v3635_v42  ;;  %v2573_v42 = vadd.f32 %v5977_v58, %v5818_v21  ;;  %v2659_v21 = vld [vmem:[#allocation3 + $0x1e9] sm:$0xff]  ;;  %v2576_v58 = vadd.f32 %v5991_v61, %v5830_v17  ;;  %v2660_v17 = vld [vmem:[#allocation3 + $0x1f1] sm:$0xff]  ;;  %v2579_v61 = vadd.f32 %v6005_v9, %v5842_v4 }
 0x3ec   : > { %v2728_v60 = vpop.f32.mrf.mxu3  ;;  %v6001_v44 = vpop.f32.mrf.mxu1  ;;  %3469 = vmatpush.msra.mxu3 %v3440_v29  ;;  %v3834_v29 = vld [vmem:[#allocation9 + $0x438] sm:$0xff]  ;;  %v3406_v9 = vld [vmem:[#allocation3 + $0x47] sm:$0xff] }
 0x3ed   : > { %v2802_v46 = vadd.f32 %v2728_v60, %v2567_v37  ;;  %v3244_v37 = vld [vmem:[#allocation9 + $0x280] sm:$0xff]  ;;  %v6013_v63 = vpop.f32.mrf.mxu0  ;;  %3663 = vmatpush.msra.mxu0 %v3634_v33  ;;  %3851 = vmatpush.msra.mxu1 %v3834_v29 }
 0x3ee   : > { %3275 = vmatpush.msra.mxu2 %v3244_v37  ;;  %3470 = vmatpush.msra.mxu3 %v3439_v55 }
 0x3ef   : > { %3118 = vmatmul.f32.gmra.mxu1 %v6003_v0  ;;  %v6009_v3 = vadd.f32 %v5945_v28, %v2802_v46  ;;  %3664 = vmatpush.msra.mxu0 %v3633_v47  ;;  %v3211_v28 = vld [vmem:[#allocation3 + $0x29] sm:$0xff] }
 0x3f0   : > { %3276 = vmatmul.f32.vlgmr.msra.gmra.mxu2 %v3211_v28  ;;  %3665 = vmatmul.f32.vlgmr.msra.gmra.mxu0 %v5878_v13  ;;  %v3212_v13 = vld [vmem:[#allocation3 + $0x31] sm:$0xff] }
 0x3f1   : > { %6770 = vst [vmem:[#allocation17_spill] sm:$0xff] %v6009_v3  ;;  %2778 = vmatmul.f32.gmra.mxu3 %v2657_v41  ;;  %v2581_v39 = vpop.f32.mrf.mxu2 }
 0x3f4   : > { %v2731_v57 = vpop.f32.mrf.mxu3  ;;  %v6015_v60 = vpop.f32.mrf.mxu1 }
 0x3f5   : > { %v2803_v46 = vadd.f32 %v2731_v57, %v2570_v52  ;;  %v6026_v14 = vpop.f32.mrf.mxu0  ;;  %v6031_v52 = vld [vmem:[#allocation3 + $0x108] sm:$0xff] }
 0x3f7   : > { %3121 = vmatmul.f32.gmra.mxu1 %v6018_v16  ;;  %v6022_v32 = vadd.f32 %v5958_v25, %v2803_v46  ;;  %v6043_v46 = vld [vmem:[#allocation3 + $0x49] sm:$0xff] }
 0x3f8   : > { %3279 = vmatmul.f32.gmra.mxu2 %v3212_v13  ;;  %3668 = vmatmul.f32.gmra.mxu0 %v5890_v1 }
 0x3f9   : > { %6771 = vst [vmem:[#allocation18_spill] sm:$0xff] %v6022_v32  ;;  %2781 = vmatmul.f32.gmra.mxu3 %v2658_v53  ;;  %v2584_v25 = vpop.f32.mrf.mxu2  ;;  %v6047_v53 = vld [vmem:[#allocation3 + $0x110] sm:$0xff] }
 0x3fc   : > { %v2734_v33 = vpop.f32.mrf.mxu3  ;;  %v6028_v41 = vpop.f32.mrf.mxu1 }
 0x3fd   : > { %v2804_v37 = vadd.f32 %v2734_v33, %v2573_v42  ;;  %v6039_v47 = vpop.f32.mrf.mxu0  ;;  %v3833_v33 = vld [vmem:[#allocation9 + $0x430] sm:$0xff] }
 0x3fe   : > { %3852 = vmatpush.msra.mxu1 %v3833_v33  ;;  %v6074_v33 = vld [vmem:[#allocation3 + $0x69] sm:$0xff] }
 0x3ff   : > { %3124 = vmatmul.f32.gmra.mxu1 %v6031_v52  ;;  %v6035_v55 = vadd.f32 %v5971_v50, %v2804_v37 }
 0x400   : > { %3282 = vmatmul.f32.gmra.mxu2 %v6043_v46  ;;  %3671 = vmatmul.f32.gmra.mxu0 %v5902_v59  ;;  %v6059_v59 = vld [vmem:[#allocation3 + $0x51] sm:$0xff] }
 0x401   : > { %6772 = vst [vmem:[#allocation19_spill] sm:$0xff] %v6035_v55  ;;  %2784 = vmatmul.f32.gmra.mxu3 %v2659_v21  ;;  %v2587_v50 = vpop.f32.mrf.mxu2  ;;  %v6108_v55 = vld [vmem:[#allocation3 + $0x150] sm:$0xff] }
 0x404   : > { %v2737_v57 = vpop.f32.mrf.mxu3  ;;  %v6041_v28 = vpop.f32.mrf.mxu1 }
 0x405   : > { %v2805_v1 = vadd.f32 %v2737_v57, %v2576_v58  ;;  %v6055_v29 = vpop.f32.mrf.mxu0  ;;  %v2582_v57 = vadd.f32 %v2581_v39, %v5854_v24  ;;  %v3407_v24 = vld [vmem:[#allocation3 + $0x4f] sm:$0xff]  ;;  %v2585_v39 = vadd.f32 %v2584_v25, %v5865_v22  ;;  %v3408_v25 = vld [vmem:[#allocation3 + $0x67] sm:$0xff] }
 0x407   : > { %3127 = vmatmul.f32.gmra.mxu1 %v6047_v53  ;;  %v6051_v42 = vadd.f32 %v5985_v2, %v2805_v1  ;;  %v6063_v2 = vld [vmem:[#allocation3 + $0x128] sm:$0xff] }
 0x408   : > { %3285 = vmatmul.f32.gmra.mxu2 %v6059_v59  ;;  %3674 = vmatmul.f32.gmra.mxu0 %v5914_v38 }
 0x409   : > { %6773 = vst [vmem:[#allocation20_spill] sm:$0xff] %v6051_v42  ;;  %2787 = vmatmul.f32.gmra.mxu3 %v2660_v17  ;;  %v2590_v58 = vpop.f32.mrf.mxu2 }
 0x40c   : > { %v2740_v13 = vpop.f32.mrf.mxu3  ;;  %v6057_v37 = vpop.f32.mrf.mxu1 }
 0x40d   : > { %v2806_v21 = vadd.f32 %v2740_v13, %v2579_v61  ;;  %v6070_v1 = vpop.f32.mrf.mxu0  ;;  %v6078_v13 = vld [vmem:[#allocation3 + $0x130] sm:$0xff] }
 0x40f   : > { %3130 = vmatmul.f32.gmra.mxu1 %v6063_v2  ;;  %v6067_v4 = vadd.f32 %v5999_v26, %v2806_v21 }
 0x410   : > { %3288 = vmatmul.f32.gmra.mxu2 %v6074_v33  ;;  %3677 = vmatmul.f32.gmra.mxu0 %v5925_v8  ;;  %v6089_v8 = vld [vmem:[#allocation3 + $0x71] sm:$0xff] }
 0x411   : > { %6774 = vst [vmem:[#allocation21_spill] sm:$0xff] %v6067_v4  ;;  %3471 = vmatmul.f32.vlgmr.msra.gmra.mxu3 %v3406_v9  ;;  %v2593_v26 = vpop.f32.mrf.mxu2  ;;  %v3832_v4 = vld [vmem:[#allocation9 + $0x428] sm:$0xff] }
 0x412   : > { %3853 = vmatpush.msra.mxu1 %v3832_v4  ;;  %v2588_v4 = vadd.f32 %v2587_v50, %v5876_v5  ;;  %v3409_v5 = vld [vmem:[#allocation3 + $0x6f] sm:$0xff]  ;;  %v2591_v50 = vadd.f32 %v2590_v58, %v5888_v6  ;;  %v3410_v58 = vld [vmem:[#allocation3 + $0x87] sm:$0xff] }
 0x414   : > { %v2743_v17 = vpop.f32.mrf.mxu3  ;;  %v6072_v61 = vpop.f32.mrf.mxu1 }
 0x415   : > { %v2807_v38 = vadd.f32 %v2743_v17, %v2582_v57  ;;  %v6085_v9 = vpop.f32.mrf.mxu0 }
 0x417   : > { %3133 = vmatmul.f32.gmra.mxu1 %v6078_v13  ;;  %v6082_v21 = vadd.f32 %v6013_v63, %v2807_v38  ;;  %v6093_v63 = vld [vmem:[#allocation3 + $0x148] sm:$0xff] }
 0x418   : > { %3291 = vmatmul.f32.gmra.mxu2 %v6089_v8  ;;  %3680 = vmatmul.f32.gmra.mxu0 %v5936_v36 }
 0x419   : > { %6775 = vst [vmem:[#allocation22_spill] sm:$0xff] %v6082_v21  ;;  %3474 = vmatmul.f32.gmra.mxu3 %v3407_v24  ;;  %v2596_v38 = vpop.f32.mrf.mxu2 }
 0x41c   : > { %v2746_v57 = vpop.f32.mrf.mxu3  ;;  %v6087_v17 = vpop.f32.mrf.mxu1 }
 0x41d   : > { %v2808_v42 = vadd.f32 %v2746_v57, %v2585_v39  ;;  %v6100_v24 = vpop.f32.mrf.mxu0  ;;  %v6104_v57 = vld [vmem:[#allocation3 + $0x89] sm:$0xff] }
 0x41f   : > { %3136 = vmatmul.f32.gmra.mxu1 %v6093_v63  ;;  %v6097_v22 = vadd.f32 %v6026_v14, %v2808_v42 }
 0x420   : > { %3294 = vmatmul.f32.gmra.mxu2 %v6104_v57  ;;  %3683 = vmatmul.f32.gmra.mxu0 %v5949_v43 }
 0x421   : > { %6776 = vst [vmem:[#allocation23_spill] sm:$0xff] %v6097_v22  ;;  %3477 = vmatmul.f32.gmra.mxu3 %v3408_v25  ;;  %v2599_v14 = vpop.f32.mrf.mxu2  ;;  %v3831_v25 = vld [vmem:[#allocation9 + $0x420] sm:$0xff] }
 0x422   : > { %3854 = vmatpush.msra.mxu1 %v3831_v25 }
 0x424   : > { %v2749_v21 = vpop.f32.mrf.mxu3  ;;  %v6102_v39 = vpop.f32.mrf.mxu1 }
 0x425   : > { %v2809_v36 = vadd.f32 %v2749_v21, %v2588_v4  ;;  %v6117_v4 = vld [vmem:[#allocation3 + $0x91] sm:$0xff]  ;;  %v6119_v32 = vpop.f32.mrf.mxu0 }
 0x427   : > { %3139 = vmatmul.f32.gmra.mxu1 %v6108_v55  ;;  %v6112_v42 = vadd.f32 %v6039_v47, %v2809_v36  ;;  %v6123_v47 = vld [vmem:[#allocation3 + $0x168] sm:$0xff] }
 0x428   : > { %3297 = vmatmul.f32.gmra.mxu2 %v6117_v4  ;;  %3686 = vmatmul.f32.gmra.mxu0 %v5962_v27  ;;  %v6136_v27 = vld [vmem:[#allocation3 + $0x170] sm:$0xff] }
 0x429   : > { %6777 = vst [vmem:[#allocation24_spill] sm:$0xff] %v6112_v42  ;;  %3480 = vmatmul.f32.gmra.mxu3 %v3409_v5  ;;  %v2602_v36 = vpop.f32.mrf.mxu2  ;;  %v2594_v5 = vadd.f32 %v2593_v26, %v5900_v34  ;;  %v3411_v34 = vld [vmem:[#allocation3 + $0x8f] sm:$0xff]  ;;  %v2597_v26 = vadd.f32 %v2596_v38, %v5912_v20  ;;  %v3412_v20 = vld [vmem:[#allocation3 + $0xa7] sm:$0xff]  ;;  %v2600_v38 = vadd.f32 %v2599_v14, %v5923_v49 }
 0x42a   : > { %v3413_v49 = vld [vmem:[#allocation3 + $0xaf] sm:$0xff]  ;;  %v2603_v14 = vadd.f32 %v2602_v36, %v5934_v19  ;;  %v3414_v36 = vld [vmem:[#allocation3 + $0xc7] sm:$0xff] }
 0x42c   : > { %v2752_v22 = vpop.f32.mrf.mxu3  ;;  %v6115_v21 = vpop.f32.mrf.mxu1 }
 0x42d   : > { %v2810_v43 = vadd.f32 %v2752_v22, %v2591_v50  ;;  %v6132_v50 = vld [vmem:[#allocation3 + $0xa9] sm:$0xff] }
 0x42f   : > { %3142 = vmatmul.f32.gmra.mxu1 %v6123_v47  ;;  %v6127_v6 = vadd.f32 %v6055_v29, %v2810_v43  ;;  %v2961_v29 = vpop.f32.mrf.mxu0 }
 0x430   : > { %3300 = vmatmul.f32.gmra.mxu2 %v6132_v50  ;;  %3689 = vmatmul.f32.gmra.mxu0 %v5975_v10 }
 0x431   : > { %6778 = vst [vmem:[#allocation25_spill] sm:$0xff] %v6127_v6  ;;  %3483 = vmatmul.f32.gmra.mxu3 %v3410_v58  ;;  %v2605_v3 = vpop.f32.mrf.mxu2  ;;  %v3830_v58 = vld [vmem:[#allocation9 + $0x418] sm:$0xff] }
 0x432   : > { %3855 = vmatpush.msra.mxu1 %v3830_v58  ;;  %v6145_v6 = vld [vmem:[#allocation3 + $0xb1] sm:$0xff] }
 0x434   : > { %v2755_v25 = vpop.f32.mrf.mxu3  ;;  %v6130_v22 = vpop.f32.mrf.mxu1 }
 0x435   : > { %v2811_v42 = vadd.f32 %v2755_v25, %v2594_v5 }
 0x437   : > { %3145 = vmatmul.f32.gmra.mxu1 %v6136_v27  ;;  %v6140_v43 = vadd.f32 %v6070_v1, %v2811_v42 }
 0x438   : > { %3303 = vmatmul.f32.gmra.mxu2 %v6145_v6  ;;  %3692 = vmatmul.f32.gmra.mxu0 %v5989_v15  ;;  %v6162_v15 = vld [vmem:[#allocation3 + $0x190] sm:$0xff] }
 0x439   : > { %6779 = vst [vmem:[#allocation26_spill] sm:$0xff] %v6140_v43  ;;  %3486 = vmatmul.f32.gmra.mxu3 %v3411_v34  ;;  %v2608_v1 = vpop.f32.mrf.mxu2  ;;  %v2964_v34 = vpop.f32.mrf.mxu0 }
 0x43c   : > { %v2758_v5 = vpop.f32.mrf.mxu3  ;;  %v6143_v25 = vpop.f32.mrf.mxu1 }
 0x43d   : > { %v2812_v10 = vadd.f32 %v2758_v5, %v2597_v26  ;;  %v6158_v26 = vld [vmem:[#allocation3 + $0xc9] sm:$0xff] }
 0x43f   : > { %3148 = vmatmul.f32.gmra.mxu1 %v6149_v56  ;;  %v6153_v42 = vadd.f32 %v6085_v9, %v2812_v10  ;;  %v3829_v10 = vld [vmem:[#allocation9 + $0x410] sm:$0xff] }
 0x440   : > { %3306 = vmatmul.f32.gmra.mxu2 %v6158_v26  ;;  %3695 = vmatmul.f32.gmra.mxu0 %v6003_v0 }
 0x441   : > { %6780 = vst [vmem:[#allocation27_spill] sm:$0xff] %v6153_v42  ;;  %3489 = vmatmul.f32.gmra.mxu3 %v3412_v20  ;;  %v2611_v40 = vpop.f32.mrf.mxu2  ;;  %3856 = vmatpush.msra.mxu1 %v3829_v10  ;;  %v2967_v20 = vpop.f32.mrf.mxu0  ;;  %v6171_v42 = vld [vmem:[#allocation3 + $0xd1] sm:$0xff] }
 0x444   : > { %v2761_v58 = vpop.f32.mrf.mxu3  ;;  %v6156_v43 = vpop.f32.mrf.mxu1 }
 0x445   : > { %v2813_v5 = vadd.f32 %v2761_v58, %v2600_v38 }
 0x447   : > { %3151 = vmatmul.f32.gmra.mxu1 %v6162_v15  ;;  %v6166_v9 = vadd.f32 %v6100_v24, %v2813_v5  ;;  %v2606_v5 = vadd.f32 %v2605_v3, %v5947_v23  ;;  %v2609_v23 = vadd.f32 %v2608_v1, %v5960_v31  ;;  %v3828_v3 = vld [vmem:[#allocation9 + $0x408] sm:$0xff]  ;;  %v2612_v1 = vadd.f32 %v2611_v40, %v5973_v45 }
 0x448   : > { %3309 = vmatmul.f32.gmra.mxu2 %v6171_v42  ;;  %3698 = vmatmul.f32.gmra.mxu0 %v6018_v16  ;;  %v6188_v16 = vld [vmem:[#allocation3 + $0x1b0] sm:$0xff]  ;;  %v3416_v31 = vld [vmem:[#allocation3 + $0xe7] sm:$0xff] }
 0x449   : > { %6781 = vst [vmem:[#allocation28_spill] sm:$0xff] %v6166_v9  ;;  %3492 = vmatmul.f32.gmra.mxu3 %v3413_v49  ;;  %v2614_v24 = vpop.f32.mrf.mxu2  ;;  %v2970_v9 = vpop.f32.mrf.mxu0  ;;  %3857 = vmatpush.msra.mxu1 %v3828_v3 }
 0x44a   : > { %v2615_v45 = vadd.f32 %v2614_v24, %v5987_v30  ;;  %v3418_v30 = vld [vmem:[#allocation3 + $0x107] sm:$0xff] }
 0x44c   : > { %v2764_v38 = vpop.f32.mrf.mxu3  ;;  %v6169_v58 = vpop.f32.mrf.mxu1 }
 0x44d   : > { %6782 = vst [vmem:[#allocation29_spill] sm:$0xff] %v6169_v58  ;;  %v2814_v0 = vadd.f32 %v2764_v38, %v2603_v14  ;;  %v6184_v14 = vld [vmem:[#allocation3 + $0xe9] sm:$0xff] }
 0x44f   : > { %3154 = vmatmul.f32.gmra.mxu1 %v6175_v48  ;;  %v6179_v19 = vadd.f32 %v6119_v32, %v2814_v0  ;;  %v3415_v0 = vld [vmem:[#allocation3 + $0xcf] sm:$0xff] }
 0x450   : > { %3312 = vmatmul.f32.gmra.mxu2 %v6184_v14  ;;  %3701 = vmatmul.f32.gmra.mxu0 %v6031_v52  ;;  %v6200_v52 = vld [vmem:[#allocation3 + $0x1c8] sm:$0xff] }
 0x451   : > { %6783 = vst [vmem:[#allocation30_spill] sm:$0xff] %v6179_v19  ;;  %3495 = vmatmul.f32.gmra.mxu3 %v3414_v36  ;;  %v2617_v58 = vpop.f32.mrf.mxu2 }
 0x452   : > { %v2618_v24 = vadd.f32 %v2617_v58, %v6001_v44  ;;  %v3419_v44 = vld [vmem:[#allocation3 + $0x10f] sm:$0xff] }
 0x454   : > { %v2767_v49 = vpop.f32.mrf.mxu3  ;;  %v6182_v10 = vpop.f32.mrf.mxu1 }
 0x455   : > { %v2815_v38 = vadd.f32 %v2767_v49, %v2606_v5  ;;  %v6196_v49 = vld [vmem:[#allocation3 + $0xf1] sm:$0xff] }
 0x457   : > { %3157 = vmatmul.f32.gmra.mxu1 %v6188_v16  ;;  %v6191_v32 = vadd.f32 %v2961_v29, %v2815_v38  ;;  %v2973_v38 = vpop.f32.mrf.mxu0 }
 0x458   : > { %3315 = vmatmul.f32.gmra.mxu2 %v6196_v49  ;;  %3704 = vmatmul.f32.gmra.mxu0 %v6047_v53  ;;  %v6212_v53 = vld [vmem:[#allocation3 + $0x1d0] sm:$0xff] }
 0x459   : > { %6784 = vst [vmem:[#allocation31_spill] sm:$0xff] %v6191_v32  ;;  %3498 = vmatmul.f32.gmra.mxu3 %v3415_v0  ;;  %v2620_v29 = vpop.f32.mrf.mxu2 }
 0x45c   : > { %v2770_v36 = vpop.f32.mrf.mxu3  ;;  %v6194_v5 = vpop.f32.mrf.mxu1 }
 0x45d   : > { %6785 = vst [vmem:[#allocation32_spill] sm:$0xff] %v6194_v5  ;;  %v2816_v19 = vadd.f32 %v2770_v36, %v2609_v23  ;;  %v6208_v23 = vld [vmem:[#allocation3 + $0x109] sm:$0xff] }
 0x45f   : > { %3160 = vmatmul.f32.gmra.mxu1 %v6200_v52  ;;  %v6203_v0 = vadd.f32 %v2964_v34, %v2816_v19  ;;  %v3417_v19 = vld [vmem:[#allocation3 + $0xef] sm:$0xff]  ;;  %v2976_v40 = vpop.f32.mrf.mxu0 }
 0x460   : > { %3318 = vmatmul.f32.gmra.mxu2 %v6208_v23  ;;  %3707 = vmatmul.f32.gmra.mxu0 %v6063_v2 }
 0x461   : > { %6786 = vst [vmem:[#allocation33_spill] sm:$0xff] %v6203_v0  ;;  %3501 = vmatmul.f32.gmra.mxu3 %v3416_v31  ;;  %v2623_v5 = vpop.f32.mrf.mxu2  ;;  %v3827_v31 = vld [vmem:[#allocation9 + $0x400] sm:$0xff] }
 0x462   : > { %3858 = vmatpush.msra.mxu1 %v3827_v31 }
 0x464   : > { %v2773_v3 = vpop.f32.mrf.mxu3  ;;  %v6206_v32 = vpop.f32.mrf.mxu1 }
 0x465   : > { %6787 = vst [vmem:[#allocation34_spill] sm:$0xff] %v6206_v32  ;;  %v2817_v36 = vadd.f32 %v2773_v3, %v2612_v1  ;;  %v6220_v3 = vld [vmem:[#allocation3 + $0x111] sm:$0xff]  ;;  %v6224_v32 = vld [vmem:[#allocation3 + $0x1e8] sm:$0xff] }
 0x467   : > { %3163 = vmatmul.f32.gmra.mxu1 %v6212_v53  ;;  %v6215_v34 = vadd.f32 %v2967_v20, %v2817_v36 }
 0x468   : > { %3321 = vmatmul.f32.gmra.mxu2 %v6220_v3  ;;  %3710 = vmatmul.f32.gmra.mxu0 %v6078_v13  ;;  %v6236_v13 = vld [vmem:[#allocation3 + $0x1f0] sm:$0xff] }
 0x469   : > { %6788 = vst [vmem:[#allocation35_spill] sm:$0xff] %v6215_v34  ;;  %3504 = vmatmul.f32.gmra.mxu3 %v3417_v19  ;;  %v2626_v20 = vpop.f32.mrf.mxu2  ;;  %v2979_v19 = vpop.f32.mrf.mxu0 }
 0x46c   : > { %v2776_v0 = vpop.f32.mrf.mxu3  ;;  %v6218_v1 = vpop.f32.mrf.mxu1 }
 0x46d   : > { %6789 = vst [vmem:[#allocation36_spill] sm:$0xff] %v6218_v1  ;;  %v2818_v2 = vadd.f32 %v2776_v0, %v2615_v45  ;;  %v6232_v0 = vld [vmem:[#allocation3 + $0x129] sm:$0xff] }
 0x46f   : > { %3166 = vmatmul.f32.gmra.mxu1 %v6224_v32  ;;  %v6227_v36 = vadd.f32 %v2970_v9, %v2818_v2  ;;  %v3179_v9 = vadd.f32 %v6057_v37, %v5870_v12  ;;  %v6250_v12 = vld [vmem:[#allocation3 + $0x208] sm:$0xff]  ;;  %v3180_v37 = vadd.f32 %v6072_v61, %v5882_v54  ;;  %v6264_v54 = vld [vmem:[#allocation3 + $0x210] sm:$0xff]  ;;  %v3181_v61 = vadd.f32 %v6087_v17, %v5894_v35 }
 0x470   : > { %3324 = vmatmul.f32.gmra.mxu2 %v6232_v0  ;;  %3713 = vmatmul.f32.gmra.mxu0 %v6093_v63  ;;  %v3182_v35 = vadd.f32 %v6102_v39, %v5906_v7  ;;  %v3183_v7 = vadd.f32 %v6115_v21, %v5918_v18  ;;  %v3423_v39 = vld [vmem:[#allocation3 + $0x14f] sm:$0xff]  ;;  %v3184_v18 = vadd.f32 %v6130_v22, %v5929_v51 }
 0x471   : > { %6790 = vst [vmem:[#allocation37_spill] sm:$0xff] %v6227_v36  ;;  %3507 = vmatmul.f32.gmra.mxu3 %v3418_v30  ;;  %v2621_v30 = vadd.f32 %v2620_v29, %v6015_v60  ;;  %v2982_v1 = vpop.f32.mrf.mxu0  ;;  %v3420_v29 = vld [vmem:[#allocation3 + $0x127] sm:$0xff]  ;;  %v3185_v51 = vadd.f32 %v6143_v25, %v5942_v62  ;;  %v3425_v22 = vld [vmem:[#allocation3 + $0x16f] sm:$0xff]  ;;  %v3186_v62 = vadd.f32 %v6156_v43, %v5955_v11 }
 0x472   : > { %v3426_v25 = vld [vmem:[#allocation3 + $0x187] sm:$0xff] }
 0x473   : > { %v3277_v58 = vpop.f32.mrf.mxu2 }
 0x474   : > { %v2779_v31 = vpop.f32.mrf.mxu3  ;;  %v6230_v34 = vpop.f32.mrf.mxu1  ;;  %v3373_v36 = vadd.f32 %v3277_v58, %v3179_v9 }
 0x475   : > { %6791 = vst [vmem:[#allocation38_spill] sm:$0xff] %v6230_v34  ;;  %v2819_v45 = vadd.f32 %v2779_v31, %v2618_v24  ;;  %v6246_v34 = vld [vmem:[#allocation3 + $0x131] sm:$0xff] }
 0x477   : > { %3169 = vmatmul.f32.gmra.mxu1 %v6236_v13  ;;  %v6241_v2 = vadd.f32 %v2973_v38, %v2819_v45  ;;  %v2624_v45 = vadd.f32 %v2623_v5, %v6028_v41  ;;  %v3421_v5 = vld [vmem:[#allocation3 + $0x12f] sm:$0xff] }
 0x478   : > { %3327 = vmatmul.f32.gmra.mxu2 %v6246_v34  ;;  %3716 = vmatmul.f32.gmra.mxu0 %v6108_v55 }
 0x479   : > { %3510 = vmatmul.f32.gmra.mxu3 %v3419_v44 }
 0x47b   : > { %v3280_v38 = vpop.f32.mrf.mxu2 }
 0x47c   : > { %v2782_v24 = vpop.f32.mrf.mxu3  ;;  %v6244_v31 = vpop.f32.mrf.mxu1  ;;  %v3374_v9 = vadd.f32 %v3280_v38, %v3180_v37 }
 0x47d   : > { %v2820_v63 = vadd.f32 %v2782_v24, %v2621_v30  ;;  %v6260_v30 = vld [vmem:[#allocation3 + $0x149] sm:$0xff] }
 0x47f   : > { %3172 = vmatmul.f32.gmra.mxu1 %v6250_v12  ;;  %v6255_v60 = vadd.f32 %v2976_v40, %v2820_v63  ;;  %v3666_v40 = vpop.f32.mrf.mxu0  ;;  %v2627_v63 = vadd.f32 %v2626_v20, %v6041_v28 }
 0x480   : > { %3330 = vmatmul.f32.gmra.mxu2 %v6260_v30  ;;  %3719 = vmatmul.f32.gmra.mxu0 %v6123_v47  ;;  %v6274_v47 = vld [vmem:[#allocation3 + $0x151] sm:$0xff] }
 0x481   : > { %3513 = vmatmul.f32.gmra.mxu3 %v3420_v29 }
 0x483   : > { %v3283_v24 = vpop.f32.mrf.mxu2 }
 0x484   : > { %v2785_v44 = vpop.f32.mrf.mxu3  ;;  %v6258_v58 = vpop.f32.mrf.mxu1  ;;  %v3375_v37 = vadd.f32 %v3283_v24, %v3181_v61 }
 0x485   : > { %v2821_v55 = vadd.f32 %v2785_v44, %v2624_v45 }
 0x487   : > { %3175 = vmatmul.f32.gmra.mxu1 %v6264_v54  ;;  %v6269_v41 = vadd.f32 %v2979_v19, %v2821_v55  ;;  %v3422_v19 = vld [vmem:[#allocation3 + $0x147] sm:$0xff]  ;;  %v3669_v20 = vpop.f32.mrf.mxu0 }
 0x488   : > { %3333 = vmatmul.f32.gmra.mxu2 %v6274_v47  ;;  %3722 = vmatmul.f32.gmra.mxu0 %v6136_v27 }
 0x489   : > { %3516 = vmatmul.f32.gmra.mxu3 %v3421_v5  ;;  %v6285_v5 = vld [vmem:[#allocation3 + $0x169] sm:$0xff] }
 0x48b   : > { %v3286_v28 = vpop.f32.mrf.mxu2 }
 0x48c   : > { %v2788_v29 = vpop.f32.mrf.mxu3  ;;  %v6272_v38 = vpop.f32.mrf.mxu1  ;;  %v3376_v44 = vadd.f32 %v3286_v28, %v3182_v35 }
 0x48d   : > { %v2822_v45 = vadd.f32 %v2788_v29, %v2627_v63 }
 0x48f   : > { %3859 = vmatmul.f32.vlgmr.msra.gmra.mxu1 %v6043_v46  ;;  %v6281_v17 = vadd.f32 %v2982_v1, %v2822_v45  ;;  %v3672_v63 = vpop.f32.mrf.mxu0 }
 0x490   : > { %3336 = vmatmul.f32.gmra.mxu2 %v6285_v5  ;;  %3725 = vmatmul.f32.gmra.mxu0 %v6149_v56 }
 0x491   : > { %3519 = vmatmul.f32.gmra.mxu3 %v3422_v19 }
 0x493   : > { %v3289_v27 = vpop.f32.mrf.mxu2 }
 0x494   : > { %v3472_v55 = vpop.f32.mrf.mxu3  ;;  %v6283_v61 = vpop.f32.mrf.mxu1  ;;  %v3377_v1 = vadd.f32 %v3289_v27, %v3183_v7 }
 0x495   : > { %v3568_v24 = vadd.f32 %v3472_v55, %v3373_v36  ;;  %v6296_v36 = vld [vmem:[#allocation3 + $0x171] sm:$0xff]  ;;  %v6307_v55 = vld [vmem:[#allocation3 + $0x189] sm:$0xff] }
 0x497   : > { %3862 = vmatmul.f32.gmra.mxu1 %v6059_v59  ;;  %v6292_v46 = vadd.f32 %v3666_v40, %v3568_v24  ;;  %v3424_v59 = vld [vmem:[#allocation3 + $0x167] sm:$0xff]  ;;  %v3675_v24 = vpop.f32.mrf.mxu0 }
 0x498   : > { %3339 = vmatmul.f32.gmra.mxu2 %v6296_v36  ;;  %3728 = vmatmul.f32.gmra.mxu0 %v6162_v15 }
 0x499   : > { %3522 = vmatmul.f32.gmra.mxu3 %v3423_v39 }
 0x49b   : > { %v3292_v21 = vpop.f32.mrf.mxu2 }
 0x49c   : > { %v3475_v29 = vpop.f32.mrf.mxu3  ;;  %v6294_v45 = vpop.f32.mrf.mxu1  ;;  %v3378_v40 = vadd.f32 %v3292_v21, %v3184_v18 }
 0x49d   : > { %v3569_v35 = vadd.f32 %v3475_v29, %v3374_v9 }
 0x49f   : > { %3865 = vmatmul.f32.gmra.mxu1 %v6074_v33  ;;  %v6303_v56 = vadd.f32 %v3669_v20, %v3569_v35 }
 0x4a0   : > { %3342 = vmatmul.f32.gmra.mxu2 %v6307_v55  ;;  %3731 = vmatmul.f32.gmra.mxu0 %v6175_v48  ;;  %v3678_v48 = vpop.f32.mrf.mxu0 }
 0x4a1   : > { %3525 = vmatmul.f32.gmra.mxu3 %v3424_v59 }
 0x4a3   : > { %v3295_v15 = vpop.f32.mrf.mxu2 }
 0x4a4   : > { %v3478_v19 = vpop.f32.mrf.mxu3  ;;  %v6305_v28 = vpop.f32.mrf.mxu1  ;;  %v3379_v20 = vadd.f32 %v3295_v15, %v3185_v51 }
 0x4a5   : > { %v3570_v9 = vadd.f32 %v3478_v19, %v3375_v37  ;;  %v6318_v37 = vld [vmem:[#allocation3 + $0x191] sm:$0xff] }
 0x4a6   : > { %v6338_v19 = vld [vmem:[#allocation3 + $0x1b1] sm:$0xff] }
 0x4a7   : > { %3868 = vmatmul.f32.gmra.mxu1 %v6089_v8  ;;  %v6314_v33 = vadd.f32 %v3672_v63, %v3570_v9 }
 0x4a8   : > { %3345 = vmatmul.f32.gmra.mxu2 %v6318_v37  ;;  %3734 = vmatmul.f32.gmra.mxu0 %v6188_v16  ;;  %v3681_v43 = vpop.f32.mrf.mxu0 }
 0x4a9   : > { %3528 = vmatmul.f32.gmra.mxu3 %v3425_v22  ;;  %v6347_v22 = vld [vmem:[#allocation3 + $0x1c9] sm:$0xff] }
 0x4ab   : > { %v3298_v63 = vpop.f32.mrf.mxu2 }
 0x4ac   : > { %v3481_v7 = vpop.f32.mrf.mxu3  ;;  %v6316_v39 = vpop.f32.mrf.mxu1  ;;  %v3380_v29 = vadd.f32 %v3298_v63, %v3186_v62  ;;  %v3431_v63 = vld [vmem:[#allocation3 + $0x1cf] sm:$0xff] }
 0x4ad   : > { %v3571_v27 = vadd.f32 %v3481_v7, %v3376_v44  ;;  %v6329_v44 = vld [vmem:[#allocation3 + $0x1a9] sm:$0xff] }
 0x4af   : > { %3871 = vmatmul.f32.gmra.mxu1 %v6104_v57  ;;  %v6325_v8 = vadd.f32 %v3675_v24, %v3571_v27  ;;  %v3427_v57 = vld [vmem:[#allocation3 + $0x18f] sm:$0xff] }
 0x4b0   : > { %3348 = vmatmul.f32.gmra.mxu2 %v6329_v44  ;;  %3737 = vmatmul.f32.gmra.mxu0 %v6200_v52  ;;  %v6356_v27 = vld [vmem:[#allocation3 + $0x1d1] sm:$0xff] }
 0x4b1   : > { %3531 = vmatmul.f32.gmra.mxu3 %v3426_v25  ;;  %v6365_v25 = vld [vmem:[#allocation3 + $0x1e9] sm:$0xff] }
 0x4b4   : > { %v3484_v35 = vpop.f32.mrf.mxu3  ;;  %v6327_v18 = vpop.f32.mrf.mxu1 }
 0x4b5   : > { %v3572_v59 = vadd.f32 %v3484_v35, %v3377_v1  ;;  %v3684_v1 = vpop.f32.mrf.mxu0 }
 0x4b7   : > { %3874 = vmatmul.f32.gmra.mxu1 %v6117_v4  ;;  %v6334_v11 = vadd.f32 %v3678_v48, %v3572_v59  ;;  %v3428_v4 = vld [vmem:[#allocation3 + $0x1a7] sm:$0xff] }
 0x4b8   : > { %3351 = vmatmul.f32.gmra.mxu2 %v6338_v19  ;;  %3740 = vmatmul.f32.gmra.mxu0 %v6212_v53  ;;  %v6379_v59 = vld [vmem:[#allocation3 + $0x209] sm:$0xff] }
 0x4b9   : > { %3534 = vmatmul.f32.gmra.mxu3 %v3427_v57 }
 0x4bc   : > { %v3487_v16 = vpop.f32.mrf.mxu3  ;;  %v6336_v21 = vpop.f32.mrf.mxu1 }
 0x4bd   : > { %v3573_v9 = vadd.f32 %v3487_v16, %v3378_v40  ;;  %v3435_v16 = vld [vmem:[#allocation3 + $0x20f] sm:$0xff] }
 0x4bf   : > { %3877 = vmatmul.f32.gmra.mxu1 %v6132_v50  ;;  %v6343_v52 = vadd.f32 %v3681_v43, %v3573_v9  ;;  %v3429_v50 = vld [vmem:[#allocation3 + $0x1af] sm:$0xff]  ;;  %v3436_v9 = vld [vmem:[#allocation3 + $0x227] sm:$0xff] }
 0x4c0   : > { %3354 = vmatmul.f32.gmra.mxu2 %v6347_v22  ;;  %3743 = vmatmul.f32.gmra.mxu0 %v6224_v32  ;;  %v6385_v43 = vld [vmem:[#allocation3 + $0x211] sm:$0xff] }
 0x4c1   : > { %3537 = vmatmul.f32.gmra.mxu3 %v3428_v4 }
 0x4c4   : > { %v3490_v24 = vpop.f32.mrf.mxu3  ;;  %v6345_v51 = vpop.f32.mrf.mxu1 }
 0x4c5   : > { %v3574_v15 = vadd.f32 %v3490_v24, %v3379_v20  ;;  %v3687_v20 = vpop.f32.mrf.mxu0 }
 0x4c7   : > { %3880 = vmatmul.f32.gmra.mxu1 %v6145_v6  ;;  %v6352_v53 = vadd.f32 %v3684_v1, %v3574_v15  ;;  %v3430_v6 = vld [vmem:[#allocation3 + $0x1c7] sm:$0xff]  ;;  %v3437_v1 = vld [vmem:[#allocation3 + $0x22f] sm:$0xff] }
 0x4c8   : > { %3357 = vmatmul.f32.gmra.mxu2 %v6356_v27  ;;  %3746 = vmatmul.f32.gmra.mxu0 %v6236_v13 }
 0x4c9   : > { %3540 = vmatmul.f32.gmra.mxu3 %v3429_v50 }
 0x4cc   : > { %v3493_v40 = vpop.f32.mrf.mxu3  ;;  %v6354_v7 = vpop.f32.mrf.mxu1 }
 0x4cd   : > { %v3575_v62 = vadd.f32 %v3493_v40, %v3380_v29  ;;  %v6372_v29 = vld [vmem:[#allocation3 + $0x1f1] sm:$0xff]  ;;  %v6413_v40 = vpop.f32.mrf.mxu2 }
 0x4cf   : > { %3883 = vmatmul.f32.gmra.mxu1 %v6158_v26  ;;  %v6361_v32 = vadd.f32 %v3687_v20, %v3575_v62  ;;  %v3432_v26 = vld [vmem:[#allocation3 + $0x1e7] sm:$0xff] }
 0x4d0   : > { %3360 = vmatmul.f32.gmra.mxu2 %v6365_v25  ;;  %3749 = vmatmul.f32.gmra.mxu0 %v6250_v12  ;;  %v3433_v12 = vld [vmem:[#allocation3 + $0x1ef] sm:$0xff] }
 0x4d1   : > { %3543 = vmatmul.f32.gmra.mxu3 %v3430_v6 }
 0x4d4   : > { %v6363_v48 = vpop.f32.mrf.mxu1 }
 0x4d7   : > { %3886 = vmatmul.f32.gmra.mxu1 %v6171_v42  ;;  %v4427_v42 = vld [vmem:[#allocation2 + $0x8] sm:$0xff] }
 0x4d8   : > { %3363 = vmatmul.f32.gmra.mxu2 %v6372_v29  ;;  %3752 = vmatmul.f32.gmra.mxu0 %v6264_v54 }
 0x4d9   : > { %3546 = vmatmul.f32.gmra.mxu3 %v3431_v63 }
 0x4dc   : > { %v6370_v13 = vpop.f32.mrf.mxu1 }
 0x4df   : > { %3889 = vmatmul.f32.gmra.mxu1 %v6184_v14  ;;  %v3434_v14 = vld [vmem:[#allocation3 + $0x207] sm:$0xff] }
 0x4e0   : > { %3366 = vmatmul.f32.gmra.mxu2 %v6379_v59  ;;  %3755 = vmatmul.f32.gmra.mxu0 %v4427_v42 }
 0x4e1   : > { %3549 = vmatmul.f32.gmra.mxu3 %v3432_v26  ;;  %v4061_v26 = vld [vmem:[%s4748_s13 + $0x8] sm:$0xff] }
 0x4e4   : > { %v6377_v35 = vpop.f32.mrf.mxu1 }
 0x4e7   : > { %3892 = vmatmul.f32.gmra.mxu1 %v6196_v49 }
 0x4e8   : > { %3369 = vmatmul.f32.gmra.mxu2 %v6385_v43  ;;  %3758 = vmatmul.f32.gmra.mxu0 %v4427_v42 }
 0x4e9   : > { %3552 = vmatmul.f32.gmra.mxu3 %v3433_v12  ;;  %v6427_v12 = vpop.f32.mrf.mxu0 }
 0x4ec   : > { %v6383_v57 = vpop.f32.mrf.mxu1 }
 0x4ef   : > { %3895 = vmatmul.f32.gmra.mxu1 %v6208_v23  ;;  %v6401_v23 = vld [vmem:[%s6727_s5] ss:$0 sm:$0xff] }
 0x4f1   : > { %3555 = vmatmul.f32.gmra.mxu3 %v3434_v14 }
 0x4f4   : > { %v6389_v54 = vpop.f32.mrf.mxu1 }
 0x4f7   : > { %3898 = vmatmul.f32.gmra.mxu1 %v6220_v3 }
 0x4f9   : > { %3558 = vmatmul.f32.gmra.mxu3 %v3435_v16 }
 0x4fc   : > { %v6392_v49 = vpop.f32.mrf.mxu1 }
 0x4ff   : > { %3901 = vmatmul.f32.gmra.mxu1 %v6232_v0  ;;  %v6407_v0 = vld [vmem:[%s6728_s6] ss:$0 sm:$0xff] }
 0x501   : > { %3561 = vmatmul.f32.gmra.mxu3 %v3436_v9 }
 0x504   : > { %v6395_v4 = vpop.f32.mrf.mxu1 }
 0x507   : > { %3904 = vmatmul.f32.gmra.mxu1 %v6246_v34  ;;  %v4060_v34 = vld [vmem:[%s4748_s13] sm:$0xff] }
 0x509   : > { %3564 = vmatmul.f32.gmra.mxu3 %v3437_v1 }
 0x50c   : > { %v3860_v3 = vpop.f32.mrf.mxu1 }
 0x50d   : > { %v3956_v24 = vadd.f32 %v3860_v3, %v6292_v46 }
 0x50f   : > { %v3992_v15 = vmul.f32 %v6401_v23, %v3956_v24  ;;  %3907 = vmatmul.f32.gmra.mxu1 %v6260_v30  ;;  %v6423_v30 = vpop.f32.mrf.mxu3 }
 0x511   : > { %v4028_v50 = vadd.f32 %v6407_v0, %v3992_v15 }
 0x513   : > { %v4092_v62 = vadd.f32 %v4060_v34, %v4028_v50 }
 0x514   : > { %v3863_v20 = vpop.f32.mrf.mxu1 }
 0x515   : > { %v4124_v6 = vmax.f32 %v4092_v62, 0.0  ;;  %v3957_v46 = vadd.f32 %v3863_v20, %v6303_v56  ;;  %v6429_v56 = vpop.f32.mrf.mxu2  ;;  %v6439_v62 = vpop.f32.mrf.mxu0 }
 0x517   : > { %4156 = vst [vmem:[%s6418_s30] sm:$0xff] %v4124_v6  ;;  %v3993_v63 = vmul.f32 %v6401_v23, %v3957_v46  ;;  %3910 = vmatmul.f32.gmra.mxu1 %v6274_v47  ;;  %v4062_v47 = vld [vmem:[%s4748_s13 + $0x10] sm:$0xff]  ;;  %v6437_v15 = vpop.f32.mrf.mxu3 }
 0x519   : > { %v4029_v42 = vadd.f32 %v6407_v0, %v3993_v63 }
 0x51b   : > { %v4093_v14 = vadd.f32 %v4061_v26, %v4029_v42 }
 0x51c   : > { %v3866_v16 = vpop.f32.mrf.mxu1 }
 0x51d   : > { %v4125_v9 = vmax.f32 %v4093_v14, 0.0  ;;  %v3958_v1 = vadd.f32 %v3866_v16, %v6314_v33  ;;  %v6442_v33 = vpop.f32.mrf.mxu2 }
 0x51f   : > { %4157 = vst [vmem:[%s6418_s30 + $0x8] sm:$0xff] %v4125_v9  ;;  %v3994_v3 = vmul.f32 %v6401_v23, %v3958_v1  ;;  %3913 = vmatmul.f32.gmra.mxu1 %v6285_v5  ;;  %v4063_v5 = vld [vmem:[%s4748_s13 + $0x18] sm:$0xff]  ;;  %v6449_v42 = vpop.f32.mrf.mxu3 }
 0x521   : > { %v4030_v24 = vadd.f32 %v6407_v0, %v3994_v3  ;;  %v4064_v3 = vld [vmem:[%s4748_s13 + $0x20] sm:$0xff] }
 0x523   : > { %v4094_v34 = vadd.f32 %v4062_v47, %v4030_v24 }
 0x524   : > { %v3869_v50 = vpop.f32.mrf.mxu1 }
 0x525   : > { %v4126_v20 = vmax.f32 %v4094_v34, 0.0  ;;  %v3959_v6 = vadd.f32 %v3869_v50, %v6325_v8  ;;  %v6452_v8 = vpop.f32.mrf.mxu0 }
 0x527   : > { %4158 = vst [vmem:[%s6418_s30 + $0x10] sm:$0xff] %v4126_v20  ;;  %v3995_v46 = vmul.f32 %v6401_v23, %v3959_v6  ;;  %3916 = vmatmul.f32.gmra.mxu1 %v6296_v36  ;;  %v6457_v36 = vpop.f32.mrf.mxu2 }
 0x529   : > { %v4031_v63 = vadd.f32 %v6407_v0, %v3995_v46 }
 0x52b   : > { %v4095_v26 = vadd.f32 %v4063_v5, %v4031_v63 }
 0x52c   : > { %v3872_v14 = vpop.f32.mrf.mxu1 }
 0x52d   : > { %v4127_v16 = vmax.f32 %v4095_v26, 0.0  ;;  %v3960_v9 = vadd.f32 %v3872_v14, %v6334_v11  ;;  %v6462_v11 = vpop.f32.mrf.mxu3  ;;  %v6468_v46 = vpop.f32.mrf.mxu0 }
 0x52f   : > { %4159 = vst [vmem:[%s6418_s30 + $0x18] sm:$0xff] %v4127_v16  ;;  %v3996_v1 = vmul.f32 %v6401_v23, %v3960_v9  ;;  %3919 = vmatmul.f32.gmra.mxu1 %v6307_v55  ;;  %v4065_v55 = vld [vmem:[%s4748_s13 + $0x28] sm:$0xff]  ;;  %v6471_v63 = vpop.f32.mrf.mxu2 }
 0x531   : > { %v4032_v47 = vadd.f32 %v6407_v0, %v3996_v1  ;;  %v4066_v1 = vld [vmem:[%s4748_s13 + $0x30] sm:$0xff] }
 0x533   : > { %v4096_v24 = vadd.f32 %v4064_v3, %v4032_v47  ;;  %v6792_v3 = vld [vmem:[#allocation14_spill] sm:$0xff]  ;;  %v6793_v47 = vld [vmem:[#allocation29_spill] sm:$0xff] }
 0x534   : > { %v3875_v34 = vpop.f32.mrf.mxu1 }
 0x535   : > { %v4128_v50 = vmax.f32 %v4096_v24, 0.0  ;;  %v3961_v20 = vadd.f32 %v3875_v34, %v6343_v52  ;;  %v3187_v24 = vadd.f32 %v6793_v47, %v6792_v3 }
 0x537   : > { %4160 = vst [vmem:[%s6418_s30 + $0x20] sm:$0xff] %v4128_v50  ;;  %v3997_v6 = vmul.f32 %v6401_v23, %v3961_v20  ;;  %3922 = vmatmul.f32.gmra.mxu1 %v6318_v37  ;;  %v6477_v37 = vpop.f32.mrf.mxu3  ;;  %v3381_v50 = vadd.f32 %v6413_v40, %v3187_v24  ;;  %v6484_v20 = vpop.f32.mrf.mxu0 }
 0x539   : > { %v4033_v5 = vadd.f32 %v6407_v0, %v3997_v6  ;;  %v6486_v6 = vpop.f32.mrf.mxu2 }
 0x53b   : > { %v4097_v26 = vadd.f32 %v4065_v55, %v4033_v5 }
 0x53c   : > { %v3878_v14 = vpop.f32.mrf.mxu1 }
 0x53d   : > { %v4129_v16 = vmax.f32 %v4097_v26, 0.0  ;;  %v3962_v52 = vadd.f32 %v3878_v14, %v6352_v53  ;;  %v3576_v26 = vadd.f32 %v6423_v30, %v3381_v50 }
 0x53f   : > { %4161 = vst [vmem:[%s6418_s30 + $0x28] sm:$0xff] %v4129_v16  ;;  %v3998_v9 = vmul.f32 %v6401_v23, %v3962_v52  ;;  %3925 = vmatmul.f32.gmra.mxu1 %v6329_v44  ;;  %v4067_v16 = vld [vmem:[%s4748_s13 + $0x38] sm:$0xff]  ;;  %v6794_v52 = vld [vmem:[#allocation16_spill] sm:$0xff]  ;;  %v3770_v30 = vadd.f32 %v6427_v12, %v3576_v26  ;;  %v6501_v24 = vpop.f32.mrf.mxu0 }
 0x540   : > { %v3188_v40 = vadd.f32 %v6182_v10, %v6794_v52 }
 0x541   : > { %v4034_v34 = vadd.f32 %v6407_v0, %v3998_v9 }
 0x542   : > { %v3382_v3 = vadd.f32 %v6429_v56, %v3188_v40  ;;  %v6795_v56 = vld [vmem:[#allocation15_spill] sm:$0xff] }
 0x543   : > { %v4098_v53 = vadd.f32 %v4066_v1, %v4034_v34  ;;  %v6497_v1 = vpop.f32.mrf.mxu3 }
 0x544   : > { %v3881_v55 = vpop.f32.mrf.mxu1 }
 0x545   : > { %v4130_v5 = vmax.f32 %v4098_v53, 0.0  ;;  %v3963_v44 = vadd.f32 %v3881_v55, %v6361_v32  ;;  %v3577_v53 = vadd.f32 %v6437_v15, %v3382_v3  ;;  %v4068_v55 = vld [vmem:[%s4748_s13 + $0x40] sm:$0xff] }
 0x547   : > { %4162 = vst [vmem:[%s6418_s30 + $0x30] sm:$0xff] %v4130_v5  ;;  %v3999_v14 = vmul.f32 %v6401_v23, %v3963_v44  ;;  %3928 = vmatmul.f32.gmra.mxu1 %v6338_v19  ;;  %v6503_v19 = vpop.f32.mrf.mxu2  ;;  %v6796_v5 = vld [vmem:[#allocation32_spill] sm:$0xff] }
 0x548   : > { %v3189_v12 = vadd.f32 %v6796_v5, %v6795_v56 }
 0x549   : > { %v4035_v9 = vadd.f32 %v6407_v0, %v3999_v14 }
 0x54a   : > { %v3383_v26 = vadd.f32 %v6442_v33, %v3189_v12 }
 0x54b   : > { %v4099_v32 = vadd.f32 %v4067_v16, %v4035_v9  ;;  %v3771_v16 = vadd.f32 %v6439_v62, %v3577_v53  ;;  %v6515_v52 = vpop.f32.mrf.mxu3  ;;  %v6797_v62 = vld [vmem:[#allocation17_spill] sm:$0xff] }
 0x54c   : > { %v3884_v47 = vpop.f32.mrf.mxu1  ;;  %v3578_v3 = vadd.f32 %v6449_v42, %v3383_v26  ;;  %v4070_v26 = vld [vmem:[%s4748_s13 + $0x50] sm:$0xff] }
 0x54d   : > { %v4131_v34 = vmax.f32 %v4099_v32, 0.0  ;;  %v3964_v50 = vadd.f32 %v3884_v47, %v3770_v30  ;;  %v4069_v30 = vld [vmem:[%s4748_s13 + $0x48] sm:$0xff]  ;;  %v6798_v47 = vld [vmem:[#allocation34_spill] sm:$0xff] }
 0x54f   : > { %4163 = vst [vmem:[%s6418_s30 + $0x38] sm:$0xff] %v4131_v34  ;;  %v4000_v10 = vmul.f32 %v6401_v23, %v3964_v50  ;;  %3931 = vmatmul.f32.gmra.mxu1 %v6347_v22  ;;  %v6518_v22 = vpop.f32.mrf.mxu0  ;;  %v6523_v33 = vpop.f32.mrf.mxu2  ;;  %v3190_v34 = vadd.f32 %v6798_v47, %v6797_v62 }
 0x551   : > { %v4036_v44 = vadd.f32 %v6407_v0, %v4000_v10  ;;  %v3384_v53 = vadd.f32 %v6457_v36, %v3190_v34  ;;  %v3772_v10 = vadd.f32 %v6452_v8, %v3578_v3 }
 0x553   : > { %v4100_v14 = vadd.f32 %v4068_v55, %v4036_v44  ;;  %v6531_v12 = vpop.f32.mrf.mxu3 }
 0x554   : > { %v3887_v15 = vpop.f32.mrf.mxu1 }
 0x555   : > { %v4132_v40 = vmax.f32 %v4100_v14, 0.0  ;;  %v3965_v9 = vadd.f32 %v3887_v15, %v3771_v16  ;;  %v6799_v14 = vld [vmem:[#allocation18_spill] sm:$0xff]  ;;  %v6800_v16 = vld [vmem:[#allocation36_spill] sm:$0xff] }
 0x556   : > { %v3191_v36 = vadd.f32 %v6800_v16, %v6799_v14  ;;  %v4072_v16 = vld [vmem:[%s4748_s13 + $0x60] sm:$0xff] }
 0x557   : > { %4164 = vst [vmem:[%s6418_s30 + $0x40] sm:$0xff] %v4132_v40  ;;  %v4001_v32 = vmul.f32 %v6401_v23, %v3965_v9  ;;  %3934 = vmatmul.f32.gmra.mxu1 %v6356_v27  ;;  %v3579_v27 = vadd.f32 %v6462_v11, %v3384_v53  ;;  %v6540_v15 = vpop.f32.mrf.mxu0  ;;  %v6543_v40 = vpop.f32.mrf.mxu2  ;;  %v6801_v53 = vld [vmem:[#allocation19_spill] sm:$0xff] }
 0x558   : > { %v3385_v9 = vadd.f32 %v6471_v63, %v3191_v36  ;;  %v6803_v36 = vld [vmem:[#allocation20_spill] sm:$0xff] }
 0x559   : > { %v4037_v50 = vadd.f32 %v6407_v0, %v4001_v32  ;;  %v3773_v3 = vadd.f32 %v6468_v46, %v3579_v27 }
 0x55b   : > { %v4101_v42 = vadd.f32 %v4069_v30, %v4037_v50  ;;  %v3520_v34 = vpop.f32.mrf.mxu3  ;;  %v4071_v50 = vld [vmem:[%s4748_s13 + $0x58] sm:$0xff] }
 0x55c   : > { %v3890_v55 = vpop.f32.mrf.mxu1 }
 0x55d   : > { %v4133_v56 = vmax.f32 %v4101_v42, 0.0  ;;  %v3966_v5 = vadd.f32 %v3890_v55, %v3772_v10  ;;  %v6802_v42 = vld [vmem:[#allocation38_spill] sm:$0xff] }
 0x55e   : > { %v3192_v63 = vadd.f32 %v6802_v42, %v6801_v53 }
 0x55f   : > { %4165 = vst [vmem:[%s6418_s30 + $0x48] sm:$0xff] %v4133_v56  ;;  %v4002_v44 = vmul.f32 %v6401_v23, %v3966_v5  ;;  %3937 = vmatmul.f32.gmra.mxu1 %v6365_v25  ;;  %v3580_v25 = vadd.f32 %v6477_v37, %v3385_v9  ;;  %v6556_v55 = vpop.f32.mrf.mxu0  ;;  %v3328_v5 = vpop.f32.mrf.mxu2 }
 0x560   : > { %v3386_v46 = vadd.f32 %v6486_v6, %v3192_v63  ;;  %v3193_v6 = vadd.f32 %v6244_v31, %v6803_v36  ;;  %v4073_v31 = vld [vmem:[%s4748_s13 + $0x68] sm:$0xff] }
 0x561   : > { %v4038_v8 = vadd.f32 %v6407_v0, %v4002_v44  ;;  %v3774_v37 = vadd.f32 %v6484_v20, %v3580_v25 }
 0x562   : > { %v3387_v9 = vadd.f32 %v6503_v19, %v3193_v6  ;;  %v3825_v6 = vld [vmem:[#allocation3 + $0x231] sm:$0xff] }
 0x563   : > { %v4102_v11 = vadd.f32 %v4070_v26, %v4038_v8  ;;  %v3523_v20 = vpop.f32.mrf.mxu3 }
 0x564   : > { %v3893_v32 = vpop.f32.mrf.mxu1 }
 0x565   : > { %v4134_v30 = vmax.f32 %v4102_v11, 0.0  ;;  %v3967_v62 = vadd.f32 %v3893_v32, %v3773_v3 }
 0x567   : > { %4166 = vst [vmem:[%s6418_s30 + $0x50] sm:$0xff] %v4134_v30  ;;  %v4003_v47 = vmul.f32 %v6401_v23, %v3967_v62  ;;  %3940 = vmatmul.f32.gmra.mxu1 %v6372_v29  ;;  %v3581_v29 = vadd.f32 %v6497_v1, %v3386_v46  ;;  %v3717_v32 = vpop.f32.mrf.mxu0  ;;  %v3331_v25 = vpop.f32.mrf.mxu2  ;;  %v3824_v46 = vld [vmem:[#allocation3 + $0x229] sm:$0xff] }
 0x569   : > { %v4039_v10 = vadd.f32 %v6407_v0, %v4003_v47  ;;  %v3775_v3 = vadd.f32 %v6501_v24, %v3581_v29 }
 0x56b   : > { %v4103_v56 = vadd.f32 %v4071_v50, %v4039_v10  ;;  %v6804_v50 = vld [vmem:[#allocation21_spill] sm:$0xff]  ;;  %v3526_v10 = vpop.f32.mrf.mxu3 }
 0x56c   : > { %v3896_v27 = vpop.f32.mrf.mxu1  ;;  %v3194_v19 = vadd.f32 %v6258_v58, %v6804_v50 }
 0x56d   : > { %v4135_v44 = vmax.f32 %v4103_v56, 0.0  ;;  %v3968_v26 = vadd.f32 %v3896_v27, %v3774_v37 }
 0x56e   : > { %v3388_v53 = vadd.f32 %v6523_v33, %v3194_v19  ;;  %v6805_v33 = vld [vmem:[#allocation22_spill] sm:$0xff] }
 0x56f   : > { %4167 = vst [vmem:[%s6418_s30 + $0x58] sm:$0xff] %v4135_v44  ;;  %v4004_v14 = vmul.f32 %v6401_v23, %v3968_v26  ;;  %3943 = vmatmul.f32.gmra.mxu1 %v6379_v59  ;;  %v3582_v59 = vadd.f32 %v6515_v52, %v3387_v9  ;;  %v3334_v44 = vpop.f32.mrf.mxu2  ;;  %v4074_v26 = vld [vmem:[%s4748_s13 + $0x70] sm:$0xff]  ;;  %v3195_v29 = vadd.f32 %v6272_v38, %v6805_v33  ;;  %v4075_v38 = vld [vmem:[%s4748_s13 + $0x78] sm:$0xff] }
 0x570   : > { %v3583_v27 = vadd.f32 %v6531_v12, %v3388_v53 }
 0x571   : > { %v4040_v8 = vadd.f32 %v6407_v0, %v4004_v14  ;;  %v3776_v63 = vadd.f32 %v6518_v22, %v3582_v59  ;;  %v3389_v14 = vadd.f32 %v6543_v40, %v3195_v29 }
 0x572   : > { %v3777_v36 = vadd.f32 %v6540_v15, %v3583_v27 }
 0x573   : > { %v4104_v11 = vadd.f32 %v4072_v16, %v4040_v8 }
 0x574   : > { %v3899_v1 = vpop.f32.mrf.mxu1 }
 0x575   : > { %v4136_v30 = vmax.f32 %v4104_v11, 0.0  ;;  %v3969_v62 = vadd.f32 %v3899_v1, %v3775_v3  ;;  %v3529_v11 = vpop.f32.mrf.mxu3  ;;  %v3584_v3 = vadd.f32 %v3520_v34, %v3389_v14  ;;  %v4077_v14 = vld [vmem:[%s4748_s13 + $0x88] sm:$0xff] }
 0x577   : > { %4168 = vst [vmem:[%s6418_s30 + $0x60] sm:$0xff] %v4136_v30  ;;  %v4005_v47 = vmul.f32 %v6401_v23, %v3969_v62  ;;  %3946 = vmatmul.f32.gmra.mxu1 %v6385_v43  ;;  %v3720_v43 = vpop.f32.mrf.mxu0  ;;  %v6806_v30 = vld [vmem:[#allocation23_spill] sm:$0xff]  ;;  %v3337_v15 = vpop.f32.mrf.mxu2  ;;  %v3778_v50 = vadd.f32 %v6556_v55, %v3584_v3 }
 0x578   : > { %v3196_v62 = vadd.f32 %v6283_v61, %v6806_v30  ;;  %v6807_v61 = vld [vmem:[#allocation24_spill] sm:$0xff] }
 0x579   : > { %v4041_v24 = vadd.f32 %v6407_v0, %v4005_v47 }
 0x57a   : > { %v3390_v47 = vadd.f32 %v3328_v5, %v3196_v62  ;;  %v4078_v62 = vld [vmem:[%s4748_s13 + $0x90] sm:$0xff] }
 0x57b   : > { %v4105_v42 = vadd.f32 %v4073_v31, %v4041_v24 }
 0x57c   : > { %v3902_v52 = vpop.f32.mrf.mxu1  ;;  %v3585_v53 = vadd.f32 %v3523_v20, %v3390_v47 }
 0x57d   : > { %v4137_v56 = vmax.f32 %v4105_v42, 0.0  ;;  %v3970_v37 = vadd.f32 %v3902_v52, %v3776_v63  ;;  %v3532_v63 = vpop.f32.mrf.mxu3  ;;  %v4076_v52 = vld [vmem:[%s4748_s13 + $0x80] sm:$0xff] }
 0x57e   : > { %v3779_v55 = vadd.f32 %v3717_v32, %v3585_v53 }
 0x57f   : > { %4169 = vst [vmem:[%s6418_s30 + $0x68] sm:$0xff] %v4137_v56  ;;  %v4006_v58 = vmul.f32 %v6401_v23, %v3970_v37  ;;  %3949 = vmatmul.f32.gmra.mxu1 %v3824_v46  ;;  %v3723_v40 = vpop.f32.mrf.mxu0  ;;  %v3197_v46 = vadd.f32 %v6294_v45, %v6807_v61  ;;  %v4079_v61 = vld [vmem:[%s4748_s13 + $0x98] sm:$0xff] }
 0x581   : > { %v4042_v22 = vadd.f32 %v6407_v0, %v4006_v58  ;;  %v3391_v5 = vadd.f32 %v3331_v25, %v3197_v46  ;;  %v3340_v58 = vpop.f32.mrf.mxu2  ;;  %v6810_v46 = vld [vmem:[#allocation27_spill] sm:$0xff] }
 0x583   : > { %v4106_v16 = vadd.f32 %v4074_v26, %v4042_v22  ;;  %v3586_v29 = vadd.f32 %v3526_v10, %v3391_v5 }
 0x584   : > { %v3905_v12 = vpop.f32.mrf.mxu1 }
 0x585   : > { %v4138_v8 = vmax.f32 %v4106_v16, 0.0  ;;  %v3971_v9 = vadd.f32 %v3905_v12, %v3777_v36  ;;  %v6808_v16 = vld [vmem:[#allocation25_spill] sm:$0xff]  ;;  %v3535_v25 = vpop.f32.mrf.mxu3  ;;  %v3780_v32 = vadd.f32 %v3720_v43, %v3586_v29  ;;  %v4080_v29 = vld [vmem:[%s4748_s13 + $0xa0] sm:$0xff] }
 0x586   : > { %v3198_v45 = vadd.f32 %v6305_v28, %v6808_v16 }
 0x587   : > { %4170 = vst [vmem:[%s6418_s30 + $0x70] sm:$0xff] %v4138_v8  ;;  %v4007_v1 = vmul.f32 %v6401_v23, %v3971_v9  ;;  %3952 = vmatmul.f32.gmra.mxu1 %v3825_v6  ;;  %v3726_v37 = vpop.f32.mrf.mxu0 }
 0x588   : > { %v3392_v12 = vadd.f32 %v3334_v44, %v3198_v45 }
 0x589   : > { %v4043_v59 = vadd.f32 %v6407_v0, %v4007_v1  ;;  %v3343_v10 = vpop.f32.mrf.mxu2 }
 0x58b   : > { %v4107_v31 = vadd.f32 %v4075_v38, %v4043_v59  ;;  %v3587_v38 = vadd.f32 %v3529_v11, %v3392_v12  ;;  %v6809_v59 = vld [vmem:[#allocation26_spill] sm:$0xff] }
 0x58c   : > { %v3908_v19 = vpop.f32.mrf.mxu1  ;;  %v3199_v28 = vadd.f32 %v6316_v39, %v6809_v59  ;;  %v3200_v39 = vadd.f32 %v6327_v18, %v6810_v46 }
 0x58d   : > { %v4139_v34 = vmax.f32 %v4107_v31, 0.0  ;;  %v3972_v24 = vadd.f32 %v3908_v19, %v3778_v50  ;;  %v3781_v43 = vadd.f32 %v3723_v40, %v3587_v38  ;;  %v3538_v50 = vpop.f32.mrf.mxu3  ;;  %v6812_v38 = vld [vmem:[#allocation30_spill] sm:$0xff] }
 0x58e   : > { %v3393_v44 = vadd.f32 %v3337_v15, %v3199_v28 }
 0x58f   : > { %4171 = vst [vmem:[%s6418_s30 + $0x78] sm:$0xff] %v4139_v34  ;;  %v4008_v42 = vmul.f32 %v6401_v23, %v3972_v24  ;;  %v3729_v9 = vpop.f32.mrf.mxu0 }
 0x590   : > { %v3588_v53 = vadd.f32 %v3532_v63, %v3393_v44 }
 0x591   : > { %v4044_v56 = vadd.f32 %v6407_v0, %v4008_v42 }
 0x592   : > { %v3782_v5 = vadd.f32 %v3726_v37, %v3588_v53 }
 0x593   : > { %v4108_v27 = vadd.f32 %v4076_v52, %v4044_v56  ;;  %v3346_v52 = vpop.f32.mrf.mxu2  ;;  %v3394_v56 = vadd.f32 %v3340_v58, %v3200_v39 }
 0x594   : > { %v3911_v26 = vpop.f32.mrf.mxu1 }
 0x595   : > { %v4140_v33 = vmax.f32 %v4108_v27, 0.0  ;;  %v3973_v20 = vadd.f32 %v3911_v26, %v3779_v55  ;;  %v3541_v63 = vpop.f32.mrf.mxu3 }
 0x597   : > { %4172 = vst [vmem:[%s6418_s30 + $0x80] sm:$0xff] %v4140_v33  ;;  %v4009_v22 = vmul.f32 %v6401_v23, %v3973_v20  ;;  %v3732_v11 = vpop.f32.mrf.mxu0  ;;  %v3589_v33 = vadd.f32 %v3535_v25, %v3394_v56 }
 0x599   : > { %v4045_v36 = vadd.f32 %v6407_v0, %v4009_v22  ;;  %v6811_v22 = vld [vmem:[#allocation28_spill] sm:$0xff] }
 0x59b   : > { %v4109_v6 = vadd.f32 %v4077_v14, %v4045_v36  ;;  %v3201_v14 = vadd.f32 %v6336_v21, %v6811_v22  ;;  %v3349_v58 = vpop.f32.mrf.mxu2  ;;  %v3783_v36 = vadd.f32 %v3729_v9, %v3589_v33  ;;  %v3202_v21 = vadd.f32 %v6345_v51, %v6812_v38 }
 0x59c   : > { %v3914_v8 = vpop.f32.mrf.mxu1 }
 0x59d   : > { %v4141_v3 = vmax.f32 %v4109_v6, 0.0  ;;  %v3974_v1 = vadd.f32 %v3914_v8, %v3780_v32  ;;  %v3395_v45 = vadd.f32 %v3343_v10, %v3201_v14 }
 0x59f   : > { %4173 = vst [vmem:[%s6418_s30 + $0x88] sm:$0xff] %v4141_v3  ;;  %v4010_v30 = vmul.f32 %v6401_v23, %v3974_v1  ;;  %v3735_v18 = vpop.f32.mrf.mxu0  ;;  %v3590_v8 = vadd.f32 %v3538_v50, %v3395_v45  ;;  %v3544_v3 = vpop.f32.mrf.mxu3  ;;  %v4081_v1 = vld [vmem:[%s4748_s13 + $0xa8] sm:$0xff] }
 0x5a1   : > { %v4046_v47 = vadd.f32 %v6407_v0, %v4010_v30  ;;  %v3784_v9 = vadd.f32 %v3732_v11, %v3590_v8 }
 0x5a3   : > { %v4110_v31 = vadd.f32 %v4078_v62, %v4046_v47  ;;  %v3396_v62 = vadd.f32 %v3346_v52, %v3202_v21  ;;  %v3352_v28 = vpop.f32.mrf.mxu2 }
 0x5a4   : > { %v3917_v19 = vpop.f32.mrf.mxu1 }
 0x5a5   : > { %v4142_v34 = vmax.f32 %v4110_v31, 0.0  ;;  %v3975_v24 = vadd.f32 %v3917_v19, %v3781_v43  ;;  %v3591_v43 = vadd.f32 %v3541_v63, %v3396_v62  ;;  %v4082_v19 = vld [vmem:[%s4748_s13 + $0xb0] sm:$0xff] }
 0x5a7   : > { %4174 = vst [vmem:[%s6418_s30 + $0x90] sm:$0xff] %v4142_v34  ;;  %v4011_v42 = vmul.f32 %v6401_v23, %v3975_v24  ;;  %v3738_v10 = vpop.f32.mrf.mxu0  ;;  %v6813_v34 = vld [vmem:[#allocation31_spill] sm:$0xff]  ;;  %v3547_v53 = vpop.f32.mrf.mxu3  ;;  %v3785_v11 = vadd.f32 %v3735_v18, %v3591_v43 }
 0x5a8   : > { %v3203_v51 = vadd.f32 %v6354_v7, %v6813_v34 }
 0x5a9   : > { %v4047_v15 = vadd.f32 %v6407_v0, %v4011_v42 }
 0x5aa   : > { %v3397_v42 = vadd.f32 %v3349_v58, %v3203_v51 }
 0x5ab   : > { %v4111_v40 = vadd.f32 %v4079_v61, %v4047_v15  ;;  %v3355_v56 = vpop.f32.mrf.mxu2 }
 0x5ac   : > { %v3920_v27 = vpop.f32.mrf.mxu1 }
 0x5ad   : > { %v4143_v55 = vmax.f32 %v4111_v40, 0.0  ;;  %v3976_v26 = vadd.f32 %v3920_v27, %v3782_v5  ;;  %v3592_v40 = vadd.f32 %v3544_v3, %v3397_v42  ;;  %v4083_v27 = vld [vmem:[%s4748_s13 + $0xb8] sm:$0xff]  ;;  %v4086_v42 = vld [vmem:[%s4748_s13 + $0xd0] sm:$0xff] }
 0x5af   : > { %4175 = vst [vmem:[%s6418_s30 + $0x98] sm:$0xff] %v4143_v55  ;;  %v4012_v20 = vmul.f32 %v6401_v23, %v3976_v26  ;;  %v3741_v46 = vpop.f32.mrf.mxu0  ;;  %v6814_v55 = vld [vmem:[#allocation33_spill] sm:$0xff] }
 0x5b0   : > { %v3204_v7 = vadd.f32 %v6363_v48, %v6814_v55 }
 0x5b1   : > { %v4048_v16 = vadd.f32 %v6407_v0, %v4012_v20  ;;  %v3786_v20 = vadd.f32 %v3738_v10, %v3592_v40  ;;  %v4085_v10 = vld [vmem:[%s4748_s13 + $0xc8] sm:$0xff] }
 0x5b2   : > { %v3398_v63 = vadd.f32 %v3352_v28, %v3204_v7  ;;  %v4087_v7 = vld [vmem:[%s4748_s13 + $0xd8] sm:$0xff] }
 0x5b3   : > { %v4112_v37 = vadd.f32 %v4080_v29, %v4048_v16  ;;  %v3550_v29 = vpop.f32.mrf.mxu3 }
 0x5b4   : > { %v3923_v12 = vpop.f32.mrf.mxu1  ;;  %v3593_v16 = vadd.f32 %v3547_v53, %v3398_v63 }
 0x5b5   : > { %v4144_v6 = vmax.f32 %v4112_v37, 0.0  ;;  %v3977_v32 = vadd.f32 %v3923_v12, %v3783_v36  ;;  %v3358_v37 = vpop.f32.mrf.mxu2  ;;  %v4084_v36 = vld [vmem:[%s4748_s13 + $0xc0] sm:$0xff]  ;;  %v6815_v12 = vld [vmem:[#allocation35_spill] sm:$0xff] }
 0x5b6   : > { %v3205_v48 = vadd.f32 %v6370_v13, %v6815_v12 }
 0x5b7   : > { %4176 = vst [vmem:[%s6418_s30 + $0xa0] sm:$0xff] %v4144_v6  ;;  %v4013_v25 = vmul.f32 %v6401_v23, %v3977_v32  ;;  %v3744_v58 = vpop.f32.mrf.mxu0 }
 0x5b8   : > { %v3399_v32 = vadd.f32 %v3355_v56, %v3205_v48 }
 0x5b9   : > { %v4049_v30 = vadd.f32 %v6407_v0, %v4013_v25  ;;  %v3787_v25 = vadd.f32 %v3741_v46, %v3593_v16 }
 0x5bb   : > { %v4113_v59 = vadd.f32 %v4081_v1, %v4049_v30  ;;  %v3553_v21 = vpop.f32.mrf.mxu3  ;;  %v3594_v30 = vadd.f32 %v3550_v29, %v3399_v32 }
 0x5bc   : > { %v3926_v47 = vpop.f32.mrf.mxu1 }
 0x5bd   : > { %v4145_v44 = vmax.f32 %v4113_v59, 0.0  ;;  %v3978_v31 = vadd.f32 %v3926_v47, %v3784_v9  ;;  %v6816_v59 = vld [vmem:[#allocation37_spill] sm:$0xff]  ;;  %v3361_v47 = vpop.f32.mrf.mxu2  ;;  %v3788_v43 = vadd.f32 %v3744_v58, %v3594_v30  ;;  %v4089_v30 = vld [vmem:[%s4748_s13 + $0xe8] sm:$0xff] }
 0x5be   : > { %v3206_v9 = vadd.f32 %v6377_v35, %v6816_v59  ;;  %v3207_v35 = vadd.f32 %v6383_v57, %v6241_v2  ;;  %v3208_v2 = vadd.f32 %v6389_v54, %v6255_v60  ;;  %v3209_v60 = vadd.f32 %v6392_v49, %v6269_v41 }
 0x5bf   : > { %4177 = vst [vmem:[%s6418_s30 + $0xa8] sm:$0xff] %v4145_v44  ;;  %v4014_v50 = vmul.f32 %v6401_v23, %v3978_v31  ;;  %v3747_v13 = vpop.f32.mrf.mxu0  ;;  %v3210_v41 = vadd.f32 %v6395_v4, %v6281_v17 }
 0x5c0   : > { %v3400_v44 = vadd.f32 %v3358_v37, %v3206_v9  ;;  %v4088_v37 = vld [vmem:[%s4748_s13 + $0xe0] sm:$0xff] }
 0x5c1   : > { %v4050_v24 = vadd.f32 %v6407_v0, %v4014_v50 }
 0x5c2   : > { %v3595_v51 = vadd.f32 %v3553_v21, %v3400_v44 }
 0x5c3   : > { %v4114_v52 = vadd.f32 %v4082_v19, %v4050_v24  ;;  %v3556_v53 = vpop.f32.mrf.mxu3 }
 0x5c4   : > { %v3929_v61 = vpop.f32.mrf.mxu1 }
 0x5c5   : > { %v4146_v39 = vmax.f32 %v4114_v52, 0.0  ;;  %v3979_v15 = vadd.f32 %v3929_v61, %v3785_v11  ;;  %v3401_v61 = vadd.f32 %v3361_v47, %v3207_v35 }
 0x5c7   : > { %4178 = vst [vmem:[%s6418_s30 + $0xb0] sm:$0xff] %v4146_v39  ;;  %v4015_v5 = vmul.f32 %v6401_v23, %v3979_v15  ;;  %v3750_v11 = vpop.f32.mrf.mxu0  ;;  %v3789_v39 = vadd.f32 %v3747_v13, %v3595_v51  ;;  %v3364_v15 = vpop.f32.mrf.mxu2 }
 0x5c8   : > { %v3402_v63 = vadd.f32 %v3364_v15, %v3208_v2 }
 0x5c9   : > { %v4051_v26 = vadd.f32 %v6407_v0, %v4015_v5 }
 0x5cb   : > { %v4115_v33 = vadd.f32 %v4083_v27, %v4051_v26  ;;  %v3596_v27 = vadd.f32 %v3556_v53, %v3401_v61  ;;  %v3559_v26 = vpop.f32.mrf.mxu3 }
 0x5cc   : > { %v3932_v22 = vpop.f32.mrf.mxu1  ;;  %v3597_v58 = vadd.f32 %v3559_v26, %v3402_v63 }
 0x5cd   : > { %v4147_v14 = vmax.f32 %v4115_v33, 0.0  ;;  %v3980_v18 = vadd.f32 %v3932_v22, %v3786_v20  ;;  %v3790_v20 = vadd.f32 %v3750_v11, %v3596_v27 }
 0x5cf   : > { %4179 = vst [vmem:[%s6418_s30 + $0xb8] sm:$0xff] %v4147_v14  ;;  %v4016_v45 = vmul.f32 %v6401_v23, %v3980_v18  ;;  %v3753_v18 = vpop.f32.mrf.mxu0  ;;  %v3367_v16 = vpop.f32.mrf.mxu2 }
 0x5d0   : > { %v3403_v12 = vadd.f32 %v3367_v16, %v3209_v60 }
 0x5d1   : > { %v4052_v6 = vadd.f32 %v6407_v0, %v4016_v45 }
 0x5d3   : > { %v4116_v8 = vadd.f32 %v4084_v36, %v4052_v6  ;;  %v3562_v36 = vpop.f32.mrf.mxu3  ;;  %v3791_v6 = vadd.f32 %v3753_v18, %v3597_v58 }
 0x5d4   : > { %v3935_v3 = vpop.f32.mrf.mxu1 }
 0x5d5   : > { %v4148_v1 = vmax.f32 %v4116_v8, 0.0  ;;  %v3981_v38 = vadd.f32 %v3935_v3, %v3787_v25 }
 0x5d7   : > { %4180 = vst [vmem:[%s6418_s30 + $0xc0] sm:$0xff] %v4148_v1  ;;  %v4017_v62 = vmul.f32 %v6401_v23, %v3981_v38  ;;  %v3756_v3 = vpop.f32.mrf.mxu0  ;;  %v3598_v1 = vadd.f32 %v3562_v36, %v3403_v12  ;;  %v3370_v21 = vpop.f32.mrf.mxu2 }
 0x5d9   : > { %v4053_v28 = vadd.f32 %v6407_v0, %v4017_v62  ;;  %v3792_v62 = vadd.f32 %v3756_v3, %v3598_v1 }
 0x5db   : > { %v4117_v31 = vadd.f32 %v4085_v10, %v4053_v28  ;;  %v3404_v10 = vadd.f32 %v3370_v21, %v3210_v41  ;;  %v3565_v9 = vpop.f32.mrf.mxu3 }
 0x5dc   : > { %v3938_v50 = vpop.f32.mrf.mxu1 }
 0x5dd   : > { %v4149_v19 = vmax.f32 %v4117_v31, 0.0  ;;  %v3982_v34 = vadd.f32 %v3938_v50, %v3788_v43  ;;  %v3599_v44 = vadd.f32 %v3565_v9, %v3404_v10  ;;  %v4090_v50 = vld [vmem:[%s4748_s13 + $0xf0] sm:$0xff] }
 0x5df   : > { %4181 = vst [vmem:[%s6418_s30 + $0xc8] sm:$0xff] %v4149_v19  ;;  %v4018_v24 = vmul.f32 %v6401_v23, %v3982_v34  ;;  %v3759_v43 = vpop.f32.mrf.mxu0 }
 0x5e0   : > { %v3793_v4 = vadd.f32 %v3759_v43, %v3599_v44 }
 0x5e1   : > { %v4054_v52 = vadd.f32 %v6407_v0, %v4018_v24 }
 0x5e3   : > { %v4118_v46 = vadd.f32 %v4086_v42, %v4054_v52  ;;  %v4091_v42 = vld [vmem:[%s4748_s13 + $0xf8] sm:$0xff]  ;;  %s4538_s13 = scalar_lea.hbm %s6729_s7, 512 }
 0x5e4   : > { %v3941_v56 = vpop.f32.mrf.mxu1  ;;  %p4540_p2 = scmp.lt.s32.totalorder %s4538_s13, %s4534_s16 }
 0x5e5   : > { %v4150_v40 = vmax.f32 %v4118_v46, 0.0  ;;  %v3983_v5 = vadd.f32 %v3941_v56, %v3789_v39 }
 0x5e6   : > { %p4541_p9 = por %p4540_p2, %p4539_p11 }
 0x5e7   : > { %4182 = vst [vmem:[%s6418_s30 + $0xd0] sm:$0xff] %v4150_v40  ;;  %v4019_v55 = vmul.f32 %v6401_v23, %v3983_v5 }
 0x5e8   : > { %p4542_p10 = pnand %p4541_p9, %p4537_p8 }
 0x5e9   : > { %v4055_v57 = vadd.f32 %v6407_v0, %v4019_v55 }
 0x5eb   : > { %v4119_v33 = vadd.f32 %v4087_v7, %v4055_v57 }
 0x5ec   : > { %v3944_v29 = vpop.f32.mrf.mxu1 }
 0x5ed   : > { %v4151_v22 = vmax.f32 %v4119_v33, 0.0  ;;  %v3984_v14 = vadd.f32 %v3944_v29, %v3790_v20 }
 0x5ef   : > { %4183 = vst [vmem:[%s6418_s30 + $0xd8] sm:$0xff] %v4151_v22  ;;  %v4020_v45 = vmul.f32 %v6401_v23, %v3984_v14 }
 0x5f1   : > { %v4056_v54 = vadd.f32 %v6407_v0, %v4020_v45 }
 0x5f3   : > { %v4120_v48 = vadd.f32 %v4088_v37, %v4056_v54 }
 0x5f4   : > { %v3947_v32 = vpop.f32.mrf.mxu1 }
 0x5f5   : > { %v4152_v8 = vmax.f32 %v4120_v48, 0.0  ;;  %v3985_v25 = vadd.f32 %v3947_v32, %v3791_v6 }
 0x5f7   : > { %4184 = vst [vmem:[%s6418_s30 + $0xe0] sm:$0xff] %v4152_v8  ;;  %v4021_v38 = vmul.f32 %v6401_v23, %v3985_v25 }
 0x5f9   : > { %v4057_v49 = vadd.f32 %v6407_v0, %v4021_v38 }
 0x5fb   : > { %v4121_v59 = vadd.f32 %v4089_v30, %v4057_v49 }
 0x5fc   : > { %v3950_v13 = vpop.f32.mrf.mxu1 }
 0x5fd   : > { %v4153_v28 = vmax.f32 %v4121_v59, 0.0  ;;  %v3986_v47 = vadd.f32 %v3950_v13, %v3792_v62 }
 0x5ff   : > { %4185 = vst [vmem:[%s6418_s30 + $0xe8] sm:$0xff] %v4153_v28  ;;  %v4022_v31 = vmul.f32 %v6401_v23, %v3986_v47 }
 0x601   : > { %v4058_v17 = vadd.f32 %v6407_v0, %v4022_v31 }
 0x603   : > { %v4122_v19 = vadd.f32 %v4090_v50, %v4058_v17 }
 0x604   : > { %v3953_v34 = vpop.f32.mrf.mxu1 }
 0x605   : > { %v4154_v51 = vmax.f32 %v4122_v19, 0.0  ;;  %v3987_v24 = vadd.f32 %v3953_v34, %v3793_v4 }
 0x607   : > { %4186 = vst [vmem:[%s6418_s30 + $0xf0] sm:$0xff] %v4154_v51  ;;  %v4023_v53 = vmul.f32 %v6401_v23, %v3987_v24 }
 0x609   : > { %v4059_v35 = vadd.f32 %v6407_v0, %v4023_v53 }
 0x60b   : > { %v4123_v52 = vadd.f32 %v4091_v42, %v4059_v35 }
 0x60d   : > { %v4155_v11 = vmax.f32 %v4123_v52, 0.0 }
 0x60f   : > { %4187 = vst [vmem:[%s6418_s30 + $0xf8] sm:$0xff] %v4155_v11 }
 0x610   : > { %4545 = shalt.err (!%p4542_p10)
}
 0x611   : > { %s4595_s14 = smov 128   ;;  %s4596_s30 = smov 8  }
 0x612   : > { %4358 = dma.vmem_to_hbm [thread:$0]  (%p4709_p3), %s4202_s29, 4096, %s4204_s23, %s4189_s28, %s4595_s14, %s4595_s14, %s4596_s30  }
 0x613 PF: > { %s4218_s1 = sand.u32 1, %s4576_s24   ;;  %p6817_p12 = scmp.ge.s32.totalorder %s4588_s27, 2 }
 0x614   : > { %s4219_s12 = scalar_lea.sflag [#allocation6], %s4218_s1 }
 0x615   : > { %p4372_p13 = pnand %p6817_p12, %p4672_p6 }
 0x617   : > { %p4373_p0 = pneg %p4372_p13 }
 0x619   : > { %4571 = dma.done.wait (%p4373_p0), %s4219_s12, 4096  }
 0x61a   : > { %4573 = vsyncadd (%p4373_p0), %s4219_s12, 4294963200  ;;  %p21_p5 = scmp.ge.s32.totalorder %s4699_s22, 4   ;;  %s6818_s24 = smov %s4580_s25 }
 0x61b   : > { %s6819_s25 = smov %s4584_s26  ;;  %s6820_s26 = smov %s4715_s10 }
 0x61c   : > { %s6821_s27 = smov %s4699_s22  ;;  %23 = sbr.rel (!%p21_p5) target bundleno = 8 (0x8), region = 123 }
 0x621   :  { %4225 = vsyncpa [#allocation5], 1 }
 0x622   :  { %4227 = vsyncpa [#allocation5 + $0x1], 1 }
 0x623   :  { %4228 = vsyncpa [#allocation8], 1 }
 0x624   :  { %4229 = vsyncpa [#allocation6], 1 }
 0x625   :  { %4231 = vsyncpa [#allocation6 + $0x1], 1 }

</bundles_post_ra>
